<compile_context>
chip_gen: v5e
topology: v5e:2x2
jax: 0.10.0
libtpu: 0.0.40
codegen_flags: <defaults>
</compile_context>

<pallas_src>
import functools

import numpy as np
import jax
import jax.numpy as jnp
from jax.experimental import pallas as pl
from jax.experimental.pallas import tpu as pltpu

POOL_SIZES = (1, 2, 3, 6)
BN_EPS = 1e-5
LANE = 128

# 8-aligned stacked layout of pooled rows (and matching upsample columns):
#   row 0        : global-mean row            (pool size 1)
#   rows 8..11   : 2x2 adaptive-pool rows     (pool size 2)
#   rows 16..24  : 3x3 adaptive-pool rows     (pool size 3)
#   rows 32..67  : 6x6 adaptive-pool rows     (pool size 6)
# Every other row of P_all (and column of U_all) is zero, so the "garbage"
# rows inside each aligned segment contribute nothing to the output.
SEGS = {1: (0, 8), 2: (8, 16), 3: (16, 32), 6: (32, 72)}
R_PAD = 72


def _round_up(x, m):
    return ((x + m - 1) // m) * m


def _tile_and_pad(hw, tile_hw):
    """Pick an 8-aligned HW tile and the padded HW extent it divides."""
    tile = _round_up(min(tile_hw, _round_up(hw, 8)), 8)
    return tile, _round_up(hw, tile)


# ----------------------------------------------------------------------------
# Host-side geometry matrices (tiny, deterministic; exact torch semantics).
# ----------------------------------------------------------------------------
def _adaptive_avg_pool_matrix(in_size: int, out_size: int) -> np.ndarray:
    """(out_size, in_size) matrix reproducing torch AdaptiveAvgPool1d windows."""
    m = np.zeros((out_size, in_size), dtype=np.float32)
    for i in range(out_size):
        start = (i * in_size) // out_size
        end = -(-((i + 1) * in_size) // out_size)  # ceil
        m[i, start:end] = 1.0 / (end - start)
    return m


def _bilinear_matrix(out_size: int, in_size: int) -> np.ndarray:
    """(out_size, in_size) bilinear interp matrix, align_corners=True (torch)."""
    m = np.zeros((out_size, in_size), dtype=np.float32)
    if in_size == 1:
        m[:, 0] = 1.0
        return m
    for y in range(out_size):
        src = y * (in_size - 1) / (out_size - 1)
        y0 = min(int(np.floor(src)), in_size - 1)
        y1 = min(y0 + 1, in_size - 1)
        f = src - y0
        m[y, y0] += 1.0 - f
        m[y, y1] += f
    return m


def build_geometry(H: int, W: int, hw_pad: int):
    """Stacked pooling matrix P_all (R_PAD, hw_pad) and upsample matrix
    U_all (hw_pad, R_PAD), bf16, including the global-mean row / ones column
    for the pool-size-1 branch.  Padded pixels (>= H*W) are zero columns/rows.
    """
    HW = H * W
    P = np.zeros((R_PAD, hw_pad), np.float32)
    U = np.zeros((hw_pad, R_PAD), np.float32)
    P[0, :HW] = 1.0 / HW          # pool size 1: global average (one MXU row)
    U[:HW, 0] = 1.0               # pool size 1: broadcast back to every pixel
    for s in POOL_SIZES[1:]:
        lo, _ = SEGS[s]
        ph = _adaptive_avg_pool_matrix(H, s)
        pw = _adaptive_avg_pool_matrix(W, s)
        P[lo:lo + s * s, :HW] = np.kron(ph, pw)
        ah = _bilinear_matrix(H, s)
        aw = _bilinear_matrix(W, s)
        U[:HW, lo:lo + s * s] = np.kron(ah, aw)
    return {"p": jnp.asarray(P, jnp.bfloat16), "u": jnp.asarray(U, jnp.bfloat16)}


# ----------------------------------------------------------------------------
# Shared in-kernel helper: branch convs (+folded BN) + ReLU + branch slices of
# the final 1x1 conv, applied at pooled resolution -> (R_PAD, Coutp) table.
# ----------------------------------------------------------------------------
def _branch_table(pooled_f32, w_refs, b_refs, wf_refs):
    def branch(seg, w_ref, b_ref, wfs_ref):
        lo, hi = seg
        pooled = pooled_f32[lo:hi, :].astype(jnp.bfloat16)        # (seg, C)
        a = jnp.dot(pooled, w_ref[...],
                    preferred_element_type=jnp.float32)           # (seg, C4p)
        a = jnp.maximum(a + b_ref[...], 0.0).astype(jnp.bfloat16)
        # final-conv slice applied at pooled resolution (reassociation).
        return jnp.dot(a, wfs_ref[...],
                       preferred_element_type=jnp.float32)        # (seg, Coutp)

    return jnp.concatenate(
        [branch(SEGS[s], w_refs[i], b_refs[i], wf_refs[i])
         for i, s in enumerate(POOL_SIZES)], axis=0)              # (R_PAD, Coutp)


# ----------------------------------------------------------------------------
# Fused single-pass kernel: whole (padded) image resident per grid step.
# ----------------------------------------------------------------------------
def _fused_kernel(
    x_ref, p_ref, u_ref,                          # (1,HWp,C), (R_PAD,HWp), (HWp,R_PAD)
    w1_ref, b1_ref, w2_ref, b2_ref,               # branch convs (C,C4p)/(1,C4p)
    w3_ref, b3_ref, w6_ref, b6_ref,
    wf1_ref, wf2_ref, wf3_ref, wf6_ref,           # final-conv slices (C4p,Coutp)
    wfx_ref, bf_ref,                              # (C,Coutp), (1,Coutp)
    o_ref,                                        # (1,HWp,Coutp)
):
    x = x_ref[0]                                                   # (HWp, C) bf16
    pooled = jnp.dot(p_ref[...], x, preferred_element_type=jnp.float32)
    table = _branch_table(pooled,
                          (w1_ref, w2_ref, w3_ref, w6_ref),
                          (b1_ref, b2_ref, b3_ref, b6_ref),
                          (wf1_ref, wf2_ref, wf3_ref, wf6_ref))
    y = jnp.dot(x, wfx_ref[...], preferred_element_type=jnp.float32)
    y = y + jnp.dot(u_ref[...], table.astype(jnp.bfloat16),
                    preferred_element_type=jnp.float32)
    y = jnp.maximum(y + bf_ref[...], 0.0)          # bias + ReLU in f32
    # TODO(synk): Dropout2d(p=0.2) is identity at inference; training-mode
    # per-channel dropout (pltpu PRNG bernoulli) not implemented here.
    o_ref[0] = y.astype(o_ref.dtype)


# ----------------------------------------------------------------------------
# Two-pass fallback, pass 1: pooled reduction across HW tiles + branch table.
# ----------------------------------------------------------------------------
def _pool_branch_kernel(
    x_ref, p_ref,                               # (1, T, C), (R_PAD, T)  bf16
    w1_ref, b1_ref, w2_ref, b2_ref,
    w3_ref, b3_ref, w6_ref, b6_ref,
    wf1_ref, wf2_ref, wf3_ref, wf6_ref,
    brs_ref,                                    # out: (1, R_PAD, Coutp) bf16
    acc_ref,                                    # scratch: (R_PAD, C) f32
):
    t = pl.program_id(1)

    @pl.when(t == 0)
    def _():
        acc_ref[...] = jnp.zeros_like(acc_ref)

    # Single stacked pooled matmul: all pool sizes + the global mean in one
    # MXU pass (no tiny per-branch matmuls, no XLU cross-sublane mean).
    acc_ref[...] += jnp.dot(p_ref[...], x_ref[0],
                            preferred_element_type=jnp.float32)

    @pl.when(t == pl.num_programs(1) - 1)
    def _():
        table = _branch_table(acc_ref[...],
                              (w1_ref, w2_ref, w3_ref, w6_ref),
                              (b1_ref, b2_ref, b3_ref, b6_ref),
                              (wf1_ref, wf2_ref, wf3_ref, wf6_ref))
        brs_ref[0] = table.astype(jnp.bfloat16)


# ----------------------------------------------------------------------------
# Two-pass fallback, pass 2: relu( x @ Wf_x + U_tile @ table + bf ) per tile.
# ----------------------------------------------------------------------------
def _output_kernel(x_ref, u_ref, brs_ref, wfx_ref, bf_ref, o_ref):
    y = jnp.dot(x_ref[0], wfx_ref[...], preferred_element_type=jnp.float32)
    y = y + jnp.dot(u_ref[...], brs_ref[0],
                    preferred_element_type=jnp.float32)
    y = jnp.maximum(y + bf_ref[...], 0.0)       # bias + ReLU in f32
    o_ref[0] = y.astype(o_ref.dtype)


# ----------------------------------------------------------------------------
# Wrapper
# ----------------------------------------------------------------------------
def _fused_vmem_bytes(hw_pad, C, c4p, coutp):
    """Conservative VMEM footprint estimate for the fused single-pass path."""
    dbuf = 2
    x_b = dbuf * hw_pad * C * 2
    o_b = dbuf * hw_pad * coutp * 4
    geo_b = dbuf * 2 * hw_pad * R_PAD * 2
    w_b = dbuf * 2 * (4 * C * c4p + 4 * c4p * coutp + C * coutp)
    tmp_b = 2 * hw_pad * coutp * 4 + R_PAD * C * 4 + R_PAD * coutp * 8
    return x_b + o_b + geo_b + w_b + tmp_b


@functools.partial(jax.jit,
                   static_argnames=("out_channels", "tile_hw",
                                    "force_two_pass", "vmem_limit_bytes"))
def psp_decoder_block(x_nchw, kparams, geom, *, out_channels,
                      tile_hw=512, force_two_pass=False,
                      vmem_limit_bytes=48 * 1024 * 1024):
    # tile_hw=512 is a safe default across v5e/v6e/v7x for the tiled fallback
    # (fits double-buffered bf16 tiles well under the scoped default even at
    # C=2048); enlarge to 1024-2048 on v5e/v6e (128 MiB VMEM), <=512 on v7x.
    N, C, H, W = x_nchw.shape
    HW = H * W
    tile, hw_pad = _tile_and_pad(HW, tile_hw)
    num_tiles = hw_pad // tile
    p_all, u_all = geom["p"], geom["u"]
    assert p_all.shape == (R_PAD, hw_pad) and u_all.shape == (hw_pad, R_PAD)
    coutp = kparams["bf"].shape[1]
    c4p = kparams["b1"].shape[1]

    # Layout glue: NCHW -> N(HW)C, zero-pad HW to a tile multiple, bf16 store.
    x = jnp.transpose(x_nchw, (0, 2, 3, 1)).reshape(N, HW, C)
    x = jnp.pad(x, ((0, 0), (0, hw_pad - HW), (0, 0))).astype(jnp.bfloat16)

    weights = [
        kparams["w1"], kparams["b1"], kparams["w2"], kparams["b2"],
        kparams["w3"], kparams["b3"], kparams["w6"], kparams["b6"],
        kparams["wf1"], kparams["wf2"], kparams["wf3"], kparams["wf6"],
    ]

    def _const1(a):
        z = (0,) * a.ndim
        return pl.BlockSpec(a.shape, lambda n, _z=z: _z)

    def _const2(a):
        z = (0,) * a.ndim
        return pl.BlockSpec(a.shape, lambda n, t, _z=z: _z)

    use_fused = (not force_two_pass) and (
        _fused_vmem_bytes(hw_pad, C, c4p, coutp) <= int(0.70 * vmem_limit_bytes))

    if use_fused:
        # ----- single pass: whole padded image per grid step -----------------
        fused_in = [x, p_all, u_all] + weights + [kparams["wfx"], kparams["bf"]]
        fused_specs = (
            [pl.BlockSpec((1, hw_pad, C), lambda n: (n, 0, 0)),
             _const1(p_all), _const1(u_all)]
            + [_const1(a) for a in weights]
            + [_const1(kparams["wfx"]), _const1(kparams["bf"])]
        )
        y = pl.pallas_call(
            _fused_kernel,
            out_shape=jax.ShapeDtypeStruct((N, hw_pad, coutp), jnp.float32),
            grid=(N,),
            in_specs=fused_specs,
            out_specs=pl.BlockSpec((1, hw_pad, coutp), lambda n: (n, 0, 0)),
            compiler_params=pltpu.CompilerParams(
                dimension_semantics=("parallel",),
                vmem_limit_bytes=vmem_limit_bytes),
        )(*fused_in)
    else:
        grid = (N, num_tiles)

        # ----- pass 1: pooled accumulation (reduction over HW tiles) ---------
        pool_in = [x, p_all] + weights
        pool_specs = [
            pl.BlockSpec((1, tile, C), lambda n, t: (n, t, 0)),
            pl.BlockSpec((R_PAD, tile), lambda n, t: (0, t)),
        ] + [_const2(a) for a in weights]

        brs = pl.pallas_call(
            _pool_branch_kernel,
            out_shape=jax.ShapeDtypeStruct((N, R_PAD, coutp), jnp.bfloat16),
            grid=grid,
            in_specs=pool_specs,
            out_specs=pl.BlockSpec((1, R_PAD, coutp), lambda n, t: (n, 0, 0)),
            scratch_shapes=[pltpu.VMEM((R_PAD, C), jnp.float32)],
            compiler_params=pltpu.CompilerParams(
                dimension_semantics=("parallel", "arbitrary"),
                vmem_limit_bytes=vmem_limit_bytes),
        )(*pool_in)

        # ----- pass 2: per-tile output (both axes parallel; v7x 2-TC) --------
        out_in = [x, u_all, brs, kparams["wfx"], kparams["bf"]]
        out_specs_in = [
            pl.BlockSpec((1, tile, C), lambda n, t: (n, t, 0)),
            pl.BlockSpec((tile, R_PAD), lambda n, t: (t, 0)),
            pl.BlockSpec((1, R_PAD, coutp), lambda n, t: (n, 0, 0)),
            _const2(kparams["wfx"]),
            _const2(kparams["bf"]),
        ]
        y = pl.pallas_call(
            _output_kernel,
            out_shape=jax.ShapeDtypeStruct((N, hw_pad, coutp), jnp.float32),
            grid=grid,
            in_specs=out_specs_in,
            out_specs=pl.BlockSpec((1, tile, coutp), lambda n, t: (n, t, 0)),
            compiler_params=pltpu.CompilerParams(
                dimension_semantics=("parallel", "parallel"),
                vmem_limit_bytes=vmem_limit_bytes),
        )(*out_in)

    # Slice off HW / Cout padding; N(HW)Cout -> NCHW (glue).
    y = y[:, :HW, :out_channels].reshape(N, H, W, out_channels)
    return jnp.transpose(y, (0, 3, 1, 2))


# ----------------------------------------------------------------------------
# Deterministic parameter initialization (synthetic; BN folded at inference).
# ----------------------------------------------------------------------------
def init_params(key, enc_c, out_c):
    c4 = enc_c // len(POOL_SIZES)
    ks = jax.random.split(key, 6)
    params = {}

    # branch s=1: 1x1 conv C -> C/4 WITH bias, no BatchNorm (pool_size == 1)
    params["w1"] = jax.random.normal(ks[0], (enc_c, c4), jnp.float32) * 0.2
    params["b1"] = jax.random.normal(ks[1], (1, c4), jnp.float32) * 0.1

    # branches s=2,3,6: 1x1 conv (no bias) + inference BatchNorm, folded
    for idx, s in enumerate((2, 3, 6)):
        w = jax.random.normal(ks[2 + idx], (enc_c, c4), jnp.float32) * 0.2
        gamma = 1.0 + 0.05 * jnp.arange(c4, dtype=jnp.float32)
        beta = 0.02 * jnp.arange(c4, dtype=jnp.float32)
        rmean = 0.01 * jnp.arange(c4, dtype=jnp.float32)
        rvar = 1.0 + 0.1 * jnp.arange(c4, dtype=jnp.float32)
        scale = gamma / jnp.sqrt(rvar + BN_EPS)
        params[f"w{s}"] = w * scale[None, :]
        params[f"b{s}"] = (beta - rmean * scale)[None, :]

    # final Conv2dReLU: 1x1 conv 2C -> out_c (no bias) + inference BN, folded
    wf = jax.random.normal(ks[5], (2 * enc_c, out_c), jnp.float32) * 0.1
    gamma = 1.0 + 0.03 * jnp.arange(out_c, dtype=jnp.float32)
    beta = -0.01 * jnp.arange(out_c, dtype=jnp.float32)
    rmean = 0.005 * jnp.arange(out_c, dtype=jnp.float32)
    rvar = 1.0 + 0.05 * jnp.arange(out_c, dtype=jnp.float32)
    scale = gamma / jnp.sqrt(rvar + BN_EPS)
    params["wf"] = wf * scale[None, :]
    params["bf"] = (beta - rmean * scale)[None, :]
    return params


def prepare_kernel_params(params, enc_c, out_c):
    """Split the final conv across the concat sources, pad C/4 and Cout to
    128-lane multiples (zero columns/rows), cast weights to bf16 (biases f32)."""
    assert enc_c % len(POOL_SIZES) == 0
    c4 = enc_c // len(POOL_SIZES)
    c4p = _round_up(c4, LANE)
    coutp = _round_up(out_c, LANE)
    kp = {}
    for s in POOL_SIZES:
        kp[f"w{s}"] = jnp.pad(params[f"w{s}"],
                              ((0, 0), (0, c4p - c4))).astype(jnp.bfloat16)
        kp[f"b{s}"] = jnp.pad(params[f"b{s}"],
                              ((0, 0), (0, c4p - c4))).astype(jnp.float32)
    # wf rows follow the concat order [b1, b2, b3, b6, x].
    wf = params["wf"]
    for i, name in enumerate(("wf1", "wf2", "wf3", "wf6")):
        blk = wf[i * c4:(i + 1) * c4]
        kp[name] = jnp.pad(blk, ((0, c4p - c4),
                                 (0, coutp - out_c))).astype(jnp.bfloat16)
    kp["wfx"] = jnp.pad(wf[4 * c4:],
                        ((0, 0), (0, coutp - out_c))).astype(jnp.bfloat16)
    kp["bf"] = jnp.pad(params["bf"],
                       ((0, 0), (0, coutp - out_c))).astype(jnp.float32)
    return kp


# ----------------------------------------------------------------------------
# Pure-JAX reference: the ORIGINAL (un-reassociated) concat formulation in f32,
# using the same bf16-stored weights/geometry, so the check validates the
# kernel's algebraic restructuring and tiling rather than bf16 quantization.
# ----------------------------------------------------------------------------
def psp_decoder_reference(x_nchw, kparams, geom, out_channels):
    N, C, H, W = x_nchw.shape
    HW = H * W
    P = geom["p"].astype(jnp.float32)            # (R_PAD, hw_pad)
    U = geom["u"].astype(jnp.float32)            # (hw_pad, R_PAD)
    hw_pad = U.shape[0]

    x = jnp.transpose(x_nchw, (0, 2, 3, 1)).reshape(N, HW, C)
    x = x.astype(jnp.bfloat16).astype(jnp.float32)    # same storage rounding
    x = jnp.pad(x, ((0, 0), (0, hw_pad - HW), (0, 0)))

    pooled = jnp.einsum("rp,npc->nrc", P, x)          # (N, R_PAD, C)
    ups = []
    for s in POOL_SIZES:
        lo, _ = SEGS[s]
        w = kparams[f"w{s}"].astype(jnp.float32)
        b = kparams[f"b{s}"]
        a = jax.nn.relu(pooled[:, lo:lo + s * s] @ w + b)          # (N, ss, C4p)
        ups.append(jnp.einsum("hq,nqc->nhc", U[:, lo:lo + s * s], a))
    cat = jnp.concatenate(ups + [x], axis=-1)
    wf_full = jnp.concatenate(
        [kparams["wf1"], kparams["wf2"], kparams["wf3"], kparams["wf6"],
         kparams["wfx"]], axis=0).astype(jnp.float32)
    y = jax.nn.relu(cat @ wf_full + kparams["bf"])
    y = y[:, :HW, :out_channels].reshape(N, H, W, out_channels)
    return jnp.transpose(y, (0, 3, 1, 2))


if __name__ == "__main__":
    # Small demo shapes: batch=2, encoder_channel=64 (C/4=16), H=W=32
    # (HW=1024 -> two 512-row tiles in the fallback path), out_channels=32
    # (padded to 128 lanes).
    N, C, H, W = 2, 64, 32, 32
    OUT_C = 32
    TILE_HW = 512

    key = jax.random.PRNGKey(0)
    k_params, k_x = jax.random.split(key)
    params = init_params(k_params, C, OUT_C)
    kparams = prepare_kernel_params(params, C, OUT_C)
    x = jax.random.normal(k_x, (N, C, H, W), jnp.float32)   # PyTorch NCHW input

    _, hw_pad = _tile_and_pad(H * W, TILE_HW)
    geom = build_geometry(H, W, hw_pad)

    ref = jax.block_until_ready(psp_decoder_reference(x, kparams, geom, OUT_C))

    # Fused single-pass path (auto-selected at these shapes).
    out_fused = jax.block_until_ready(
        psp_decoder_block(x, kparams, geom, out_channels=OUT_C,
                          tile_hw=TILE_HW))
    assert out_fused.shape == (N, OUT_C, H, W), out_fused.shape
    np.testing.assert_allclose(np.asarray(out_fused), np.asarray(ref),
                               rtol=2e-2, atol=2e-2)

    # Tiled two-pass fallback (exercised explicitly so both paths are tested).
    out_tiled = jax.block_until_ready(
        psp_decoder_block(x, kparams, geom, out_channels=OUT_C,
                          tile_hw=TILE_HW, force_two_pass=True))
    assert out_tiled.shape == (N, OUT_C, H, W), out_tiled.shape
    np.testing.assert_allclose(np.asarray(out_tiled), np.asarray(ref),
                               rtol=2e-2, atol=2e-2)

    print("KERNEL_OK")
</pallas_src>

<mosaic_0001>
module attributes {stable_mosaic.version = 11 : i64} {
  func.func @_fused_kernel(%arg0: i32, %arg1: memref<1x1024x64xbf16, #tpu.memory_space<vmem>>, %arg2: memref<72x1024xbf16, #tpu.memory_space<vmem>>, %arg3: memref<1024x72xbf16, #tpu.memory_space<vmem>>, %arg4: memref<64x128xbf16, #tpu.memory_space<vmem>>, %arg5: memref<1x128xf32, #tpu.memory_space<vmem>>, %arg6: memref<64x128xbf16, #tpu.memory_space<vmem>>, %arg7: memref<1x128xf32, #tpu.memory_space<vmem>>, %arg8: memref<64x128xbf16, #tpu.memory_space<vmem>>, %arg9: memref<1x128xf32, #tpu.memory_space<vmem>>, %arg10: memref<64x128xbf16, #tpu.memory_space<vmem>>, %arg11: memref<1x128xf32, #tpu.memory_space<vmem>>, %arg12: memref<128x128xbf16, #tpu.memory_space<vmem>>, %arg13: memref<128x128xbf16, #tpu.memory_space<vmem>>, %arg14: memref<128x128xbf16, #tpu.memory_space<vmem>>, %arg15: memref<128x128xbf16, #tpu.memory_space<vmem>>, %arg16: memref<64x128xbf16, #tpu.memory_space<vmem>>, %arg17: memref<1x128xf32, #tpu.memory_space<vmem>>, %arg18: memref<1x1024x128xf32, #tpu.memory_space<vmem>>) attributes {dimension_semantics = [#tpu.dimension_semantics<parallel>], iteration_bounds = array<i64: 2>, scalar_prefetch = 0 : i64, scratch_operands = 0 : i64, tpu.core_type = #tpu.core_type<tc>, window_params = [{transform_indices = @transform_0, window_bounds = array<i64: 1, 1024, 64>}, {pipeline_mode = #tpu.pipeline_mode<synchronous>, transform_indices = @transform_1, window_bounds = array<i64: 72, 1024>}, {pipeline_mode = #tpu.pipeline_mode<synchronous>, transform_indices = @transform_2, window_bounds = array<i64: 1024, 72>}, {pipeline_mode = #tpu.pipeline_mode<synchronous>, transform_indices = @transform_3, window_bounds = array<i64: 64, 128>}, {pipeline_mode = #tpu.pipeline_mode<synchronous>, transform_indices = @transform_4, window_bounds = array<i64: 1, 128>}, {pipeline_mode = #tpu.pipeline_mode<synchronous>, transform_indices = @transform_5, window_bounds = array<i64: 64, 128>}, {pipeline_mode = #tpu.pipeline_mode<synchronous>, transform_indices = @transform_6, window_bounds = array<i64: 1, 128>}, {pipeline_mode = #tpu.pipeline_mode<synchronous>, transform_indices = @transform_7, window_bounds = array<i64: 64, 128>}, {pipeline_mode = #tpu.pipeline_mode<synchronous>, transform_indices = @transform_8, window_bounds = array<i64: 1, 128>}, {pipeline_mode = #tpu.pipeline_mode<synchronous>, transform_indices = @transform_9, window_bounds = array<i64: 64, 128>}, {pipeline_mode = #tpu.pipeline_mode<synchronous>, transform_indices = @transform_10, window_bounds = array<i64: 1, 128>}, {pipeline_mode = #tpu.pipeline_mode<synchronous>, transform_indices = @transform_11, window_bounds = array<i64: 128, 128>}, {pipeline_mode = #tpu.pipeline_mode<synchronous>, transform_indices = @transform_12, window_bounds = array<i64: 128, 128>}, {pipeline_mode = #tpu.pipeline_mode<synchronous>, transform_indices = @transform_13, window_bounds = array<i64: 128, 128>}, {pipeline_mode = #tpu.pipeline_mode<synchronous>, transform_indices = @transform_14, window_bounds = array<i64: 128, 128>}, {pipeline_mode = #tpu.pipeline_mode<synchronous>, transform_indices = @transform_15, window_bounds = array<i64: 64, 128>}, {pipeline_mode = #tpu.pipeline_mode<synchronous>, transform_indices = @transform_16, window_bounds = array<i64: 1, 128>}, {transform_indices = @transform_17, window_bounds = array<i64: 1, 1024, 128>}]} {
    %c0 = arith.constant 0 : index
    %c0_0 = arith.constant 0 : index
    %c0_1 = arith.constant 0 : index
    %0 = vector.load %arg1[%c0, %c0_0, %c0_1] : memref<1x1024x64xbf16, #tpu.memory_space<vmem>>, vector<1x1024x64xbf16>
    %1 = vector.shape_cast %0 : vector<1x1024x64xbf16> to vector<1024x64xbf16>
    %c0_2 = arith.constant 0 : index
    %c0_3 = arith.constant 0 : index
    %2 = vector.load %arg2[%c0_2, %c0_3] : memref<72x1024xbf16, #tpu.memory_space<vmem>>, vector<72x1024xbf16>
    %cst = arith.constant dense<0.000000e+00> : vector<72x64xf32>
    %3 = tpu.matmul %2, %1, %cst {dimension_numbers = #tpu.dot_dimension_numbers<[1], [0], [0], [1], [0, 0, 1, 1], [], []>} : vector<72x1024xbf16>, vector<1024x64xbf16>, vector<72x64xf32> -> vector<72x64xf32>
    %4 = vector.extract_strided_slice %3 {offsets = [0, 0], sizes = [8, 64], strides = [1, 1]} : vector<72x64xf32> to vector<8x64xf32>
    %5 = arith.truncf %4 : vector<8x64xf32> to vector<8x64xbf16>
    %c0_4 = arith.constant 0 : index
    %c0_5 = arith.constant 0 : index
    %6 = vector.load %arg4[%c0_4, %c0_5] : memref<64x128xbf16, #tpu.memory_space<vmem>>, vector<64x128xbf16>
    %cst_6 = arith.constant dense<0.000000e+00> : vector<8x128xf32>
    %7 = tpu.matmul %5, %6, %cst_6 {dimension_numbers = #tpu.dot_dimension_numbers<[1], [0], [0], [1], [0, 0, 1, 1], [], []>} : vector<8x64xbf16>, vector<64x128xbf16>, vector<8x128xf32> -> vector<8x128xf32>
    %c0_7 = arith.constant 0 : index
    %c0_8 = arith.constant 0 : index
    %8 = vector.load %arg5[%c0_7, %c0_8] : memref<1x128xf32, #tpu.memory_space<vmem>>, vector<1x128xf32>
    %9 = vector.broadcast %8 : vector<1x128xf32> to vector<8x128xf32>
    %10 = arith.addf %7, %9 : vector<8x128xf32>
    %cst_9 = arith.constant 0.000000e+00 : f32
    %11 = vector.broadcast %cst_9 : f32 to vector<8x128xf32>
    %12 = arith.maximumf %10, %11 : vector<8x128xf32>
    %13 = arith.truncf %12 : vector<8x128xf32> to vector<8x128xbf16>
    %c0_10 = arith.constant 0 : index
    %c0_11 = arith.constant 0 : index
    %14 = vector.load %arg12[%c0_10, %c0_11] : memref<128x128xbf16, #tpu.memory_space<vmem>>, vector<128x128xbf16>
    %cst_12 = arith.constant dense<0.000000e+00> : vector<8x128xf32>
    %15 = tpu.matmul %13, %14, %cst_12 {dimension_numbers = #tpu.dot_dimension_numbers<[1], [0], [0], [1], [0, 0, 1, 1], [], []>} : vector<8x128xbf16>, vector<128x128xbf16>, vector<8x128xf32> -> vector<8x128xf32>
    %16 = vector.extract_strided_slice %3 {offsets = [8, 0], sizes = [8, 64], strides = [1, 1]} : vector<72x64xf32> to vector<8x64xf32>
    %17 = arith.truncf %16 : vector<8x64xf32> to vector<8x64xbf16>
    %c0_13 = arith.constant 0 : index
    %c0_14 = arith.constant 0 : index
    %18 = vector.load %arg6[%c0_13, %c0_14] : memref<64x128xbf16, #tpu.memory_space<vmem>>, vector<64x128xbf16>
    %cst_15 = arith.constant dense<0.000000e+00> : vector<8x128xf32>
    %19 = tpu.matmul %17, %18, %cst_15 {dimension_numbers = #tpu.dot_dimension_numbers<[1], [0], [0], [1], [0, 0, 1, 1], [], []>} : vector<8x64xbf16>, vector<64x128xbf16>, vector<8x128xf32> -> vector<8x128xf32>
    %c0_16 = arith.constant 0 : index
    %c0_17 = arith.constant 0 : index
    %20 = vector.load %arg7[%c0_16, %c0_17] : memref<1x128xf32, #tpu.memory_space<vmem>>, vector<1x128xf32>
    %21 = vector.broadcast %20 : vector<1x128xf32> to vector<8x128xf32>
    %22 = arith.addf %19, %21 : vector<8x128xf32>
    %cst_18 = arith.constant 0.000000e+00 : f32
    %23 = vector.broadcast %cst_18 : f32 to vector<8x128xf32>
    %24 = arith.maximumf %22, %23 : vector<8x128xf32>
    %25 = arith.truncf %24 : vector<8x128xf32> to vector<8x128xbf16>
    %c0_19 = arith.constant 0 : index
    %c0_20 = arith.constant 0 : index
    %26 = vector.load %arg13[%c0_19, %c0_20] : memref<128x128xbf16, #tpu.memory_space<vmem>>, vector<128x128xbf16>
    %cst_21 = arith.constant dense<0.000000e+00> : vector<8x128xf32>
    %27 = tpu.matmul %25, %26, %cst_21 {dimension_numbers = #tpu.dot_dimension_numbers<[1], [0], [0], [1], [0, 0, 1, 1], [], []>} : vector<8x128xbf16>, vector<128x128xbf16>, vector<8x128xf32> -> vector<8x128xf32>
    %28 = vector.extract_strided_slice %3 {offsets = [16, 0], sizes = [16, 64], strides = [1, 1]} : vector<72x64xf32> to vector<16x64xf32>
    %29 = arith.truncf %28 : vector<16x64xf32> to vector<16x64xbf16>
    %c0_22 = arith.constant 0 : index
    %c0_23 = arith.constant 0 : index
    %30 = vector.load %arg8[%c0_22, %c0_23] : memref<64x128xbf16, #tpu.memory_space<vmem>>, vector<64x128xbf16>
    %cst_24 = arith.constant dense<0.000000e+00> : vector<16x128xf32>
    %31 = tpu.matmul %29, %30, %cst_24 {dimension_numbers = #tpu.dot_dimension_numbers<[1], [0], [0], [1], [0, 0, 1, 1], [], []>} : vector<16x64xbf16>, vector<64x128xbf16>, vector<16x128xf32> -> vector<16x128xf32>
    %c0_25 = arith.constant 0 : index
    %c0_26 = arith.constant 0 : index
    %32 = vector.load %arg9[%c0_25, %c0_26] : memref<1x128xf32, #tpu.memory_space<vmem>>, vector<1x128xf32>
    %33 = vector.broadcast %32 : vector<1x128xf32> to vector<16x128xf32>
    %34 = arith.addf %31, %33 : vector<16x128xf32>
    %cst_27 = arith.constant 0.000000e+00 : f32
    %35 = vector.broadcast %cst_27 : f32 to vector<16x128xf32>
    %36 = arith.maximumf %34, %35 : vector<16x128xf32>
    %37 = arith.truncf %36 : vector<16x128xf32> to vector<16x128xbf16>
    %c0_28 = arith.constant 0 : index
    %c0_29 = arith.constant 0 : index
    %38 = vector.load %arg14[%c0_28, %c0_29] : memref<128x128xbf16, #tpu.memory_space<vmem>>, vector<128x128xbf16>
    %cst_30 = arith.constant dense<0.000000e+00> : vector<16x128xf32>
    %39 = tpu.matmul %37, %38, %cst_30 {dimension_numbers = #tpu.dot_dimension_numbers<[1], [0], [0], [1], [0, 0, 1, 1], [], []>} : vector<16x128xbf16>, vector<128x128xbf16>, vector<16x128xf32> -> vector<16x128xf32>
    %40 = vector.extract_strided_slice %3 {offsets = [32, 0], sizes = [40, 64], strides = [1, 1]} : vector<72x64xf32> to vector<40x64xf32>
    %41 = arith.truncf %40 : vector<40x64xf32> to vector<40x64xbf16>
    %c0_31 = arith.constant 0 : index
    %c0_32 = arith.constant 0 : index
    %42 = vector.load %arg10[%c0_31, %c0_32] : memref<64x128xbf16, #tpu.memory_space<vmem>>, vector<64x128xbf16>
    %cst_33 = arith.constant dense<0.000000e+00> : vector<40x128xf32>
    %43 = tpu.matmul %41, %42, %cst_33 {dimension_numbers = #tpu.dot_dimension_numbers<[1], [0], [0], [1], [0, 0, 1, 1], [], []>} : vector<40x64xbf16>, vector<64x128xbf16>, vector<40x128xf32> -> vector<40x128xf32>
    %c0_34 = arith.constant 0 : index
    %c0_35 = arith.constant 0 : index
    %44 = vector.load %arg11[%c0_34, %c0_35] : memref<1x128xf32, #tpu.memory_space<vmem>>, vector<1x128xf32>
    %45 = vector.broadcast %44 : vector<1x128xf32> to vector<40x128xf32>
    %46 = arith.addf %43, %45 : vector<40x128xf32>
    %cst_36 = arith.constant 0.000000e+00 : f32
    %47 = vector.broadcast %cst_36 : f32 to vector<40x128xf32>
    %48 = arith.maximumf %46, %47 : vector<40x128xf32>
    %49 = arith.truncf %48 : vector<40x128xf32> to vector<40x128xbf16>
    %c0_37 = arith.constant 0 : index
    %c0_38 = arith.constant 0 : index
    %50 = vector.load %arg15[%c0_37, %c0_38] : memref<128x128xbf16, #tpu.memory_space<vmem>>, vector<128x128xbf16>
    %cst_39 = arith.constant dense<0.000000e+00> : vector<40x128xf32>
    %51 = tpu.matmul %49, %50, %cst_39 {dimension_numbers = #tpu.dot_dimension_numbers<[1], [0], [0], [1], [0, 0, 1, 1], [], []>} : vector<40x128xbf16>, vector<128x128xbf16>, vector<40x128xf32> -> vector<40x128xf32>
    %52 = tpu.concatenate %15, %27, %39, %51 in 0 : vector<8x128xf32>, vector<8x128xf32>, vector<16x128xf32>, vector<40x128xf32> -> vector<72x128xf32>
    %c0_40 = arith.constant 0 : index
    %c0_41 = arith.constant 0 : index
    %53 = vector.load %arg16[%c0_40, %c0_41] : memref<64x128xbf16, #tpu.memory_space<vmem>>, vector<64x128xbf16>
    %cst_42 = arith.constant dense<0.000000e+00> : vector<1024x128xf32>
    %54 = tpu.matmul %1, %53, %cst_42 {dimension_numbers = #tpu.dot_dimension_numbers<[1], [0], [0], [1], [0, 0, 1, 1], [], []>} : vector<1024x64xbf16>, vector<64x128xbf16>, vector<1024x128xf32> -> vector<1024x128xf32>
    %c0_43 = arith.constant 0 : index
    %c0_44 = arith.constant 0 : index
    %55 = vector.load %arg3[%c0_43, %c0_44] : memref<1024x72xbf16, #tpu.memory_space<vmem>>, vector<1024x72xbf16>
    %56 = arith.truncf %52 : vector<72x128xf32> to vector<72x128xbf16>
    %cst_45 = arith.constant dense<0.000000e+00> : vector<1024x128xf32>
    %57 = tpu.matmul %55, %56, %cst_45 {dimension_numbers = #tpu.dot_dimension_numbers<[1], [0], [0], [1], [0, 0, 1, 1], [], []>} : vector<1024x72xbf16>, vector<72x128xbf16>, vector<1024x128xf32> -> vector<1024x128xf32>
    %58 = arith.addf %54, %57 : vector<1024x128xf32>
    %c0_46 = arith.constant 0 : index
    %c0_47 = arith.constant 0 : index
    %59 = vector.load %arg17[%c0_46, %c0_47] : memref<1x128xf32, #tpu.memory_space<vmem>>, vector<1x128xf32>
    %60 = vector.broadcast %59 : vector<1x128xf32> to vector<1024x128xf32>
    %61 = arith.addf %58, %60 : vector<1024x128xf32>
    %cst_48 = arith.constant 0.000000e+00 : f32
    %62 = vector.broadcast %cst_48 : f32 to vector<1024x128xf32>
    %63 = arith.maximumf %61, %62 : vector<1024x128xf32>
    %c0_49 = arith.constant 0 : index
    %c0_50 = arith.constant 0 : index
    %c0_51 = arith.constant 0 : index
    %64 = vector.load %arg18[%c0_49, %c0_50, %c0_51] : memref<1x1024x128xf32, #tpu.memory_space<vmem>>, vector<1x1024x128xf32>
    %65 = vector.shape_cast %64 : vector<1x1024x128xf32> to vector<1024x128xf32>
    %66 = vector.shape_cast %63 : vector<1024x128xf32> to vector<1x1024x128xf32>
    tpu.vector_store %arg18[%c0_49, %c0_50, %c0_51], %66 {strides = array<i32>} : memref<1x1024x128xf32, #tpu.memory_space<vmem>>, vector<1x1024x128xf32>,
    return
  }
  func.func @transform_0(%arg0: i32) -> (i32, i32, i32) {
    %c0_i32 = arith.constant 0 : i32
    %c0_i32_0 = arith.constant 0 : i32
    %c0_i32_1 = arith.constant 0 : i32
    return %arg0, %c0_i32, %c0_i32_0 : i32, i32, i32
  }
  func.func @transform_1(%arg0: i32) -> (i32, i32) {
    %c0_i32 = arith.constant 0 : i32
    %c0_i32_0 = arith.constant 0 : i32
    %c0_i32_1 = arith.constant 0 : i32
    return %c0_i32, %c0_i32_0 : i32, i32
  }
  func.func @transform_2(%arg0: i32) -> (i32, i32) {
    %c0_i32 = arith.constant 0 : i32
    %c0_i32_0 = arith.constant 0 : i32
    %c0_i32_1 = arith.constant 0 : i32
    return %c0_i32, %c0_i32_0 : i32, i32
  }
  func.func @transform_3(%arg0: i32) -> (i32, i32) {
    %c0_i32 = arith.constant 0 : i32
    %c0_i32_0 = arith.constant 0 : i32
    %c0_i32_1 = arith.constant 0 : i32
    return %c0_i32, %c0_i32_0 : i32, i32
  }
  func.func @transform_4(%arg0: i32) -> (i32, i32) {
    %c0_i32 = arith.constant 0 : i32
    %c0_i32_0 = arith.constant 0 : i32
    %c0_i32_1 = arith.constant 0 : i32
    return %c0_i32, %c0_i32_0 : i32, i32
  }
  func.func @transform_5(%arg0: i32) -> (i32, i32) {
    %c0_i32 = arith.constant 0 : i32
    %c0_i32_0 = arith.constant 0 : i32
    %c0_i32_1 = arith.constant 0 : i32
    return %c0_i32, %c0_i32_0 : i32, i32
  }
  func.func @transform_6(%arg0: i32) -> (i32, i32) {
    %c0_i32 = arith.constant 0 : i32
    %c0_i32_0 = arith.constant 0 : i32
    %c0_i32_1 = arith.constant 0 : i32
    return %c0_i32, %c0_i32_0 : i32, i32
  }
  func.func @transform_7(%arg0: i32) -> (i32, i32) {
    %c0_i32 = arith.constant 0 : i32
    %c0_i32_0 = arith.constant 0 : i32
    %c0_i32_1 = arith.constant 0 : i32
    return %c0_i32, %c0_i32_0 : i32, i32
  }
  func.func @transform_8(%arg0: i32) -> (i32, i32) {
    %c0_i32 = arith.constant 0 : i32
    %c0_i32_0 = arith.constant 0 : i32
    %c0_i32_1 = arith.constant 0 : i32
    return %c0_i32, %c0_i32_0 : i32, i32
  }
  func.func @transform_9(%arg0: i32) -> (i32, i32) {
    %c0_i32 = arith.constant 0 : i32
    %c0_i32_0 = arith.constant 0 : i32
    %c0_i32_1 = arith.constant 0 : i32
    return %c0_i32, %c0_i32_0 : i32, i32
  }
  func.func @transform_10(%arg0: i32) -> (i32, i32) {
    %c0_i32 = arith.constant 0 : i32
    %c0_i32_0 = arith.constant 0 : i32
    %c0_i32_1 = arith.constant 0 : i32
    return %c0_i32, %c0_i32_0 : i32, i32
  }
  func.func @transform_11(%arg0: i32) -> (i32, i32) {
    %c0_i32 = arith.constant 0 : i32
    %c0_i32_0 = arith.constant 0 : i32
    %c0_i32_1 = arith.constant 0 : i32
    return %c0_i32, %c0_i32_0 : i32, i32
  }
  func.func @transform_12(%arg0: i32) -> (i32, i32) {
    %c0_i32 = arith.constant 0 : i32
    %c0_i32_0 = arith.constant 0 : i32
    %c0_i32_1 = arith.constant 0 : i32
    return %c0_i32, %c0_i32_0 : i32, i32
  }
  func.func @transform_13(%arg0: i32) -> (i32, i32) {
    %c0_i32 = arith.constant 0 : i32
    %c0_i32_0 = arith.constant 0 : i32
    %c0_i32_1 = arith.constant 0 : i32
    return %c0_i32, %c0_i32_0 : i32, i32
  }
  func.func @transform_14(%arg0: i32) -> (i32, i32) {
    %c0_i32 = arith.constant 0 : i32
    %c0_i32_0 = arith.constant 0 : i32
    %c0_i32_1 = arith.constant 0 : i32
    return %c0_i32, %c0_i32_0 : i32, i32
  }
  func.func @transform_15(%arg0: i32) -> (i32, i32) {
    %c0_i32 = arith.constant 0 : i32
    %c0_i32_0 = arith.constant 0 : i32
    %c0_i32_1 = arith.constant 0 : i32
    return %c0_i32, %c0_i32_0 : i32, i32
  }
  func.func @transform_16(%arg0: i32) -> (i32, i32) {
    %c0_i32 = arith.constant 0 : i32
    %c0_i32_0 = arith.constant 0 : i32
    %c0_i32_1 = arith.constant 0 : i32
    return %c0_i32, %c0_i32_0 : i32, i32
  }
  func.func @transform_17(%arg0: i32) -> (i32, i32, i32) {
    %c0_i32 = arith.constant 0 : i32
    %c0_i32_0 = arith.constant 0 : i32
    %c0_i32_1 = arith.constant 0 : i32
    return %arg0, %c0_i32, %c0_i32_0 : i32, i32, i32
  }
}

</mosaic_0001>

<bundles_post_ra>
// kernel: psp_decoder_block.1
= control target key start
LH: loop header
LB: loop body
LE: loop exit
PB: predicated region body
PF: predicated region fallthrough
CT: control target
= control target key end

     0   :  { %s5479_s24 = smov 0   ;;  %s6737_s0 = inlined_call_operand.vmem [shape: bf16[2,1024,64], index: 0, kind: input, shape index: {}]   ;;  %s6738_s1 = inlined_call_operand.vmem [shape: bf16[72,1024], index: 1, kind: input, shape index: {}]   ;;  %s6739_s2 = inlined_call_operand.vmem [shape: bf16[1024,72], index: 2, kind: input, shape index: {}]   ;;  %s6740_s3 = inlined_call_operand.vmem [shape: bf16[64,128], index: 3, kind: input, shape index: {}]   ;;  %s6741_s4 = inlined_call_operand.vmem [shape: f32[1,128], index: 4, kind: input, shape index: {}]   ;;  %s6742_s5 = inlined_call_operand.vmem [shape: bf16[64,128], index: 5, kind: input, shape index: {}]   ;;  %s6743_s6 = inlined_call_operand.vmem [shape: f32[1,128], index: 6, kind: input, shape index: {}]   ;;  %s6744_s7 = inlined_call_operand.vmem [shape: bf16[64,128], index: 7, kind: input, shape index: {}]   ;;  %s6745_s8 = inlined_call_operand.vmem [shape: f32[1,128], index: 8, kind: input, shape index: {}]   ;;  %s6746_s9 = inlined_call_operand.vmem [shape: bf16[64,128], index: 9, kind: input, shape index: {}]   ;;  %s6747_s10 = inlined_call_operand.vmem [shape: f32[1,128], index: 10, kind: input, shape index: {}]   ;;  %s6748_s11 = inlined_call_operand.vmem [shape: bf16[128,128], index: 11, kind: input, shape index: {}]   ;;  %s6749_s12 = inlined_call_operand.vmem [shape: bf16[128,128], index: 12, kind: input, shape index: {}]   ;;  %s6750_s13 = inlined_call_operand.vmem [shape: bf16[128,128], index: 13, kind: input, shape index: {}]   ;;  %s6751_s14 = inlined_call_operand.vmem [shape: bf16[128,128], index: 14, kind: input, shape index: {}]   ;;  %s6752_s15 = inlined_call_operand.vmem [shape: bf16[64,128], index: 15, kind: input, shape index: {}]   ;;  %s6753_s16 = inlined_call_operand.vmem [shape: f32[1,128], index: 16, kind: input, shape index: {}]   ;;  %s6754_s17 = inlined_call_operand.vmem [shape: f32[2,1024,128], index: 17, kind: output, shape index: {}]  }
   0x1   :  { %6757 = sst [smem:[#allocation3_spill]] %s6737_s0 }
   0x2   :  { %6758 = sst [smem:[#allocation4_spill]] %s6738_s1 }
   0x3 LB: > { %6759 = sst [smem:[#allocation2_spill]] %s5387_s24  ;;  %s4091_s25 = sadd.s32 4294967295, %s5387_s24   ;;  %s5387_s24 = sphi %s5479_s24, %s27_s24  }
   0x4   : > { %p4095_p0 = scmp.ge.s32.totalorder %s5387_s24, 1  ;;  %p487_p1 = scmp.lt.s32.totalorder %s5387_s24, 3 }
   0x6   : > { %p488_p2 = pnand %p4095_p0, %p487_p1 }
   0x7   : > { %p539_p3 = scmp.lt.s32.totalorder (!%p488_p2), %s4091_s25, 1  ;;  %s6760_s29 = sld [smem:[#allocation3_spill]] (!%p488_p2) }
   0x8   : > { %491 = sbr.rel (%p488_p2) target bundleno = 1309 (0x51d), region = 88  ;;  %s6761_s19 = sld [smem:[#allocation4_spill]] (!%p488_p2) }
   0xd   : > { %s6764_s25 = smov (!%p539_p3, %s4091_s25), 1  ;;  %vm1587_vm0 = vcmask 523264   ;;  %vm2770_vm1 = vcmask 1043456   ;;  %vm2577_vm2 = vcmask 588800  }
   0xe   : > { %s5084_s26 = sshll.u32 %s6764_s25, 9  ;;  %v4102_v28 = vld [vmem:[%s6761_s19] sm:$0xf]  ;;  %v5150_v30 = vld [vmem:[%s6761_s19 + $0x4] sm:$0xf] }
   0xf   : > { %s5493_s0 = scalar_lea.vmem %s6760_s29, %s5084_s26  ;;  %v5154_v29 = vld [vmem:[%s6761_s19 + $0x1c] sm:$0xf0]  ;;  %v4104_v35 = vld [vmem:[%s6761_s19 + $0x20] sm:$0xf0]  ;;  %v4110_v36 = vld [vmem:[%s6761_s19 + $0x8] sm:$0xf] }
  0x10   : > { %v5093_v0 = vld [vmem:[%s5493_s0 + $0x38] sm:$0xff]  ;;  %v5092_v4 = vld [vmem:[%s5493_s0 + $0x30] sm:$0xff]  ;;  %v5091_v8 = vld [vmem:[%s5493_s0 + $0x28] sm:$0xff]  ;;  %v4103_v42 = vor.u32 %v5154_v29, %v4102_v28  ;;  %v4107_v43 = vor.u32 %v5150_v30, %v4104_v35  ;;  %s5085_s26 = sshll.u32 %s6764_s25, 10 }
  0x11   : > { %v5101_v1 = vld [vmem:[%s5493_s0 + $0x78] sm:$0xff]  ;;  %1286 = vmatpush.bf16.msra.mxu0 %v5093_v0  ;;  %v5100_v5 = vld [vmem:[%s5493_s0 + $0x70] sm:$0xff]  ;;  %v5099_v9 = vld [vmem:[%s5493_s0 + $0x68] sm:$0xff]  ;;  %s6131_s30 = scalar_lea.vmem %s6754_s17, %s5085_s26 }
  0x12   : > { %v5109_v2 = vld [vmem:[%s5493_s0 + $0xb8] sm:$0xff]  ;;  %1319 = vmatpush.bf16.msra.mxu1 %v5101_v1  ;;  %v5108_v6 = vld [vmem:[%s5493_s0 + $0xb0] sm:$0xff]  ;;  %v5107_v10 = vld [vmem:[%s5493_s0 + $0xa8] sm:$0xff] }
  0x13   : > { %v5117_v3 = vld [vmem:[%s5493_s0 + $0xf8] sm:$0xff]  ;;  %1352 = vmatpush.bf16.msra.mxu2 %v5109_v2  ;;  %v5116_v7 = vld [vmem:[%s5493_s0 + $0xf0] sm:$0xff]  ;;  %v5115_v11 = vld [vmem:[%s5493_s0 + $0xe8] sm:$0xff] }
  0x14   : > { %1385 = vmatpush.bf16.msra.mxu3 %v5117_v3  ;;  %v5090_v12 = vld [vmem:[%s5493_s0 + $0x20] sm:$0xff]  ;;  %v5089_v16 = vld [vmem:[%s5493_s0 + $0x18] sm:$0xff]  ;;  %v5088_v20 = vld [vmem:[%s5493_s0 + $0x10] sm:$0xff] }
  0x15   : > { %1287 = vmatpush.bf16.msra.mxu0 %v5092_v4  ;;  %v5098_v13 = vld [vmem:[%s5493_s0 + $0x60] sm:$0xff]  ;;  %v5097_v17 = vld [vmem:[%s5493_s0 + $0x58] sm:$0xff]  ;;  %v5096_v21 = vld [vmem:[%s5493_s0 + $0x50] sm:$0xff] }
  0x16   : > { %1320 = vmatpush.bf16.msra.mxu1 %v5100_v5  ;;  %v5106_v14 = vld [vmem:[%s5493_s0 + $0xa0] sm:$0xff]  ;;  %v5105_v18 = vld [vmem:[%s5493_s0 + $0x98] sm:$0xff]  ;;  %v5104_v22 = vld [vmem:[%s5493_s0 + $0x90] sm:$0xff] }
  0x17   : > { %1353 = vmatpush.bf16.msra.mxu2 %v5108_v6  ;;  %v5114_v15 = vld [vmem:[%s5493_s0 + $0xe0] sm:$0xff]  ;;  %v5113_v19 = vld [vmem:[%s5493_s0 + $0xd8] sm:$0xff]  ;;  %v5112_v23 = vld [vmem:[%s5493_s0 + $0xd0] sm:$0xff] }
  0x18   : > { %1386 = vmatpush.bf16.msra.mxu3 %v5116_v7  ;;  %v5087_v24 = vld [vmem:[%s5493_s0 + $0x8] sm:$0xff]  ;;  %v5086_v31 = vld [vmem:[%s5493_s0] sm:$0xff]  ;;  %v5141_v40 = vld [vmem:[%s5493_s0 + $0x1b8] sm:$0xff] }
  0x19   : > { %1288 = vmatpush.bf16.msra.mxu0 %v5091_v8  ;;  %v5095_v25 = vld [vmem:[%s5493_s0 + $0x48] sm:$0xff]  ;;  %v5094_v32 = vld [vmem:[%s5493_s0 + $0x40] sm:$0xff]  ;;  %v5125_v41 = vld [vmem:[%s5493_s0 + $0x138] sm:$0xff] }
  0x1a   : > { %1321 = vmatpush.bf16.msra.mxu1 %v5099_v9  ;;  %v5103_v26 = vld [vmem:[%s5493_s0 + $0x88] sm:$0xff]  ;;  %v5102_v33 = vld [vmem:[%s5493_s0 + $0x80] sm:$0xff]  ;;  %v5149_v46 = vld [vmem:[%s5493_s0 + $0x1f8] sm:$0xff] }
  0x1b   : > { %1354 = vmatpush.bf16.msra.mxu2 %v5107_v10  ;;  %v5111_v27 = vld [vmem:[%s5493_s0 + $0xc8] sm:$0xff]  ;;  %v5110_v34 = vld [vmem:[%s5493_s0 + $0xc0] sm:$0xff]  ;;  %v5133_v47 = vld [vmem:[%s5493_s0 + $0x178] sm:$0xff] }
  0x1c   : > { %1387 = vmatpush.bf16.msra.mxu3 %v5115_v11  ;;  %v5155_v37 = vld [vmem:[%s6761_s19 + $0x24] sm:$0xf0]  ;;  %v5151_v38 = vld [vmem:[%s6761_s19 + $0xc] sm:$0xf]  ;;  %v5140_v48 = vld [vmem:[%s5493_s0 + $0x1b0] sm:$0xff] }
  0x1d   : > { %1289 = vmatpush.bf16.msra.mxu0 %v5090_v12  ;;  %v4112_v39 = vld [vmem:[%s6761_s19 + $0x28] sm:$0xf0]  ;;  %v4111_v44 = vor.u32 %v5155_v37, %v4110_v36  ;;  %v5124_v49 = vld [vmem:[%s5493_s0 + $0x130] sm:$0xff]  ;;  %v4134_v56 = vld [vmem:[%s6761_s19 + $0x40] sm:$0xf] }
  0x1e   : > { %1322 = vmatpush.bf16.msra.mxu1 %v5098_v13  ;;  %v4115_v45 = vor.u32 %v5151_v38, %v4112_v39  ;;  %v5148_v50 = vld [vmem:[%s5493_s0 + $0x1f0] sm:$0xff]  ;;  %v5139_v52 = vld [vmem:[%s5493_s0 + $0x1a8] sm:$0xff]  ;;  %v5138_v57 = vld [vmem:[%s5493_s0 + $0x1a0] sm:$0xff] }
  0x1f   : > { %1355 = vmatpush.bf16.msra.mxu2 %v5106_v14  ;;  %v5132_v51 = vld [vmem:[%s5493_s0 + $0x170] sm:$0xff]  ;;  %v5123_v53 = vld [vmem:[%s5493_s0 + $0x128] sm:$0xff]  ;;  %v5122_v58 = vld [vmem:[%s5493_s0 + $0x120] sm:$0xff] }
  0x20   : > { %1388 = vmatpush.bf16.msra.mxu3 %v5114_v15  ;;  %v5147_v54 = vld [vmem:[%s5493_s0 + $0x1e8] sm:$0xff]  ;;  %v5162_v59 = vld [vmem:[%s6761_s19 + $0x5c] sm:$0xf0]  ;;  %v5158_v60 = vld [vmem:[%s6761_s19 + $0x44] sm:$0xf] }
  0x21   : > { %1290 = vmatpush.bf16.msra.mxu0 %v5089_v16  ;;  %v5131_v55 = vld [vmem:[%s5493_s0 + $0x168] sm:$0xff]  ;;  %v4136_v61 = vld [vmem:[%s6761_s19 + $0x60] sm:$0xf0]  ;;  %v5137_v4 = vld [vmem:[%s5493_s0 + $0x198] sm:$0xff]  ;;  %v4135_v6 = vor.u32 %v5162_v59, %v4134_v56 }
  0x22   : > { %1323 = vmatpush.bf16.msra.mxu1 %v5097_v17  ;;  %v4142_v62 = vld [vmem:[%s6761_s19 + $0x48] sm:$0xf]  ;;  %v5159_v0 = vld [vmem:[%s6761_s19 + $0x4c] sm:$0xf]  ;;  %v5146_v2 = vld [vmem:[%s5493_s0 + $0x1e0] sm:$0xff]  ;;  %v4139_v7 = vor.u32 %v5158_v60, %v4136_v61 }
  0x23   : > { %1356 = vmatpush.bf16.msra.mxu2 %v5105_v18  ;;  %v5163_v63 = vld [vmem:[%s6761_s19 + $0x64] sm:$0xf0]  ;;  %v4144_v1 = vld [vmem:[%s6761_s19 + $0x68] sm:$0xf0]  ;;  %v5130_v3 = vld [vmem:[%s5493_s0 + $0x160] sm:$0xff] }
  0x24   : > { %1389 = vmatpush.bf16.msra.mxu3 %v5113_v19  ;;  %v5121_v5 = vld [vmem:[%s5493_s0 + $0x118] sm:$0xff]  ;;  %v4143_v8 = vor.u32 %v5163_v63, %v4142_v62  ;;  %v4147_v9 = vor.u32 %v5159_v0, %v4144_v1  ;;  %v5136_v12 = vld [vmem:[%s5493_s0 + $0x190] sm:$0xff]  ;;  %v5135_v16 = vld [vmem:[%s5493_s0 + $0x188] sm:$0xff] }
  0x25   : > { %1291 = vmatpush.bf16.msra.mxu0 %v5088_v20  ;;  %v5145_v10 = vld [vmem:[%s5493_s0 + $0x1d8] sm:$0xff]  ;;  %v5597_v13 = vld [vmem:[%s5493_s0 + $0x110] sm:$0xff]  ;;  %v5604_v17 = vld [vmem:[%s5493_s0 + $0x108] sm:$0xff] }
  0x26   : > { %1324 = vmatpush.bf16.msra.mxu1 %v5096_v21  ;;  %v5129_v11 = vld [vmem:[%s5493_s0 + $0x158] sm:$0xff]  ;;  %v5144_v14 = vld [vmem:[%s5493_s0 + $0x1d0] sm:$0xff]  ;;  %v5143_v18 = vld [vmem:[%s5493_s0 + $0x1c8] sm:$0xff] }
  0x27   : > { %1357 = vmatpush.bf16.msra.mxu2 %v5104_v22  ;;  %v5128_v15 = vld [vmem:[%s5493_s0 + $0x150] sm:$0xff]  ;;  %v4166_v19 = vld [vmem:[%s6761_s19 + $0x80] sm:$0xf]  ;;  %v5166_v21 = vld [vmem:[%s6761_s19 + $0x84] sm:$0xf] }
  0x28   : > { %1390 = vmatpush.bf16.msra.mxu3 %v5112_v23  ;;  %v5170_v20 = vld [vmem:[%s6761_s19 + $0x9c] sm:$0xf0]  ;;  %v4168_v22 = vld [vmem:[%s6761_s19 + $0xa0] sm:$0xf0]  ;;  %v4174_v23 = vld [vmem:[%s6761_s19 + $0x88] sm:$0xf] }
  0x29   : > { %1292 = vmatpush.bf16.msra.mxu0 %v5087_v24  ;;  %v5171_v24 = vld [vmem:[%s6761_s19 + $0xa4] sm:$0xf0]  ;;  %v4171_v28 = vor.u32 %v5166_v21, %v4168_v22  ;;  %v5640_v35 = vld [vmem:[%s5493_s0 + $0x140] sm:$0xff]  ;;  %v5156_v59 = vld [vmem:[%s6761_s19 + $0x2c] sm:$0xf0] }
  0x2a   : > { %1325 = vmatpush.bf16.msra.mxu1 %v5095_v25  ;;  %v5167_v25 = vld [vmem:[%s6761_s19 + $0x8c] sm:$0xf]  ;;  %v4175_v29 = vor.u32 %v5171_v24, %v4174_v23  ;;  %v4198_v36 = vld [vmem:[%s6761_s19 + $0xc0] sm:$0xf]  ;;  %v5174_v38 = vld [vmem:[%s6761_s19 + $0xc4] sm:$0xf] }
  0x2b   : > { %1358 = vmatpush.bf16.msra.mxu2 %v5103_v26  ;;  %v4176_v26 = vld [vmem:[%s6761_s19 + $0xa8] sm:$0xf0]  ;;  %v5178_v37 = vld [vmem:[%s6761_s19 + $0xdc] sm:$0xf0]  ;;  %v4200_v39 = vld [vmem:[%s6761_s19 + $0xe0] sm:$0xf0] }
  0x2c   : > { %1391 = vmatpush.bf16.msra.mxu3 %v5111_v27  ;;  %v4167_v27 = vor.u32 %v5170_v20, %v4166_v19  ;;  %v4179_v30 = vor.u32 %v5167_v25, %v4176_v26  ;;  %v5152_v60 = vld [vmem:[%s6761_s19 + $0x14] sm:$0xf]  ;;  %v4126_v62 = vld [vmem:[%s6761_s19 + $0x18] sm:$0xf]  ;;  %v5153_v0 = vld [vmem:[%s6761_s19 + $0x1c] sm:$0xf] }
  0x2d   : > { %1293 = vmatpush.bf16.msra.mxu0 %v5086_v31  ;;  %v5633_v31 = vld [vmem:[%s5493_s0 + $0x148] sm:$0xff]  ;;  %v4120_v61 = vld [vmem:[%s6761_s19 + $0x30] sm:$0xf0]  ;;  %v5157_v63 = vld [vmem:[%s6761_s19 + $0x34] sm:$0xf0] }
  0x2e   : > { %1326 = vmatpush.bf16.msra.mxu1 %v5094_v32  ;;  %v5134_v32 = vld [vmem:[%s5493_s0 + $0x180] sm:$0xff]  ;;  %v4128_v1 = vld [vmem:[%s6761_s19 + $0x38] sm:$0xf0]  ;;  %v4182_v20 = vld [vmem:[%s6761_s19 + $0x90] sm:$0xf] }
  0x2f   : > { %1359 = vmatpush.bf16.msra.mxu2 %v5102_v33  ;;  %v5118_v33 = vld [vmem:[%s5493_s0 + $0x100] sm:$0xff]  ;;  %v5172_v21 = vld [vmem:[%s6761_s19 + $0xac] sm:$0xf0]  ;;  %v5168_v22 = vld [vmem:[%s6761_s19 + $0x94] sm:$0xf] }
  0x30   : > { %1392 = vmatpush.bf16.msra.mxu3 %v5110_v34  ;;  %1294 = vmatmul.bf16.vlgmr.msra.gmra.mxu0 %v4103_v42  ;;  %v5142_v34 = vld [vmem:[%s5493_s0 + $0x1c0] sm:$0xff]  ;;  %v5175_v42 = vld [vmem:[%s6761_s19 + $0xcc] sm:$0xf]  ;;  %v4184_v23 = vld [vmem:[%s6761_s19 + $0xb0] sm:$0xf0] }
  0x31   : > { %1418 = vmatpush.bf16.msrb.mxu0 %v5125_v41  ;;  %1327 = vmatmul.bf16.vlgmr.msra.gmra.mxu1 %v4107_v43  ;;  %v5179_v41 = vld [vmem:[%s6761_s19 + $0xe4] sm:$0xf0]  ;;  %v4208_v43 = vld [vmem:[%s6761_s19 + $0xe8] sm:$0xf0]  ;;  %v4190_v24 = vld [vmem:[%s6761_s19 + $0x98] sm:$0xf] }
  0x32   : > { %1360 = vmatmul.bf16.vlgmr.msra.gmra.mxu2 %v4111_v44  ;;  %1451 = vmatpush.bf16.msrb.mxu1 %v5133_v47  ;;  %v4199_v44 = vor.u32 %v5178_v37, %v4198_v36  ;;  %v4211_v47 = vor.u32 %v5175_v42, %v4208_v43  ;;  %v5173_v25 = vld [vmem:[%s6761_s19 + $0xb4] sm:$0xf0]  ;;  %v5169_v26 = vld [vmem:[%s6761_s19 + $0x9c] sm:$0xf]  ;;  %v5180_v36 = vld [vmem:[%s6761_s19 + $0xec] sm:$0xf0] }
  0x33   : > { %1484 = vmatpush.bf16.msrb.mxu2 %v5141_v40  ;;  %1393 = vmatmul.bf16.vlgmr.msra.gmra.mxu3 %v4115_v45  ;;  %v4206_v40 = vld [vmem:[%s6761_s19 + $0xc8] sm:$0xf]  ;;  %v4203_v45 = vor.u32 %v5174_v38, %v4200_v39  ;;  %v5176_v37 = vld [vmem:[%s6761_s19 + $0xd4] sm:$0xf]  ;;  %v4222_v39 = vld [vmem:[%s6761_s19 + $0xd8] sm:$0xf] }
  0x34   : > { %1517 = vmatpush.bf16.msrb.mxu3 %v5149_v46  ;;  %v4207_v46 = vor.u32 %v5179_v41, %v4206_v40  ;;  %v4216_v38 = vld [vmem:[%s6761_s19 + $0xf0] sm:$0xf0]  ;;  %v5181_v40 = vld [vmem:[%s6761_s19 + $0xf4] sm:$0xf0]  ;;  %v5177_v41 = vld [vmem:[%s6761_s19 + $0xdc] sm:$0xf] }
  0x35   : > { %1419 = vmatpush.bf16.msrb.mxu0 %v5124_v49  ;;  %v711_v49 = vld [vmem:[%s6761_s19 + $0x108] sm:$0xff]  ;;  %v4224_v42 = vld [vmem:[%s6761_s19 + $0xf8] sm:$0xf0] }
  0x36   : > { %1452 = vmatpush.bf16.msrb.mxu1 %v5132_v51 }
  0x37   : > { %1485 = vmatpush.bf16.msrb.mxu2 %v5140_v48  ;;  %v710_v48 = vld [vmem:[%s6761_s19 + $0x100] sm:$0xff] }
  0x38   : > { %1518 = vmatpush.bf16.msrb.mxu3 %v5148_v50  ;;  %v814_v50 = vunpack.c.l.b16 %v710_v48  ;;  %v815_v51 = vunpack.c.h.b16 %v710_v48  ;;  %v4227_v48 = vor.u32 %v5177_v41, %v4224_v42  ;;  %v5197_v42 = vld [vmem:[%s6742_s5 + $0x18] sm:$0xff] }
  0x39   : > { %1420 = vmatpush.bf16.msrb.mxu0 %v5123_v53  ;;  %v817_v53 = vunpack.c.h.b16 %v711_v49 }
  0x3a   : > { %1453 = vmatpush.bf16.msrb.mxu1 %v5131_v55  ;;  %v855_v55 = vpack.c.b16 %v815_v51, %v815_v51 }
  0x3b   : > { %1486 = vmatpush.bf16.msrb.mxu2 %v5139_v52  ;;  %v816_v52 = vunpack.c.l.b16 %v711_v49 }
  0x3c   : > { %1519 = vmatpush.bf16.msrb.mxu3 %v5147_v54  ;;  %v854_v54 = vpack.c.b16 %v814_v50, %v814_v50 }
  0x3d   : > { %1421 = vmatpush.bf16.msrb.mxu0 %v5122_v58  ;;  %v856_v56 = vpack.c.b16 %v816_v52, %v816_v52  ;;  %v4118_v58 = vld [vmem:[%s6761_s19 + $0x10] sm:$0xf] }
  0x3e   : > { %1454 = vmatpush.bf16.msrb.mxu1 %v5130_v3  ;;  %v4123_v3 = vor.u32 %v5152_v60, %v4120_v61 }
  0x3f   : > { %1487 = vmatpush.bf16.msrb.mxu2 %v5138_v57  ;;  %v857_v57 = vpack.c.b16 %v817_v53, %v817_v53 }
  0x40   : > { %1520 = vmatpush.bf16.msrb.mxu3 %v5146_v2  ;;  %1299 = vmatmul.bf16.gmra.mxu0 %v4135_v6  ;;  %v4119_v2 = vor.u32 %v5156_v59, %v4118_v58  ;;  %v4150_v6 = vld [vmem:[%s6761_s19 + $0x50] sm:$0xf] }
  0x41   : > { %1422 = vmatpush.bf16.msrb.mxu0 %v5121_v5  ;;  %1332 = vmatmul.bf16.gmra.mxu1 %v4139_v7  ;;  %v4131_v5 = vor.u32 %v5153_v0, %v4128_v1  ;;  %v5164_v7 = vld [vmem:[%s6761_s19 + $0x6c] sm:$0xf0] }
  0x42   : > { %1365 = vmatmul.bf16.gmra.mxu2 %v4143_v8  ;;  %1455 = vmatpush.bf16.msrb.mxu1 %v5129_v11  ;;  %v5160_v8 = vld [vmem:[%s6761_s19 + $0x54] sm:$0xf]  ;;  %v5165_v11 = vld [vmem:[%s6761_s19 + $0x74] sm:$0xf0] }
  0x43   : > { %1488 = vmatpush.bf16.msrb.mxu2 %v5137_v4  ;;  %1398 = vmatmul.bf16.gmra.mxu3 %v4147_v9  ;;  %v4127_v4 = vor.u32 %v5157_v63, %v4126_v62  ;;  %v4152_v9 = vld [vmem:[%s6761_s19 + $0x70] sm:$0xf0] }
  0x44   : > { %1521 = vmatpush.bf16.msrb.mxu3 %v5145_v10  ;;  %v4158_v10 = vld [vmem:[%s6761_s19 + $0x58] sm:$0xf]  ;;  %v5184_v58 = vld [vmem:[%s6740_s3 + $0x10] sm:$0xff] }
  0x45   : > { %1423 = vmatpush.bf16.msrb.mxu0 %v5597_v13 }
  0x46   : > { %1456 = vmatpush.bf16.msrb.mxu1 %v5128_v15  ;;  %v4151_v15 = vor.u32 %v5164_v7, %v4150_v6 }
  0x47   : > { %1489 = vmatpush.bf16.msrb.mxu2 %v5136_v12  ;;  %v5161_v12 = vld [vmem:[%s6761_s19 + $0x5c] sm:$0xf] }
  0x48   : > { %1522 = vmatpush.bf16.msrb.mxu3 %v5144_v14  ;;  %v4160_v14 = vld [vmem:[%s6761_s19 + $0x78] sm:$0xf0] }
  0x49   : > { %1424 = vmatpush.bf16.msrb.mxu0 %v5604_v17  ;;  %v4163_v19 = vor.u32 %v5161_v12, %v4160_v14 }
  0x4a   : > { %1457 = vmatpush.bf16.msrb.mxu1 %v5633_v31 }
  0x4b   : > { %1490 = vmatpush.bf16.msrb.mxu2 %v5135_v16  ;;  %v4155_v16 = vor.u32 %v5160_v8, %v4152_v9 }
  0x4c   : > { %1523 = vmatpush.bf16.msrb.mxu3 %v5143_v18  ;;  %v4159_v18 = vor.u32 %v5165_v11, %v4158_v10 }
  0x4d   : > { %1425 = vmatpush.bf16.msrb.mxu0 %v5118_v33  ;;  %v5185_v33 = vld [vmem:[%s6740_s3 + $0x18] sm:$0xff] }
  0x4e   : > { %1458 = vmatpush.bf16.msrb.mxu1 %v5640_v35 }
  0x4f   : > { %1491 = vmatpush.bf16.msrb.mxu2 %v5134_v32 }
  0x50   : > { %1304 = vmatmul.bf16.gmra.mxu0 %v4167_v27  ;;  %1524 = vmatpush.bf16.msrb.mxu3 %v5142_v34  ;;  %v4192_v27 = vld [vmem:[%s6761_s19 + $0xb8] sm:$0xf0]  ;;  %v4214_v34 = vld [vmem:[%s6761_s19 + $0xd0] sm:$0xf] }
  0x51   : > { %1337 = vmatmul.bf16.gmra.mxu1 %v4171_v28  ;;  %v4183_v28 = vor.u32 %v5172_v21, %v4182_v20  ;;  %v4195_v32 = vor.u32 %v5169_v26, %v4192_v27  ;;  %v4215_v43 = vor.u32 %v5180_v36, %v4214_v34  ;;  %v5182_v34 = vld [vmem:[%s6740_s3] sm:$0xff] }
  0x52   : > { %1370 = vmatmul.bf16.gmra.mxu2 %v4175_v29  ;;  %v4187_v29 = vor.u32 %v5168_v22, %v4184_v23 }
  0x53   : > { %1403 = vmatmul.bf16.gmra.mxu3 %v4179_v30  ;;  %v4191_v30 = vor.u32 %v5173_v25, %v4190_v24  ;;  %1595 = vmatpush.bf16.msra.mxu2 %v5185_v33 }
  0x57   : > { %1596 = vmatpush.bf16.msra.mxu2 %v5184_v58 }
  0x60   : > { %1309 = vmatmul.bf16.gmra.mxu0 %v4199_v44  ;;  %v4219_v44 = vor.u32 %v5176_v37, %v4216_v38 }
  0x61   : > { %1342 = vmatmul.bf16.gmra.mxu1 %v4203_v45 }
  0x62   : > { %1375 = vmatmul.bf16.gmra.mxu2 %v4207_v46 }
  0x63   : > { %1408 = vmatmul.bf16.gmra.mxu3 %v4211_v47  ;;  %v4223_v47 = vor.u32 %v5181_v40, %v4222_v39 }
  0x70   : > { %1314 = vmatmul.bf16.gmra.mxu0 %v854_v54 }
  0x71   : > { %1347 = vmatmul.bf16.gmra.mxu1 %v855_v55  ;;  %v712_v55 = vld [vmem:[%s6761_s19 + $0x110] sm:$0xff] }
  0x72   : > { %1380 = vmatmul.bf16.gmra.mxu2 %v856_v56  ;;  %v713_v56 = vld [vmem:[%s6761_s19 + $0x118] sm:$0xff]  ;;  %v818_v59 = vunpack.c.l.b16 %v712_v55  ;;  %v819_v60 = vunpack.c.h.b16 %v712_v55 }
  0x73   : > { %1413 = vmatmul.bf16.gmra.mxu3 %v857_v57  ;;  %v820_v61 = vunpack.c.l.b16 %v713_v56  ;;  %v821_v62 = vunpack.c.h.b16 %v713_v56 }
  0x74   : > { %v858_v1 = vpack.c.b16 %v818_v59, %v818_v59  ;;  %v5194_v59 = vld [vmem:[%s6742_s5] sm:$0xff] }
  0x75   : > { %v861_v6 = vpack.c.b16 %v821_v62, %v821_v62  ;;  %v5207_v62 = vld [vmem:[%s6744_s7 + $0x8] sm:$0xff] }
  0x80   : > { %1426 = vmatmul.bf16.vlgmr.msrb.gmra.mxu0 %v4119_v2  ;;  %v859_v2 = vpack.c.b16 %v819_v60, %v819_v60  ;;  %v5208_v60 = vld [vmem:[%s6744_s7 + $0x10] sm:$0xff] }
  0x81   : > { %1459 = vmatmul.bf16.vlgmr.msrb.gmra.mxu1 %v4123_v3 }
  0x82   : > { %1492 = vmatmul.bf16.vlgmr.msrb.gmra.mxu2 %v4127_v4 }
  0x83   : > { %1525 = vmatmul.bf16.vlgmr.msrb.gmra.mxu3 %v4131_v5  ;;  %v860_v5 = vpack.c.b16 %v820_v61, %v820_v61 }
  0x90   : > { %1431 = vmatmul.bf16.gmra.mxu0 %v4151_v15  ;;  %v5183_v15 = vld [vmem:[%s6740_s3 + $0x8] sm:$0xff] }
  0x91   : > { %1464 = vmatmul.bf16.gmra.mxu1 %v4155_v16  ;;  %1597 = vmatpush.bf16.msra.mxu2 %v5183_v15 }
  0x92   : > { %1497 = vmatmul.bf16.gmra.mxu2 %v4159_v18 }
  0x93   : > { %1530 = vmatmul.bf16.gmra.mxu3 %v4163_v19 }
  0x95   : > { %1598 = vmatpush.bf16.msra.mxu2 %v5182_v34 }
  0x99   : > { %1727 = vmatpush.bf16.msrb.mxu2 %v5197_v42 }
  0xa0   : > { %1436 = vmatmul.bf16.gmra.mxu0 %v4183_v28 }
  0xa1   : > { %1469 = vmatmul.bf16.gmra.mxu1 %v4187_v29 }
  0xa2   : > { %1502 = vmatmul.bf16.gmra.mxu2 %v4191_v30 }
  0xa3   : > { %1535 = vmatmul.bf16.gmra.mxu3 %v4195_v32 }
  0xad   : > { %v1295_v45 = vpop.f32.mrf.mxu0 }
  0xae   : > { %v1328_v46 = vpop.f32.mrf.mxu1 }
  0xaf   : > { %v1329_v49 = vadd.f32 %v1328_v46, %v1295_v45 }
  0xb0   : > { %1441 = vmatmul.bf16.gmra.mxu0 %v4215_v43 }
  0xb1   : > { %1474 = vmatmul.bf16.gmra.mxu1 %v4219_v44 }
  0xb2   : > { %1507 = vmatmul.bf16.gmra.mxu2 %v4223_v47 }
  0xb3   : > { %1540 = vmatmul.bf16.gmra.mxu3 %v4227_v48  ;;  %v5196_v48 = vld [vmem:[%s6742_s5 + $0x10] sm:$0xff] }
  0xb4   : > { %1728 = vmatpush.bf16.msrb.mxu2 %v5196_v48 }
  0xb5   : > { %v1361_v50 = vpop.f32.mrf.mxu2  ;;  %v5772_v53 = vpop.f32.mrf.mxu0 }
  0xb6   : > { %v1394_v51 = vpop.f32.mrf.mxu3  ;;  %v1362_v52 = vadd.f32 %v1361_v50, %v1329_v49  ;;  %v5774_v54 = vpop.f32.mrf.mxu1  ;;  %v5195_v49 = vld [vmem:[%s6742_s5 + $0x8] sm:$0xff]  ;;  %v5209_v50 = vld [vmem:[%s6744_s7 + $0x18] sm:$0xff] }
  0xb7   : > { %1859 = vmatpush.bf16.msra.mxu0 %v5209_v50 }
  0xb8   : > { %v5782_v57 = vadd.f32 %v1394_v51, %v1362_v52  ;;  %1729 = vmatpush.bf16.msrb.mxu2 %v5195_v49 }
  0xbb   : > { %1860 = vmatpush.bf16.msra.mxu0 %v5208_v60 }
  0xbc   : > { %1730 = vmatpush.bf16.msrb.mxu2 %v5194_v59 }
  0xbd   : > { %v5787_v63 = vpop.f32.mrf.mxu2  ;;  %v1300_v3 = vpop.f32.mrf.mxu0 }
  0xbe   : > { %v5789_v0 = vpop.f32.mrf.mxu3  ;;  %v1333_v4 = vpop.f32.mrf.mxu1 }
  0xbf   : > { %v1334_v7 = vadd.f32 %v1333_v4, %v1300_v3  ;;  %1861 = vmatpush.bf16.msra.mxu0 %v5207_v62 }
  0xc0   : > { %1446 = vmatmul.bf16.gmra.mxu0 %v858_v1 }
  0xc1   : > { %1479 = vmatmul.bf16.gmra.mxu1 %v859_v2 }
  0xc2   : > { %1512 = vmatmul.bf16.gmra.mxu2 %v860_v5  ;;  %v5206_v5 = vld [vmem:[%s6744_s7] sm:$0xff] }
  0xc3   : > { %1545 = vmatmul.bf16.gmra.mxu3 %v861_v6  ;;  %1862 = vmatpush.bf16.msra.mxu0 %v5206_v5 }
  0xc5   : > { %v1366_v8 = vpop.f32.mrf.mxu2  ;;  %v5791_v11 = vpop.f32.mrf.mxu0 }
  0xc6   : > { %v1399_v9 = vpop.f32.mrf.mxu3  ;;  %v1367_v10 = vadd.f32 %v1366_v8, %v1334_v7  ;;  %v5793_v12 = vpop.f32.mrf.mxu1  ;;  %v1331_v7 = vadd.f32 %v5774_v54, %v5772_v53 }
  0xc7   : > { %v1336_v34 = vadd.f32 %v5793_v12, %v5791_v11 }
  0xc8   : > { %v5795_v14 = vadd.f32 %v1399_v9, %v1367_v10  ;;  %v1364_v15 = vadd.f32 %v5787_v63, %v1331_v7  ;;  %v5220_v63 = vld [vmem:[%s6746_s9 + $0x10] sm:$0xff] }
  0xcd   : > { %v5800_v16 = vpop.f32.mrf.mxu2  ;;  %v1305_v19 = vpop.f32.mrf.mxu0 }
  0xce   : > { %v5802_v18 = vpop.f32.mrf.mxu3  ;;  %v1338_v20 = vpop.f32.mrf.mxu1 }
  0xcf   : > { %v1339_v21 = vadd.f32 %v1338_v20, %v1305_v19 }
  0xd5   : > { %v1371_v22 = vpop.f32.mrf.mxu2  ;;  %v5804_v25 = vpop.f32.mrf.mxu0 }
  0xd6   : > { %v1404_v23 = vpop.f32.mrf.mxu3  ;;  %v1372_v24 = vadd.f32 %v1371_v22, %v1339_v21  ;;  %v5806_v26 = vpop.f32.mrf.mxu1 }
  0xd8   : > { %v5808_v27 = vadd.f32 %v1404_v23, %v1372_v24  ;;  %v5221_v23 = vld [vmem:[%s6746_s9 + $0x18] sm:$0xff] }
  0xdd   : > { %v5810_v28 = vpop.f32.mrf.mxu2  ;;  %v1310_v30 = vpop.f32.mrf.mxu0 }
  0xde   : > { %v5812_v29 = vpop.f32.mrf.mxu3  ;;  %v1343_v32 = vpop.f32.mrf.mxu1 }
  0xdf   : > { %v1344_v33 = vadd.f32 %v1343_v32, %v1310_v30 }
  0xe5   : > { %v1376_v36 = vpop.f32.mrf.mxu2  ;;  %v5817_v39 = vpop.f32.mrf.mxu0 }
  0xe6   : > { %v1409_v37 = vpop.f32.mrf.mxu3  ;;  %v1377_v38 = vadd.f32 %v1376_v36, %v1344_v33  ;;  %v5819_v40 = vpop.f32.mrf.mxu1 }
  0xe8   : > { %v5821_v41 = vadd.f32 %v1409_v37, %v1377_v38  ;;  %v1369_v37 = vadd.f32 %v5800_v16, %v1336_v34  ;;  %v5192_v34 = vld [vmem:[%s6748_s11 + $0x30] sm:$0xff] }
  0xed   : > { %v5826_v43 = vpop.f32.mrf.mxu2  ;;  %v1315_v45 = vpop.f32.mrf.mxu0 }
  0xee   : > { %v5828_v44 = vpop.f32.mrf.mxu3  ;;  %v1348_v46 = vpop.f32.mrf.mxu1 }
  0xef   : > { %v1349_v47 = vadd.f32 %v1348_v46, %v1315_v45  ;;  %v5218_v46 = vld [vmem:[%s6746_s9] sm:$0xff] }
  0xf5   : > { %v1381_v51 = vpop.f32.mrf.mxu2  ;;  %v1317_v56 = vpop.f32.mrf.mxu0 }
  0xf6   : > { %v1414_v52 = vpop.f32.mrf.mxu3  ;;  %v1382_v55 = vadd.f32 %v1381_v51, %v1349_v47  ;;  %v1350_v58 = vpop.f32.mrf.mxu1  ;;  %v1402_v47 = vadd.f32 %v5802_v18, %v1369_v37  ;;  %v1341_v18 = vadd.f32 %v5806_v26, %v5804_v25 }
  0xf8   : > { %v5845_v61 = vadd.f32 %v1414_v52, %v1382_v55 }
  0xfd   : > { %v1383_v1 = vpop.f32.mrf.mxu2  ;;  %v1427_v3 = vpop.f32.mrf.mxu0 }
  0xfe   : > { %v1416_v2 = vpop.f32.mrf.mxu3  ;;  %v1460_v4 = vpop.f32.mrf.mxu1  ;;  %v1428_v6 = vadd.f32 %v1427_v3, %v5782_v57  ;;  %v1397_v57 = vadd.f32 %v5789_v0, %v1364_v15  ;;  %v5219_v0 = vld [vmem:[%s6746_s9 + $0x8] sm:$0xff] }
  0xff   : > { %v1374_v2 = vadd.f32 %v5810_v28, %v1341_v18 }
 0x100   : > { %v1461_v8 = vadd.f32 %v1460_v4, %v1428_v6 }
 0x101   : > { %v1407_v6 = vadd.f32 %v5812_v29, %v1374_v2 }
 0x105   : > { %v1493_v9 = vpop.f32.mrf.mxu2  ;;  %v1429_v20 = vpop.f32.mrf.mxu0 }
 0x106   : > { %v1526_v10 = vpop.f32.mrf.mxu3  ;;  %v1494_v19 = vadd.f32 %v1493_v9, %v1461_v8  ;;  %v1462_v21 = vpop.f32.mrf.mxu1  ;;  %v1430_v30 = vadd.f32 %v1429_v20, %v1397_v57 }
 0x108   : > { %v1527_v22 = vadd.f32 %v1526_v10, %v1494_v19  ;;  %v1463_v36 = vadd.f32 %v1462_v21, %v1430_v30 }
 0x10a   : > { %v1550_v24 = vpack.c.bf16 %v1527_v22, %v1527_v22 }
 0x10c   : > { %4500 = vmatmul.msk.bf16.vlgmr.msra.gmra.mxu2 %vm1587_vm0, %v1550_v24 }
 0x10d   : > { %v1495_v53 = vpop.f32.mrf.mxu2  ;;  %2002 = vmatpush.bf16.msra.mxu2 %v5221_v23  ;;  %v1432_v32 = vpop.f32.mrf.mxu0  ;;  %v1346_v23 = vadd.f32 %v5819_v40, %v5817_v39 }
 0x10e   : > { %v1528_v54 = vpop.f32.mrf.mxu3  ;;  %v1465_v33 = vpop.f32.mrf.mxu1  ;;  %v1496_v38 = vadd.f32 %v1495_v53, %v1463_v36  ;;  %v1433_v11 = vadd.f32 %v1432_v32, %v5795_v14  ;;  %v5193_v53 = vld [vmem:[%s6748_s11 + $0x38] sm:$0xff] }
 0x10f   : > { %v1379_v29 = vadd.f32 %v5826_v43, %v1346_v23  ;;  %v5204_v43 = vld [vmem:[%s6749_s12 + $0x30] sm:$0xff]  ;;  %1670 = vmatpush.bf16.msra.mxu1 %v5193_v53  ;;  %v5315_v23 = vld [vmem:[%s6741_s4] ss:$0 sm:$0xff] }
 0x110   : > { %v1529_v48 = vadd.f32 %v1528_v54, %v1496_v38  ;;  %v1466_v52 = vadd.f32 %v1465_v33, %v1433_v11  ;;  %v5190_v11 = vld [vmem:[%s6748_s11 + $0x20] sm:$0xff] }
 0x111   : > { %2003 = vmatpush.bf16.msra.mxu2 %v5220_v63  ;;  %v1412_v32 = vadd.f32 %v5828_v44, %v1379_v29  ;;  %v5191_v44 = vld [vmem:[%s6748_s11 + $0x28] sm:$0xff] }
 0x112   : > { %v1683_v51 = vpack.c.bf16 %v1529_v48, %v1529_v48 }
 0x113   : > { %1671 = vmatpush.bf16.msra.mxu1 %v5192_v34 }
 0x115   : > { %v1498_v42 = vpop.f32.mrf.mxu2  ;;  %2004 = vmatpush.bf16.msra.mxu2 %v5219_v0  ;;  %v1434_v12 = vpop.f32.mrf.mxu0 }
 0x116   : > { %v1531_v45 = vpop.f32.mrf.mxu3  ;;  %v1467_v49 = vpop.f32.mrf.mxu1  ;;  %v1435_v50 = vadd.f32 %v1434_v12, %v1402_v47  ;;  %v1499_v16 = vadd.f32 %v1498_v42, %v1466_v52  ;;  %v5202_v12 = vld [vmem:[%s6749_s12 + $0x20] sm:$0xff]  ;;  %v5189_v52 = vld [vmem:[%s6748_s11 + $0x18] sm:$0xff] }
 0x117   : > { %1672 = vmatpush.bf16.msra.mxu1 %v5191_v44  ;;  %v5317_v44 = vld [vmem:[%s6745_s8] ss:$0 sm:$0xff] }
 0x118   : > { %v1468_v55 = vadd.f32 %v1467_v49, %v1435_v50  ;;  %v1532_v1 = vadd.f32 %v1531_v45, %v1499_v16  ;;  %v5201_v16 = vld [vmem:[%s6749_s12 + $0x18] sm:$0xff] }
 0x119   : > { %2005 = vmatpush.bf16.msra.mxu2 %v5218_v46 }
 0x11b   : > { %1673 = vmatpush.bf16.msra.mxu1 %v5190_v11 }
 0x11c   : > { %4549 = vmatmul.msk.bf16.vlgmr.msrb.gmra.mxu2 %vm1587_vm0, %v1683_v51 }
 0x11d   : > { %v1500_v56 = vpop.f32.mrf.mxu2  ;;  %v1437_v60 = vpop.f32.mrf.mxu0 }
 0x11e   : > { %v1533_v58 = vpop.f32.mrf.mxu3  ;;  %v1501_v59 = vadd.f32 %v1500_v56, %v1468_v55  ;;  %v1470_v62 = vpop.f32.mrf.mxu1  ;;  %v1438_v7 = vadd.f32 %v1437_v60, %v5808_v27  ;;  %v5205_v27 = vld [vmem:[%s6749_s12 + $0x38] sm:$0xff] }
 0x11f   : > { %1802 = vmatpush.bf16.msra.mxu3 %v5205_v27  ;;  %1674 = vmatpush.bf16.msra.mxu1 %v5189_v52 }
 0x120   : > { %v1534_v14 = vadd.f32 %v1533_v58, %v1501_v59  ;;  %v1471_v15 = vadd.f32 %v1470_v62, %v1438_v7  ;;  %v5188_v62 = vld [vmem:[%s6748_s11 + $0x10] sm:$0xff] }
 0x121   : > { %v5216_v7 = vld [vmem:[%s6750_s13 + $0x30] sm:$0xff] }
 0x122   : > { %v1815_v3 = vpack.c.bf16 %v1534_v14, %v1532_v1  ;;  %v5187_v14 = vld [vmem:[%s6748_s11 + $0x8] sm:$0xff] }
 0x123   : > { %1803 = vmatpush.bf16.msra.mxu3 %v5204_v43  ;;  %1675 = vmatpush.bf16.msra.mxu1 %v5188_v62 }
 0x124   : > { %4598 = vmatmul.msk.bf16.vlgmr.msra.gmra.mxu0 %vm1587_vm0, %v1815_v3 }
 0x125   : > { %v1503_v4 = vpop.f32.mrf.mxu2  ;;  %v1439_v8 = vpop.f32.mrf.mxu0 }
 0x126   : > { %v1536_v5 = vpop.f32.mrf.mxu3  ;;  %v1472_v9 = vpop.f32.mrf.mxu1  ;;  %v1440_v10 = vadd.f32 %v1439_v8, %v1407_v6  ;;  %v1504_v19 = vadd.f32 %v1503_v4, %v1471_v15  ;;  %v5217_v6 = vld [vmem:[%s6750_s13 + $0x38] sm:$0xff]  ;;  %v5200_v8 = vld [vmem:[%s6749_s12 + $0x10] sm:$0xff]  ;;  %v5199_v15 = vld [vmem:[%s6749_s12 + $0x8] sm:$0xff] }
 0x127   : > { %1676 = vmatpush.bf16.msra.mxu1 %v5187_v14 }
 0x128   : > { %v1473_v20 = vadd.f32 %v1472_v9, %v1440_v10  ;;  %v1537_v57 = vadd.f32 %v1536_v5, %v1504_v19  ;;  %v5186_v5 = vld [vmem:[%s6748_s11] sm:$0xff]  ;;  %v5215_v9 = vld [vmem:[%s6750_s13 + $0x28] sm:$0xff]  ;;  %v5213_v19 = vld [vmem:[%s6750_s13 + $0x18] sm:$0xff] }
 0x129   : > { %v5214_v10 = vld [vmem:[%s6750_s13 + $0x20] sm:$0xff] }
 0x12b   : > { %1677 = vmatpush.bf16.msra.mxu1 %v5186_v5 }
 0x12d   : > { %v1505_v25 = vpop.f32.mrf.mxu2  ;;  %v1442_v22 = vpop.f32.mrf.mxu0 }
 0x12e   : > { %v1538_v26 = vpop.f32.mrf.mxu3  ;;  %v1506_v21 = vadd.f32 %v1505_v25, %v1473_v20  ;;  %v1475_v28 = vpop.f32.mrf.mxu1  ;;  %v1443_v39 = vadd.f32 %v1442_v22, %v5821_v41  ;;  %v5203_v41 = vld [vmem:[%s6749_s12 + $0x28] sm:$0xff]  ;;  %v5198_v20 = vld [vmem:[%s6749_s12] sm:$0xff]  ;;  %v5212_v25 = vld [vmem:[%s6750_s13 + $0x10] sm:$0xff] }
 0x12f   : > { %1804 = vmatpush.bf16.msra.mxu3 %v5203_v41  ;;  %1936 = vmatpush.bf16.msrb.mxu1 %v5217_v6  ;;  %v5228_v22 = vld [vmem:[%s6751_s14 + $0x30] sm:$0xff] }
 0x130   : > { %v1539_v24 = vadd.f32 %v1538_v26, %v1506_v21  ;;  %v1476_v0 = vadd.f32 %v1475_v28, %v1443_v39  ;;  %v5229_v26 = vld [vmem:[%s6751_s14 + $0x38] sm:$0xff]  ;;  %v5211_v21 = vld [vmem:[%s6750_s13 + $0x8] sm:$0xff]  ;;  %v5210_v28 = vld [vmem:[%s6750_s13] sm:$0xff] }
 0x131   : > { %v5316_v39 = vld [vmem:[%s6743_s6] ss:$0 sm:$0xff] }
 0x132   : > { %v1950_v30 = vpack.c.bf16 %v1539_v24, %v1537_v57  ;;  %v5227_v57 = vld [vmem:[%s6751_s14 + $0x28] sm:$0xff] }
 0x133   : > { %1805 = vmatpush.bf16.msra.mxu3 %v5202_v12  ;;  %1937 = vmatpush.bf16.msrb.mxu1 %v5216_v7  ;;  %v5318_v12 = vld [vmem:[%s6747_s10] ss:$0 sm:$0xff] }
 0x134   : > { %4647 = vmatmul.msk.bf16.vlgmr.msra.gmra.mxu2 %vm1587_vm0, %v1950_v30  ;;  %v5226_v30 = vld [vmem:[%s6751_s14 + $0x20] sm:$0xff] }
 0x135   : > { %v1508_v54 = vpop.f32.mrf.mxu2  ;;  %v1444_v40 = vpop.f32.mrf.mxu0 }
 0x136   : > { %v1541_v63 = vpop.f32.mrf.mxu3  ;;  %v1477_v33 = vpop.f32.mrf.mxu1  ;;  %v1445_v36 = vadd.f32 %v1444_v40, %v1412_v32  ;;  %v1509_v37 = vadd.f32 %v1508_v54, %v1476_v0  ;;  %v5225_v54 = vld [vmem:[%s6751_s14 + $0x18] sm:$0xff]  ;;  %v5224_v32 = vld [vmem:[%s6751_s14 + $0x10] sm:$0xff]  ;;  %v5223_v40 = vld [vmem:[%s6751_s14 + $0x8] sm:$0xff] }
 0x137   : > { %1806 = vmatpush.bf16.msra.mxu3 %v5201_v16  ;;  %1938 = vmatpush.bf16.msrb.mxu1 %v5215_v9 }
 0x138   : > { %v1478_v38 = vadd.f32 %v1477_v33, %v1445_v36  ;;  %v1542_v49 = vadd.f32 %v1541_v63, %v1509_v37  ;;  %v5222_v36 = vld [vmem:[%s6751_s14] sm:$0xff] }
 0x13b   : > { %1807 = vmatpush.bf16.msra.mxu3 %v5200_v8  ;;  %1939 = vmatpush.bf16.msrb.mxu1 %v5214_v10 }
 0x13d   : > { %v1510_v42 = vpop.f32.mrf.mxu2  ;;  %v1447_v47 = vpop.f32.mrf.mxu0 }
 0x13e   : > { %v1543_v45 = vpop.f32.mrf.mxu3  ;;  %v1511_v46 = vadd.f32 %v1510_v42, %v1478_v38  ;;  %v1480_v48 = vpop.f32.mrf.mxu1  ;;  %v1448_v55 = vadd.f32 %v1447_v47, %v5845_v61 }
 0x13f   : > { %1808 = vmatpush.bf16.msra.mxu3 %v5199_v15  ;;  %1940 = vmatpush.bf16.msrb.mxu1 %v5213_v19  ;;  %v5233_v15 = vld [vmem:[%s6752_s15 + $0x18] sm:$0xff] }
 0x140   : > { %v1544_v50 = vadd.f32 %v1543_v45, %v1511_v46  ;;  %v1481_v18 = vadd.f32 %v1480_v48, %v1448_v55  ;;  %5303 = vmatpush.bf16.msrb.mxu2 %v5233_v15 }
 0x142   : > { %v1951_v51 = vpack.c.bf16 %v1544_v50, %v1542_v49 }
 0x143   : > { %1809 = vmatpush.bf16.msra.mxu3 %v5198_v20  ;;  %1941 = vmatpush.bf16.msrb.mxu1 %v5212_v25  ;;  %v5232_v20 = vld [vmem:[%s6752_s15 + $0x10] sm:$0xff]  ;;  %v5231_v25 = vld [vmem:[%s6752_s15 + $0x8] sm:$0xff] }
 0x144   : > { %4648 = vmatmul.msk.bf16.gmra.mxu2 %vm1587_vm0, %v1951_v51 }
 0x145   : > { %v1513_v56 = vpop.f32.mrf.mxu2  ;;  %v1449_v59 = vpop.f32.mrf.mxu0  ;;  %5304 = vmatpush.bf16.msrb.mxu2 %v5232_v20 }
 0x146   : > { %v1546_v58 = vpop.f32.mrf.mxu3  ;;  %v1482_v60 = vpop.f32.mrf.mxu1  ;;  %v1514_v1 = vadd.f32 %v1513_v56, %v1481_v18 }
 0x147   : > { %2093 = vmatpush.bf16.msrb.mxu3 %v5229_v26  ;;  %1942 = vmatpush.bf16.msrb.mxu1 %v5211_v21  ;;  %v5230_v21 = vld [vmem:[%s6752_s15] sm:$0xff] }
 0x148   : > { %v1547_v3 = vadd.f32 %v1546_v58, %v1514_v1 }
 0x149   : > { %5305 = vmatpush.bf16.msrb.mxu2 %v5231_v25 }
 0x14a   : > { %v1952_v4 = vpack.c.bf16 %v1547_v3, %v1547_v3 }
 0x14b   : > { %2094 = vmatpush.bf16.msrb.mxu3 %v5228_v22  ;;  %1943 = vmatpush.bf16.msrb.mxu1 %v5210_v28  ;;  %v5320_v22 = vld [vmem:[%s5493_s0] sm:$0xff] }
 0x14d   : > { %v1515_v61 = vpop.f32.mrf.mxu2  ;;  %5306 = vmatpush.bf16.msrb.mxu2 %v5230_v21 }
 0x14e   : > { %v1548_v2 = vpop.f32.mrf.mxu3 }
 0x14f   : > { %2095 = vmatpush.bf16.msrb.mxu3 %v5227_v57 }
 0x153   : > { %2096 = vmatpush.bf16.msrb.mxu3 %v5226_v30 }
 0x154   : > { %4649 = vmatmul.msk.bf16.gmra.mxu2 %vm1587_vm0, %v1952_v4 }
 0x157   : > { %2097 = vmatpush.bf16.msrb.mxu3 %v5225_v54 }
 0x15b   : > { %2098 = vmatpush.bf16.msrb.mxu3 %v5224_v32  ;;  %v5234_v32 = vld [vmem:[%s6739_s2] sm:$0xff] }
 0x15f   : > { %2099 = vmatpush.bf16.msrb.mxu3 %v5223_v40  ;;  %v5235_v40 = vld [vmem:[%s6739_s2 + $0x8] sm:$0xff] }
 0x163   : > { %2100 = vmatpush.bf16.msrb.mxu3 %v5222_v36  ;;  %v5236_v36 = vld [vmem:[%s6739_s2 + $0x10] sm:$0xff] }
 0x164   : > { %5051 = vmatmul.msk.bf16.vlgmr.msrb.gmra.mxu2 %vm1587_vm0, %v5604_v17 }
 0x174   : > { %5052 = vmatmul.msk.bf16.gmra.mxu2 %vm1587_vm0, %v5597_v13  ;;  %v5322_v13 = vld [vmem:[%s5493_s0 + $0x10] sm:$0xff] }
 0x18f   : > { %v1600_v24 = vpop.f32.mrf.mxu2 }
 0x190   : > { %v1601_v29 = vadd.f32 %v5315_v23, %v1600_v24 }
 0x192   : > { %v1604_v27 = vmax.f32 %v1601_v29, 0.0 }
 0x194   : > { %v1605_v53 = vpack.c.bf16 %v1604_v27, %v1604_v27  ;;  %v5321_v27 = vld [vmem:[%s5493_s0 + $0x8] sm:$0xff] }
 0x196   : > { %1678 = vmatmul.bf16.vlgmr.msra.gmra.mxu1 %v1605_v53 }
 0x197   : > { %v1602_v63 = vpop.f32.mrf.mxu2  ;;  %3323 = vmatpush.bf16.msra.mxu1 %v5233_v15 }
 0x19b   : > { %3324 = vmatpush.bf16.msra.mxu1 %v5232_v20 }
 0x19f   : > { %v1732_v33 = vpop.f32.mrf.mxu2  ;;  %3325 = vmatpush.bf16.msra.mxu1 %v5231_v25  ;;  %v5243_v25 = vld [vmem:[%s6739_s2 + $0x48] sm:$0xff] }
 0x1a0   : > { %v1733_v43 = vadd.f32 %v5316_v39, %v1732_v33  ;;  %v5323_v39 = vld [vmem:[%s5493_s0 + $0x118] sm:$0xff] }
 0x1a1   : > { %v1864_v34 = vpop.f32.mrf.mxu0  ;;  %5053 = vmatmul.msk.bf16.gmra.mxu2 %vm1587_vm0, %v5323_v39  ;;  %v5324_v33 = vld [vmem:[%s5493_s0 + $0x18] sm:$0xff]  ;;  %v5244_v39 = vld [vmem:[%s6739_s2 + $0x50] sm:$0xff] }
 0x1a2   : > { %v1736_v0 = vmax.f32 %v1733_v43, 0.0  ;;  %v1865_v38 = vadd.f32 %v5317_v44, %v1864_v34  ;;  %v5268_v43 = vld [vmem:[%s6739_s2 + $0x110] sm:$0xff]  ;;  %v5325_v34 = vld [vmem:[%s5493_s0 + $0x120] sm:$0xff] }
 0x1a3   : > { %3326 = vmatpush.bf16.msra.mxu1 %v5230_v21 }
 0x1a4   : > { %v1737_v41 = vpack.c.bf16 %v1736_v0, %v1736_v0  ;;  %v1869_v46 = vmax.f32 %v1865_v38, 0.0  ;;  %v5326_v0 = vld [vmem:[%s5493_s0 + $0x20] sm:$0xff]  ;;  %v5328_v38 = vld [vmem:[%s5493_s0 + $0x28] sm:$0xff] }
 0x1a6   : > { %1810 = vmatmul.bf16.vlgmr.msra.gmra.mxu3 %v1737_v41  ;;  %v5269_v41 = vld [vmem:[%s6739_s2 + $0x118] sm:$0xff] }
 0x1a7   : > { %v1734_v37 = vpop.f32.mrf.mxu2 }
 0x1a8   : > { %v5237_v37 = vld [vmem:[%s6739_s2 + $0x18] sm:$0xff] }
 0x1a9   : > { %v1866_v42 = vpop.f32.mrf.mxu0 }
 0x1aa   : > { %v1867_v45 = vadd.f32 %v5317_v44, %v1866_v42  ;;  %v5327_v44 = vld [vmem:[%s5493_s0 + $0x128] sm:$0xff]  ;;  %v5270_v42 = vld [vmem:[%s6739_s2 + $0x120] sm:$0xff] }
 0x1ac   : > { %v1870_v47 = vmax.f32 %v1867_v45, 0.0  ;;  %v5329_v45 = vld [vmem:[%s5493_s0 + $0x130] sm:$0xff] }
 0x1ae   : > { %v1871_v48 = vpack.c.bf16 %v1870_v47, %v1869_v46  ;;  %v5238_v46 = vld [vmem:[%s6739_s2 + $0x20] sm:$0xff]  ;;  %v5330_v47 = vld [vmem:[%s5493_s0 + $0x30] sm:$0xff] }
 0x1b0   : > { %1944 = vmatmul.bf16.vlgmr.msrb.gmra.mxu1 %v1871_v48  ;;  %v5271_v48 = vld [vmem:[%s6739_s2 + $0x128] sm:$0xff] }
 0x1b1   : > { %5054 = vmatmul.msk.bf16.gmra.mxu2 %vm1587_vm0, %v5325_v34 }
 0x1b7   : > { %v2007_v11 = vpop.f32.mrf.mxu2 }
 0x1b8   : > { %v2008_v49 = vadd.f32 %v5318_v12, %v2007_v11  ;;  %v5331_v11 = vld [vmem:[%s5493_s0 + $0x138] sm:$0xff] }
 0x1ba   : > { %v2021_v52 = vmax.f32 %v2008_v49, 0.0  ;;  %v5332_v49 = vld [vmem:[%s5493_s0 + $0x38] sm:$0xff] }
 0x1bf   : > { %v2009_v50 = vpop.f32.mrf.mxu2 }
 0x1c0   : > { %v2010_v51 = vadd.f32 %v5318_v12, %v2009_v50  ;;  %5018 = vmatmul.msk.bf16.vlgmr.msra.gmra.mxu1 %vm1587_vm0, %v5320_v22  ;;  %v5272_v50 = vld [vmem:[%s6739_s2 + $0x130] sm:$0xff] }
 0x1c1   : > { %5055 = vmatmul.msk.bf16.gmra.mxu2 %vm1587_vm0, %v5327_v44 }
 0x1c2   : > { %v2022_v16 = vmax.f32 %v2010_v51, 0.0  ;;  %v5240_v51 = vld [vmem:[%s6739_s2 + $0x30] sm:$0xff] }
 0x1c4   : > { %v2026_v55 = vpack.c.bf16 %v2022_v16, %v2021_v52  ;;  %v5333_v16 = vld [vmem:[%s5493_s0 + $0x40] sm:$0xff] }
 0x1c6   : > { %2101 = vmatmul.bf16.vlgmr.msrb.gmra.mxu3 %v2026_v55  ;;  %v5273_v55 = vld [vmem:[%s6739_s2 + $0x138] sm:$0xff] }
 0x1c7   : > { %v2012_v56 = vpop.f32.mrf.mxu2 }
 0x1c8   : > { %v2013_v58 = vadd.f32 %v5318_v12, %v2012_v56  ;;  %v5241_v56 = vld [vmem:[%s6739_s2 + $0x38] sm:$0xff] }
 0x1ca   : > { %v2023_v62 = vmax.f32 %v2013_v58, 0.0 }
 0x1cf   : > { %v2014_v59 = vpop.f32.mrf.mxu2 }
 0x1d0   : > { %v2015_v60 = vadd.f32 %v5318_v12, %v2014_v59  ;;  %5019 = vmatmul.msk.bf16.gmra.mxu1 %vm1587_vm0, %v5321_v27  ;;  %v5334_v59 = vld [vmem:[%s5493_s0 + $0x48] sm:$0xff] }
 0x1d1   : > { %5056 = vmatmul.msk.bf16.gmra.mxu2 %vm1587_vm0, %v5329_v45  ;;  %v5277_v45 = vld [vmem:[%s6739_s2 + $0x158] sm:$0xff] }
 0x1d2   : > { %v2024_v18 = vmax.f32 %v2015_v60, 0.0  ;;  %v5274_v60 = vld [vmem:[%s6739_s2 + $0x140] sm:$0xff] }
 0x1d4   : > { %v2027_v1 = vpack.c.bf16 %v2024_v18, %v2023_v62  ;;  %v6115_v18 = vld [vmem:[%s6753_s16] ss:$0 sm:$0xff] }
 0x1d6   : > { %2106 = vmatmul.bf16.gmra.mxu3 %v2027_v1  ;;  %v5242_v1 = vld [vmem:[%s6739_s2 + $0x40] sm:$0xff] }
 0x1d7   : > { %v2017_v14 = vpop.f32.mrf.mxu2 }
 0x1d8   : > { %v2018_v61 = vadd.f32 %v5318_v12, %v2017_v14  ;;  %v5239_v12 = vld [vmem:[%s6739_s2 + $0x28] sm:$0xff] }
 0x1da   : > { %v2025_v3 = vmax.f32 %v2018_v61, 0.0 }
 0x1dc   : > { %v2028_v4 = vpack.c.bf16 %v2025_v3, %v2025_v3 }
 0x1df   : > { %v2019_v2 = vpop.f32.mrf.mxu2 }
 0x1e0   : > { %5020 = vmatmul.msk.bf16.gmra.mxu1 %vm1587_vm0, %v5322_v13 }
 0x1e1   : > { %5057 = vmatmul.msk.bf16.gmra.mxu2 %vm1587_vm0, %v5331_v11 }
 0x1e6   : > { %2111 = vmatmul.bf16.gmra.mxu3 %v2028_v4  ;;  %v5336_v4 = vld [vmem:[%s5493_s0 + $0x50] sm:$0xff] }
 0x1e7   : > { %v6137_v15 = vpop.f32.mrf.mxu2 }
 0x1f0   : > { %5021 = vmatmul.msk.bf16.gmra.mxu1 %vm1587_vm0, %v5324_v33 }
 0x1f1   : > { %5058 = vmatmul.msk.bf16.gmra.mxu2 %vm1587_vm0, %v5640_v35 }
 0x200   : > { %5022 = vmatmul.msk.bf16.gmra.mxu1 %vm1587_vm0, %v5326_v0 }
 0x201   : > { %5059 = vmatmul.msk.bf16.gmra.mxu2 %vm1587_vm0, %v5633_v31  ;;  %v5335_v31 = vld [vmem:[%s5493_s0 + $0x150] sm:$0xff] }
 0x210   : > { %5023 = vmatmul.msk.bf16.gmra.mxu1 %vm1587_vm0, %v5328_v38 }
 0x211   : > { %5060 = vmatmul.msk.bf16.gmra.mxu2 %vm1587_vm0, %v5335_v31 }
 0x213   : > { %v1679_v5 = vpop.f32.mrf.mxu1 }
 0x21b   : > { %v1681_v6 = vpop.f32.mrf.mxu1 }
 0x21c   : > { %v5337_v6 = vld [vmem:[%s5493_s0 + $0x158] sm:$0xff] }
 0x220   : > { %5024 = vmatmul.msk.bf16.gmra.mxu1 %vm1587_vm0, %v5330_v47  ;;  %v5341_v47 = vld [vmem:[%s5493_s0 + $0x168] sm:$0xff] }
 0x221   : > { %5061 = vmatmul.msk.bf16.gmra.mxu2 %vm1587_vm0, %v5337_v6  ;;  %v5343_v6 = vld [vmem:[%s5493_s0 + $0x170] sm:$0xff] }
 0x229   : > { %v1811_v7 = vpop.f32.mrf.mxu3 }
 0x22a   : > { %v2252_v8 = vpack.c.bf16 %v1811_v7, %v1679_v5  ;;  %v5275_v5 = vld [vmem:[%s6739_s2 + $0x148] sm:$0xff] }
 0x22d   : > { %v1945_v57 = vpop.f32.mrf.mxu1 }
 0x230   : > { %5025 = vmatmul.msk.bf16.gmra.mxu1 %vm1587_vm0, %v5332_v49 }
 0x231   : > { %v1813_v9 = vpop.f32.mrf.mxu3 }
 0x235   : > { %v1947_v54 = vpop.f32.mrf.mxu1 }
 0x236   : > { %v2253_v63 = vpack.c.bf16 %v1947_v54, %v1945_v57  ;;  %v5338_v57 = vld [vmem:[%s5493_s0 + $0x58] sm:$0xff] }
 0x23d   : > { %v3328_v52 = vpop.f32.mrf.mxu1 }
 0x240   : > { %5026 = vmatmul.msk.bf16.gmra.mxu1 %vm1587_vm0, %v5333_v16 }
 0x245   : > { %v3330_v35 = vpop.f32.mrf.mxu1 }
 0x249   : > { %v2102_v10 = vpop.f32.mrf.mxu3 }
 0x24d   : > { %v3333_v58 = vpop.f32.mrf.mxu1 }
 0x250   : > { %5027 = vmatmul.msk.bf16.gmra.mxu1 %vm1587_vm0, %v5334_v59 }
 0x251   : > { %v2104_v19 = vpop.f32.mrf.mxu3 }
 0x252   : > { %v2254_v17 = vpack.c.bf16 %v2104_v19, %v2102_v10 }
 0x255   : > { %v3335_v62 = vpop.f32.mrf.mxu1 }
 0x259   : > { %v2107_v26 = vpop.f32.mrf.mxu3 }
 0x25d   : > { %v3338_v61 = vpop.f32.mrf.mxu1 }
 0x260   : > { %5028 = vmatmul.msk.bf16.gmra.mxu1 %vm1587_vm0, %v5336_v4  ;;  %v5278_v4 = vld [vmem:[%s6739_s2 + $0x160] sm:$0xff] }
 0x261   : > { %v2109_v28 = vpop.f32.mrf.mxu3 }
 0x262   : > { %v2255_v30 = vpack.c.bf16 %v2109_v28, %v2107_v26  ;;  %v6144_v28 = vpop.f32.mrf.mxu2 }
 0x265   : > { %v3340_v9 = vpop.f32.mrf.mxu1 }
 0x269   : > { %v2112_v23 = vpop.f32.mrf.mxu3 }
 0x26a   : > { %v2256_v24 = vpack.c.bf16 %v2112_v23, %v2112_v23 }
 0x26c   : > { %v2772_v29 = vsel %vm2770_vm1, %v2256_v24, 0  ;;  %v5276_v24 = vld [vmem:[%s6739_s2 + $0x150] sm:$0xff] }
 0x26d   : > { %2777 = vmatpush.bf16.msrb.mxu0 %v2772_v29  ;;  %5298 = vmatpush.bf16.msra.mxu3 %v2772_v29  ;;  %v3343_v21 = vpop.f32.mrf.mxu1  ;;  %v5339_v29 = vld [vmem:[%s5493_s0 + $0x160] sm:$0xff] }
 0x26e   : > { %5062 = vmatmul.msk.bf16.gmra.mxu2 %vm1587_vm0, %v5339_v29 }
 0x270   : > { %5029 = vmatmul.msk.bf16.gmra.mxu1 %vm1587_vm0, %v5338_v57 }
 0x271   : > { %v2114_v53 = vpop.f32.mrf.mxu3  ;;  %2778 = vmatpush.bf16.msrb.mxu0 %v2255_v30  ;;  %5299 = vmatpush.bf16.msra.mxu3 %v2255_v30 }
 0x275   : > { %2779 = vmatpush.bf16.msrb.mxu0 %v2254_v17  ;;  %5300 = vmatpush.bf16.msra.mxu3 %v2254_v17  ;;  %v6157_v54 = vpop.f32.mrf.mxu1 }
 0x279   : > { %2780 = vmatpush.bf16.msrb.mxu0 %v2253_v63  ;;  %5301 = vmatpush.bf16.msra.mxu3 %v2253_v63  ;;  %v3498_v63 = vpop.f32.mrf.mxu2 }
 0x27d   : > { %2781 = vmatpush.bf16.msrb.mxu0 %v2252_v8  ;;  %5302 = vmatpush.bf16.msra.mxu3 %v2252_v8  ;;  %v3348_v0 = vpop.f32.mrf.mxu1 }
 0x27e   : > { %5063 = vmatmul.msk.bf16.gmra.mxu2 %vm1587_vm0, %v5341_v47 }
 0x280   : > { %4938 = vmatmul.msk.bf16.vlgmr.msrb.gmra.mxu0 %vm2577_vm2, %v5234_v32  ;;  %4972 = vmatmul.msk.bf16.vlgmr.msra.gmra.mxu3 %vm2577_vm2, %v5268_v43 }
 0x290   : > { %4939 = vmatmul.msk.bf16.gmra.mxu0 %vm2577_vm2, %v5235_v40  ;;  %4973 = vmatmul.msk.bf16.gmra.mxu3 %vm2577_vm2, %v5269_v41  ;;  %v3500_v41 = vpop.f32.mrf.mxu2 }
 0x291   : > { %5064 = vmatmul.msk.bf16.gmra.mxu2 %vm1587_vm0, %v5343_v6 }
 0x2a0   : > { %4940 = vmatmul.msk.bf16.gmra.mxu0 %vm2577_vm2, %v5236_v36  ;;  %4974 = vmatmul.msk.bf16.gmra.mxu3 %vm2577_vm2, %v5270_v42  ;;  %v5340_v42 = vld [vmem:[%s5493_s0 + $0x60] sm:$0xff] }
 0x2a1   : > { %5030 = vmatmul.msk.bf16.gmra.mxu1 %vm1587_vm0, %v5340_v42  ;;  %v5247_v42 = vld [vmem:[%s6739_s2 + $0x68] sm:$0xff] }
 0x2b0   : > { %4941 = vmatmul.msk.bf16.gmra.mxu0 %vm2577_vm2, %v5237_v37  ;;  %4975 = vmatmul.msk.bf16.gmra.mxu3 %vm2577_vm2, %v5271_v48 }
 0x2c0   : > { %4942 = vmatmul.msk.bf16.gmra.mxu0 %vm2577_vm2, %v5238_v46  ;;  %4976 = vmatmul.msk.bf16.gmra.mxu3 %vm2577_vm2, %v5272_v50 }
 0x2d0   : > { %4943 = vmatmul.msk.bf16.gmra.mxu0 %vm2577_vm2, %v5239_v12  ;;  %4977 = vmatmul.msk.bf16.gmra.mxu3 %vm2577_vm2, %v5273_v55 }
 0x2e0   : > { %4944 = vmatmul.msk.bf16.gmra.mxu0 %vm2577_vm2, %v5240_v51  ;;  %4978 = vmatmul.msk.bf16.gmra.mxu3 %vm2577_vm2, %v5274_v60  ;;  %v6179_v51 = vpop.f32.mrf.mxu1 }
 0x2f0   : > { %4945 = vmatmul.msk.bf16.gmra.mxu0 %vm2577_vm2, %v5241_v56  ;;  %4979 = vmatmul.msk.bf16.gmra.mxu3 %vm2577_vm2, %v5275_v5 }
 0x2fd   : > { %v2783_v14 = vpop.f32.mrf.mxu0 }
 0x2fe   : > { %v3329_v2 = vadd.f32 %v3328_v52, %v2783_v14  ;;  %v3503_v52 = vpop.f32.mrf.mxu2 }
 0x300   : > { %v3652_v3 = vadd.f32 %v6115_v18, %v3329_v2  ;;  %4946 = vmatmul.msk.bf16.gmra.mxu0 %vm2577_vm2, %v5242_v1  ;;  %4980 = vmatmul.msk.bf16.gmra.mxu3 %vm2577_vm2, %v5276_v24 }
 0x302   : > { %v3780_v7 = vmax.f32 %v3652_v3, 0.0  ;;  %v5342_v3 = vld [vmem:[%s5493_s0 + $0x68] sm:$0xff] }
 0x303   : > { %v2953_v53 = vpop.f32.mrf.mxu3  ;;  %5031 = vmatmul.msk.bf16.gmra.mxu1 %vm1587_vm0, %v5342_v3  ;;  %v5248_v3 = vld [vmem:[%s6739_s2 + $0x70] sm:$0xff] }
 0x304   : > { %3908 = vst [vmem:[%s6131_s30] sm:$0xff] %v3780_v7  ;;  %v3499_v40 = vadd.f32 %v3498_v63, %v2953_v53 }
 0x305   : > { %v2785_v8 = vpop.f32.mrf.mxu0 }
 0x306   : > { %v3331_v10 = vadd.f32 %v3330_v35, %v2785_v8  ;;  %v3720_v36 = vadd.f32 %v6115_v18, %v3499_v40  ;;  %v5245_v35 = vld [vmem:[%s6739_s2 + $0x58] sm:$0xff]  ;;  %v3505_v1 = vpop.f32.mrf.mxu2 }
 0x307   : > { %v5345_v40 = vld [vmem:[%s5493_s0 + $0x178] sm:$0xff] }
 0x308   : > { %v3653_v19 = vadd.f32 %v6115_v18, %v3331_v10  ;;  %v3848_v38 = vmax.f32 %v3720_v36, 0.0  ;;  %5065 = vmatmul.msk.bf16.gmra.mxu2 %vm1587_vm0, %v5345_v40 }
 0x30a   : > { %v3781_v20 = vmax.f32 %v3653_v19, 0.0  ;;  %3976 = vst [vmem:[%s6131_s30 + $0x220] sm:$0xff] %v3848_v38 }
 0x30b   : > { %v2955_v43 = vpop.f32.mrf.mxu3 }
 0x30c   : > { %3909 = vst [vmem:[%s6131_s30 + $0x8] sm:$0xff] %v3781_v20  ;;  %v3501_v44 = vadd.f32 %v3500_v41, %v2955_v43 }
 0x30d   : > { %v2788_v26 = vpop.f32.mrf.mxu0 }
 0x30e   : > { %v3334_v22 = vadd.f32 %v3333_v58, %v2788_v26  ;;  %v3721_v46 = vadd.f32 %v6115_v18, %v3501_v44 }
 0x310   : > { %v3654_v23 = vadd.f32 %v6115_v18, %v3334_v22  ;;  %4947 = vmatmul.msk.bf16.gmra.mxu0 %vm2577_vm2, %v5243_v25  ;;  %4981 = vmatmul.msk.bf16.gmra.mxu3 %vm2577_vm2, %v5277_v45  ;;  %v3849_v11 = vmax.f32 %v3721_v46, 0.0  ;;  %v3508_v25 = vpop.f32.mrf.mxu2  ;;  %v5246_v22 = vld [vmem:[%s6739_s2 + $0x60] sm:$0xff] }
 0x312   : > { %v3782_v30 = vmax.f32 %v3654_v23, 0.0  ;;  %3977 = vst [vmem:[%s6131_s30 + $0x228] sm:$0xff] %v3849_v11 }
 0x313   : > { %v2958_v49 = vpop.f32.mrf.mxu3 }
 0x314   : > { %3910 = vst [vmem:[%s6131_s30 + $0x10] sm:$0xff] %v3782_v30  ;;  %v3504_v56 = vadd.f32 %v3503_v52, %v2958_v49 }
 0x315   : > { %v2790_v27 = vpop.f32.mrf.mxu0 }
 0x316   : > { %v3336_v17 = vadd.f32 %v3335_v62, %v2790_v27  ;;  %v3722_v31 = vadd.f32 %v6115_v18, %v3504_v56  ;;  %v3353_v62 = vpop.f32.mrf.mxu1  ;;  %v5347_v56 = vld [vmem:[%s5493_s0 + $0x180] sm:$0xff] }
 0x318   : > { %v3655_v32 = vadd.f32 %v6115_v18, %v3336_v17  ;;  %v3850_v2 = vmax.f32 %v3722_v31, 0.0  ;;  %v3510_v53 = vpop.f32.mrf.mxu2  ;;  %5066 = vmatmul.msk.bf16.gmra.mxu2 %vm1587_vm0, %v5347_v56 }
 0x31a   : > { %v3783_v13 = vmax.f32 %v3655_v32, 0.0  ;;  %3978 = vst [vmem:[%s6131_s30 + $0x230] sm:$0xff] %v3850_v2  ;;  %v5344_v32 = vld [vmem:[%s5493_s0 + $0x70] sm:$0xff] }
 0x31b   : > { %v2960_v59 = vpop.f32.mrf.mxu3  ;;  %5032 = vmatmul.msk.bf16.gmra.mxu1 %vm1587_vm0, %v5344_v32  ;;  %v5249_v32 = vld [vmem:[%s6739_s2 + $0x78] sm:$0xff] }
 0x31c   : > { %3911 = vst [vmem:[%s6131_s30 + $0x18] sm:$0xff] %v3783_v13  ;;  %v3506_v14 = vadd.f32 %v3505_v1, %v2960_v59  ;;  %v5279_v13 = vld [vmem:[%s6739_s2 + $0x168] sm:$0xff] }
 0x31d   : > { %v2793_v33 = vpop.f32.mrf.mxu0 }
 0x31e   : > { %v3339_v34 = vadd.f32 %v3338_v61, %v2793_v33  ;;  %v3723_v5 = vadd.f32 %v6115_v18, %v3506_v14  ;;  %v6202_v20 = vpop.f32.mrf.mxu1 }
 0x320   : > { %v3656_v37 = vadd.f32 %v6115_v18, %v3339_v34  ;;  %4948 = vmatmul.msk.bf16.gmra.mxu0 %vm2577_vm2, %v5244_v39  ;;  %4982 = vmatmul.msk.bf16.gmra.mxu3 %vm2577_vm2, %v5278_v4  ;;  %v3851_v8 = vmax.f32 %v3723_v5, 0.0  ;;  %v3513_v44 = vpop.f32.mrf.mxu2 }
 0x322   : > { %v3784_v48 = vmax.f32 %v3656_v37, 0.0  ;;  %3979 = vst [vmem:[%s6131_s30 + $0x238] sm:$0xff] %v3851_v8 }
 0x323   : > { %v2963_v10 = vpop.f32.mrf.mxu3 }
 0x324   : > { %3912 = vst [vmem:[%s6131_s30 + $0x20] sm:$0xff] %v3784_v48  ;;  %v3509_v23 = vadd.f32 %v3508_v25, %v2963_v10 }
 0x325   : > { %v2795_v12 = vpop.f32.mrf.mxu0 }
 0x326   : > { %v3341_v50 = vadd.f32 %v3340_v9, %v2795_v12  ;;  %v3724_v30 = vadd.f32 %v6115_v18, %v3509_v23  ;;  %v3358_v27 = vpop.f32.mrf.mxu1  ;;  %v5349_v23 = vld [vmem:[%s5493_s0 + $0x188] sm:$0xff] }
 0x328   : > { %v3657_v16 = vadd.f32 %v6115_v18, %v3341_v50  ;;  %v3852_v63 = vmax.f32 %v3724_v30, 0.0  ;;  %v3515_v49 = vpop.f32.mrf.mxu2  ;;  %5067 = vmatmul.msk.bf16.gmra.mxu2 %vm1587_vm0, %v5349_v23 }
 0x32a   : > { %v3785_v55 = vmax.f32 %v3657_v16, 0.0  ;;  %3980 = vst [vmem:[%s6131_s30 + $0x240] sm:$0xff] %v3852_v63  ;;  %v5346_v16 = vld [vmem:[%s5493_s0 + $0x78] sm:$0xff] }
 0x32b   : > { %v2965_v24 = vpop.f32.mrf.mxu3  ;;  %5033 = vmatmul.msk.bf16.gmra.mxu1 %vm1587_vm0, %v5346_v16  ;;  %v5250_v16 = vld [vmem:[%s6739_s2 + $0x80] sm:$0xff] }
 0x32c   : > { %3913 = vst [vmem:[%s6131_s30 + $0x28] sm:$0xff] %v3785_v55  ;;  %v3511_v17 = vadd.f32 %v3510_v53, %v2965_v24  ;;  %v5280_v55 = vld [vmem:[%s6739_s2 + $0x170] sm:$0xff] }
 0x32d   : > { %v2798_v58 = vpop.f32.mrf.mxu0 }
 0x32e   : > { %v3344_v60 = vadd.f32 %v3343_v21, %v2798_v58  ;;  %v3725_v39 = vadd.f32 %v6115_v18, %v3511_v17  ;;  %v6225_v41 = vpop.f32.mrf.mxu1 }
 0x330   : > { %v3658_v61 = vadd.f32 %v6115_v18, %v3344_v60  ;;  %4949 = vmatmul.msk.bf16.gmra.mxu0 %vm2577_vm2, %v5245_v35  ;;  %4983 = vmatmul.msk.bf16.gmra.mxu3 %vm2577_vm2, %v5279_v13  ;;  %v3853_v43 = vmax.f32 %v3725_v39, 0.0  ;;  %v3518_v14 = vpop.f32.mrf.mxu2 }
 0x332   : > { %v3786_v7 = vmax.f32 %v3658_v61, 0.0  ;;  %3981 = vst [vmem:[%s6131_s30 + $0x248] sm:$0xff] %v3853_v43 }
 0x333   : > { %v2968_v36 = vpop.f32.mrf.mxu3 }
 0x334   : > { %3914 = vst [vmem:[%s6131_s30 + $0x30] sm:$0xff] %v3786_v7  ;;  %v3514_v45 = vadd.f32 %v3513_v44, %v2968_v36 }
 0x335   : > { %v2800_v9 = vpop.f32.mrf.mxu0 }
 0x336   : > { %v3346_v19 = vadd.f32 %v6157_v54, %v2800_v9  ;;  %v3726_v11 = vadd.f32 %v6115_v18, %v3514_v45  ;;  %v3363_v12 = vpop.f32.mrf.mxu1  ;;  %v5351_v45 = vld [vmem:[%s5493_s0 + $0x190] sm:$0xff] }
 0x338   : > { %v3659_v26 = vadd.f32 %v6115_v18, %v3346_v19  ;;  %v3854_v52 = vmax.f32 %v3726_v11, 0.0  ;;  %v3520_v10 = vpop.f32.mrf.mxu2  ;;  %5068 = vmatmul.msk.bf16.gmra.mxu2 %vm1587_vm0, %v5351_v45 }
 0x33a   : > { %v3787_v21 = vmax.f32 %v3659_v26, 0.0  ;;  %3982 = vst [vmem:[%s6131_s30 + $0x250] sm:$0xff] %v3854_v52  ;;  %v5348_v26 = vld [vmem:[%s5493_s0 + $0x80] sm:$0xff] }
 0x33b   : > { %v2970_v47 = vpop.f32.mrf.mxu3  ;;  %5034 = vmatmul.msk.bf16.gmra.mxu1 %vm1587_vm0, %v5348_v26  ;;  %v5251_v26 = vld [vmem:[%s6739_s2 + $0x88] sm:$0xff] }
 0x33c   : > { %3915 = vst [vmem:[%s6131_s30 + $0x38] sm:$0xff] %v3787_v21  ;;  %v3516_v50 = vadd.f32 %v3515_v49, %v2970_v47  ;;  %v5281_v21 = vld [vmem:[%s6739_s2 + $0x178] sm:$0xff] }
 0x33d   : > { %v2803_v57 = vpop.f32.mrf.mxu0 }
 0x33e   : > { %v3349_v29 = vadd.f32 %v3348_v0, %v2803_v57  ;;  %v3727_v35 = vadd.f32 %v6115_v18, %v3516_v50  ;;  %v6248_v1 = vpop.f32.mrf.mxu1 }
 0x340   : > { %v3660_v54 = vadd.f32 %v6115_v18, %v3349_v29  ;;  %4950 = vmatmul.msk.bf16.gmra.mxu0 %vm2577_vm2, %v5246_v22  ;;  %4984 = vmatmul.msk.bf16.gmra.mxu3 %vm2577_vm2, %v5280_v55  ;;  %v3855_v59 = vmax.f32 %v3727_v35, 0.0  ;;  %v3523_v17 = vpop.f32.mrf.mxu2 }
 0x342   : > { %v3788_v33 = vmax.f32 %v3660_v54, 0.0  ;;  %3983 = vst [vmem:[%s6131_s30 + $0x258] sm:$0xff] %v3855_v59 }
 0x343   : > { %v2973_v31 = vpop.f32.mrf.mxu3 }
 0x344   : > { %3916 = vst [vmem:[%s6131_s30 + $0x40] sm:$0xff] %v3788_v33  ;;  %v3519_v4 = vadd.f32 %v3518_v14, %v2973_v31 }
 0x345   : > { %v2805_v34 = vpop.f32.mrf.mxu0 }
 0x346   : > { %v3351_v0 = vadd.f32 %v6179_v51, %v2805_v34  ;;  %v3728_v8 = vadd.f32 %v6115_v18, %v3519_v4  ;;  %v3368_v9 = vpop.f32.mrf.mxu1  ;;  %v5353_v4 = vld [vmem:[%s5493_s0 + $0x198] sm:$0xff] }
 0x348   : > { %v3661_v37 = vadd.f32 %v6115_v18, %v3351_v0  ;;  %v3856_v25 = vmax.f32 %v3728_v8, 0.0  ;;  %v3525_v36 = vpop.f32.mrf.mxu2  ;;  %5069 = vmatmul.msk.bf16.gmra.mxu2 %vm1587_vm0, %v5353_v4 }
 0x34a   : > { %v3789_v38 = vmax.f32 %v3661_v37, 0.0  ;;  %3984 = vst [vmem:[%s6131_s30 + $0x260] sm:$0xff] %v3856_v25  ;;  %v5350_v37 = vld [vmem:[%s5493_s0 + $0x88] sm:$0xff] }
 0x34b   : > { %v2975_v6 = vpop.f32.mrf.mxu3  ;;  %5035 = vmatmul.msk.bf16.gmra.mxu1 %vm1587_vm0, %v5350_v37  ;;  %v5252_v37 = vld [vmem:[%s6739_s2 + $0x90] sm:$0xff] }
 0x34c   : > { %3917 = vst [vmem:[%s6131_s30 + $0x48] sm:$0xff] %v3789_v38  ;;  %v3521_v19 = vadd.f32 %v3520_v10, %v2975_v6  ;;  %v5282_v38 = vld [vmem:[%s6739_s2 + $0x180] sm:$0xff] }
 0x34d   : > { %v2808_v46 = vpop.f32.mrf.mxu0 }
 0x34e   : > { %v3354_v48 = vadd.f32 %v3353_v62, %v2808_v46  ;;  %v3729_v22 = vadd.f32 %v6115_v18, %v3521_v19  ;;  %v6271_v53 = vpop.f32.mrf.mxu1 }
 0x350   : > { %v3662_v51 = vadd.f32 %v6115_v18, %v3354_v48  ;;  %4951 = vmatmul.msk.bf16.gmra.mxu0 %vm2577_vm2, %v5247_v42  ;;  %4985 = vmatmul.msk.bf16.gmra.mxu3 %vm2577_vm2, %v5281_v21  ;;  %v3857_v24 = vmax.f32 %v3729_v22, 0.0  ;;  %v3528_v50 = vpop.f32.mrf.mxu2 }
 0x352   : > { %v3790_v58 = vmax.f32 %v3662_v51, 0.0  ;;  %3985 = vst [vmem:[%s6131_s30 + $0x268] sm:$0xff] %v3857_v24 }
 0x353   : > { %v2978_v30 = vpop.f32.mrf.mxu3 }
 0x354   : > { %3918 = vst [vmem:[%s6131_s30 + $0x50] sm:$0xff] %v3790_v58  ;;  %v3524_v13 = vadd.f32 %v3523_v17, %v2978_v30 }
 0x355   : > { %v2810_v60 = vpop.f32.mrf.mxu0 }
 0x356   : > { %v3356_v62 = vadd.f32 %v6202_v20, %v2810_v60  ;;  %v3730_v43 = vadd.f32 %v6115_v18, %v3524_v13  ;;  %v3373_v34 = vpop.f32.mrf.mxu1  ;;  %v5355_v13 = vld [vmem:[%s5493_s0 + $0x1a0] sm:$0xff] }
 0x358   : > { %v3663_v61 = vadd.f32 %v6115_v18, %v3356_v62  ;;  %v3858_v44 = vmax.f32 %v3730_v43, 0.0  ;;  %v3530_v31 = vpop.f32.mrf.mxu2  ;;  %5070 = vmatmul.msk.bf16.gmra.mxu2 %vm1587_vm0, %v5355_v13 }
 0x35a   : > { %v3791_v2 = vmax.f32 %v3663_v61, 0.0  ;;  %3986 = vst [vmem:[%s6131_s30 + $0x270] sm:$0xff] %v3858_v44  ;;  %v5352_v61 = vld [vmem:[%s5493_s0 + $0x90] sm:$0xff] }
 0x35b   : > { %v2980_v40 = vpop.f32.mrf.mxu3  ;;  %5036 = vmatmul.msk.bf16.gmra.mxu1 %vm1587_vm0, %v5352_v61  ;;  %v5253_v61 = vld [vmem:[%s6739_s2 + $0x98] sm:$0xff] }
 0x35c   : > { %3919 = vst [vmem:[%s6131_s30 + $0x58] sm:$0xff] %v3791_v2  ;;  %v3526_v0 = vadd.f32 %v3525_v36, %v2980_v40  ;;  %v5283_v2 = vld [vmem:[%s6739_s2 + $0x188] sm:$0xff] }
 0x35d   : > { %v2813_v5 = vpop.f32.mrf.mxu0 }
 0x35e   : > { %v3359_v7 = vadd.f32 %v3358_v27, %v2813_v5  ;;  %v3731_v42 = vadd.f32 %v6115_v18, %v3526_v0  ;;  %v6294_v49 = vpop.f32.mrf.mxu1 }
 0x360   : > { %v3664_v20 = vadd.f32 %v6115_v18, %v3359_v7  ;;  %4952 = vmatmul.msk.bf16.gmra.mxu0 %vm2577_vm2, %v5248_v3  ;;  %4986 = vmatmul.msk.bf16.gmra.mxu3 %vm2577_vm2, %v5282_v38  ;;  %v3859_v47 = vmax.f32 %v3731_v42, 0.0  ;;  %v3533_v19 = vpop.f32.mrf.mxu2 }
 0x362   : > { %v3792_v57 = vmax.f32 %v3664_v20, 0.0  ;;  %3987 = vst [vmem:[%s6131_s30 + $0x278] sm:$0xff] %v3859_v47 }
 0x363   : > { %v2983_v11 = vpop.f32.mrf.mxu3 }
 0x364   : > { %3920 = vst [vmem:[%s6131_s30 + $0x60] sm:$0xff] %v3792_v57  ;;  %v3529_v55 = vadd.f32 %v3528_v50, %v2983_v11 }
 0x365   : > { %v2815_v29 = vpop.f32.mrf.mxu0 }
 0x366   : > { %v3361_v27 = vadd.f32 %v6225_v41, %v2815_v29  ;;  %v3732_v59 = vadd.f32 %v6115_v18, %v3529_v55  ;;  %v3378_v60 = vpop.f32.mrf.mxu1  ;;  %v5357_v55 = vld [vmem:[%s5493_s0 + $0x1a8] sm:$0xff] }
 0x368   : > { %v3665_v54 = vadd.f32 %v6115_v18, %v3361_v27  ;;  %v3860_v14 = vmax.f32 %v3732_v59, 0.0  ;;  %v3535_v30 = vpop.f32.mrf.mxu2  ;;  %5071 = vmatmul.msk.bf16.gmra.mxu2 %vm1587_vm0, %v5357_v55 }
 0x36a   : > { %v3793_v63 = vmax.f32 %v3665_v54, 0.0  ;;  %3988 = vst [vmem:[%s6131_s30 + $0x280] sm:$0xff] %v3860_v14  ;;  %v5354_v54 = vld [vmem:[%s5493_s0 + $0x98] sm:$0xff] }
 0x36b   : > { %v2985_v56 = vpop.f32.mrf.mxu3  ;;  %5037 = vmatmul.msk.bf16.gmra.mxu1 %vm1587_vm0, %v5354_v54  ;;  %v5254_v54 = vld [vmem:[%s6739_s2 + $0xa0] sm:$0xff] }
 0x36c   : > { %3921 = vst [vmem:[%s6131_s30 + $0x68] sm:$0xff] %v3793_v63  ;;  %v3531_v62 = vadd.f32 %v3530_v31, %v2985_v56  ;;  %v5284_v63 = vld [vmem:[%s6739_s2 + $0x190] sm:$0xff] }
 0x36d   : > { %v2818_v39 = vpop.f32.mrf.mxu0 }
 0x36e   : > { %v3364_v33 = vadd.f32 %v3363_v12, %v2818_v39  ;;  %v3733_v3 = vadd.f32 %v6115_v18, %v3531_v62  ;;  %v6317_v10 = vpop.f32.mrf.mxu1 }
 0x370   : > { %v3666_v41 = vadd.f32 %v6115_v18, %v3364_v33  ;;  %4953 = vmatmul.msk.bf16.gmra.mxu0 %vm2577_vm2, %v5249_v32  ;;  %4987 = vmatmul.msk.bf16.gmra.mxu3 %vm2577_vm2, %v5283_v2  ;;  %v3861_v6 = vmax.f32 %v3733_v3, 0.0  ;;  %v3538_v0 = vpop.f32.mrf.mxu2 }
 0x372   : > { %v3794_v46 = vmax.f32 %v3666_v41, 0.0  ;;  %3989 = vst [vmem:[%s6131_s30 + $0x288] sm:$0xff] %v3861_v6 }
 0x373   : > { %v2988_v8 = vpop.f32.mrf.mxu3 }
 0x374   : > { %3922 = vst [vmem:[%s6131_s30 + $0x70] sm:$0xff] %v3794_v46  ;;  %v3534_v21 = vadd.f32 %v3533_v19, %v2988_v8 }
 0x375   : > { %v2820_v48 = vpop.f32.mrf.mxu0 }
 0x376   : > { %v3366_v12 = vadd.f32 %v6248_v1, %v2820_v48  ;;  %v3734_v24 = vadd.f32 %v6115_v18, %v3534_v21  ;;  %v3383_v29 = vpop.f32.mrf.mxu1  ;;  %v5359_v21 = vld [vmem:[%s5493_s0 + $0x1b0] sm:$0xff] }
 0x378   : > { %v3667_v51 = vadd.f32 %v6115_v18, %v3366_v12  ;;  %v3862_v17 = vmax.f32 %v3734_v24, 0.0  ;;  %v3540_v11 = vpop.f32.mrf.mxu2  ;;  %5072 = vmatmul.msk.bf16.gmra.mxu2 %vm1587_vm0, %v5359_v21 }
 0x37a   : > { %v3795_v52 = vmax.f32 %v3667_v51, 0.0  ;;  %3990 = vst [vmem:[%s6131_s30 + $0x290] sm:$0xff] %v3862_v17  ;;  %v5356_v51 = vld [vmem:[%s5493_s0 + $0xa0] sm:$0xff] }
 0x37b   : > { %v2990_v23 = vpop.f32.mrf.mxu3  ;;  %5038 = vmatmul.msk.bf16.gmra.mxu1 %vm1587_vm0, %v5356_v51  ;;  %v5255_v51 = vld [vmem:[%s6739_s2 + $0xa8] sm:$0xff] }
 0x37c   : > { %3923 = vst [vmem:[%s6131_s30 + $0x78] sm:$0xff] %v3795_v52  ;;  %v3536_v27 = vadd.f32 %v3535_v30, %v2990_v23  ;;  %v5285_v52 = vld [vmem:[%s6739_s2 + $0x198] sm:$0xff] }
 0x37d   : > { %v2823_v35 = vpop.f32.mrf.mxu0 }
 0x37e   : > { %v3369_v58 = vadd.f32 %v3368_v9, %v2823_v35  ;;  %v3735_v32 = vadd.f32 %v6115_v18, %v3536_v27  ;;  %v6340_v36 = vpop.f32.mrf.mxu1 }
 0x380   : > { %v3668_v1 = vadd.f32 %v6115_v18, %v3369_v58  ;;  %4954 = vmatmul.msk.bf16.gmra.mxu0 %vm2577_vm2, %v5250_v16  ;;  %4988 = vmatmul.msk.bf16.gmra.mxu3 %vm2577_vm2, %v5284_v63  ;;  %v3863_v40 = vmax.f32 %v3735_v32, 0.0  ;;  %v3543_v62 = vpop.f32.mrf.mxu2 }
 0x382   : > { %v3796_v5 = vmax.f32 %v3668_v1, 0.0  ;;  %3991 = vst [vmem:[%s6131_s30 + $0x298] sm:$0xff] %v3863_v40 }
 0x383   : > { %v2993_v43 = vpop.f32.mrf.mxu3 }
 0x384   : > { %3924 = vst [vmem:[%s6131_s30 + $0x80] sm:$0xff] %v3796_v5  ;;  %v3539_v38 = vadd.f32 %v3538_v0, %v2993_v43 }
 0x385   : > { %v2825_v7 = vpop.f32.mrf.mxu0 }
 0x386   : > { %v3371_v9 = vadd.f32 %v6271_v53, %v2825_v7  ;;  %v3736_v47 = vadd.f32 %v6115_v18, %v3539_v38  ;;  %v3388_v48 = vpop.f32.mrf.mxu1  ;;  %v5361_v38 = vld [vmem:[%s5493_s0 + $0x1b8] sm:$0xff] }
 0x388   : > { %v3669_v20 = vadd.f32 %v6115_v18, %v3371_v9  ;;  %v3864_v50 = vmax.f32 %v3736_v47, 0.0  ;;  %v3545_v8 = vpop.f32.mrf.mxu2  ;;  %5073 = vmatmul.msk.bf16.gmra.mxu2 %vm1587_vm0, %v5361_v38 }
 0x38a   : > { %v3797_v25 = vmax.f32 %v3669_v20, 0.0  ;;  %3992 = vst [vmem:[%s6131_s30 + $0x2a0] sm:$0xff] %v3864_v50  ;;  %v5358_v20 = vld [vmem:[%s5493_s0 + $0xa8] sm:$0xff] }
 0x38b   : > { %v2995_v45 = vpop.f32.mrf.mxu3  ;;  %5039 = vmatmul.msk.bf16.gmra.mxu1 %vm1587_vm0, %v5358_v20  ;;  %v5256_v20 = vld [vmem:[%s6739_s2 + $0xb0] sm:$0xff] }
 0x38c   : > { %3925 = vst [vmem:[%s6131_s30 + $0x88] sm:$0xff] %v3797_v25  ;;  %v3541_v12 = vadd.f32 %v3540_v11, %v2995_v45  ;;  %v5286_v25 = vld [vmem:[%s6739_s2 + $0x1a0] sm:$0xff] }
 0x38d   : > { %v2828_v22 = vpop.f32.mrf.mxu0 }
 0x38e   : > { %v3374_v57 = vadd.f32 %v3373_v34, %v2828_v22  ;;  %v3737_v16 = vadd.f32 %v6115_v18, %v3541_v12  ;;  %v6363_v31 = vpop.f32.mrf.mxu1 }
 0x390   : > { %v3670_v53 = vadd.f32 %v6115_v18, %v3374_v57  ;;  %4955 = vmatmul.msk.bf16.gmra.mxu0 %vm2577_vm2, %v5251_v26  ;;  %4989 = vmatmul.msk.bf16.gmra.mxu3 %vm2577_vm2, %v5285_v52  ;;  %v3865_v56 = vmax.f32 %v3737_v16, 0.0  ;;  %v3548_v27 = vpop.f32.mrf.mxu2 }
 0x392   : > { %v3798_v39 = vmax.f32 %v3670_v53, 0.0  ;;  %3993 = vst [vmem:[%s6131_s30 + $0x2a8] sm:$0xff] %v3865_v56 }
 0x393   : > { %v2998_v59 = vpop.f32.mrf.mxu3 }
 0x394   : > { %3926 = vst [vmem:[%s6131_s30 + $0x90] sm:$0xff] %v3798_v39  ;;  %v3544_v2 = vadd.f32 %v3543_v62, %v2998_v59 }
 0x395   : > { %v2830_v33 = vpop.f32.mrf.mxu0 }
 0x396   : > { %v3376_v34 = vadd.f32 %v6294_v49, %v2830_v33  ;;  %v3738_v6 = vadd.f32 %v6115_v18, %v3544_v2  ;;  %v3393_v7 = vpop.f32.mrf.mxu1  ;;  %v5363_v2 = vld [vmem:[%s5493_s0 + $0x1c0] sm:$0xff] }
 0x398   : > { %v3671_v41 = vadd.f32 %v6115_v18, %v3376_v34  ;;  %v3866_v19 = vmax.f32 %v3738_v6, 0.0  ;;  %v3550_v43 = vpop.f32.mrf.mxu2  ;;  %5074 = vmatmul.msk.bf16.gmra.mxu2 %vm1587_vm0, %v5363_v2 }
 0x39a   : > { %v3799_v44 = vmax.f32 %v3671_v41, 0.0  ;;  %3994 = vst [vmem:[%s6131_s30 + $0x2b0] sm:$0xff] %v3866_v19  ;;  %v5360_v41 = vld [vmem:[%s5493_s0 + $0xb0] sm:$0xff] }
 0x39b   : > { %v3000_v4 = vpop.f32.mrf.mxu3  ;;  %5040 = vmatmul.msk.bf16.gmra.mxu1 %vm1587_vm0, %v5360_v41  ;;  %v5257_v41 = vld [vmem:[%s6739_s2 + $0xb8] sm:$0xff] }
 0x39c   : > { %3927 = vst [vmem:[%s6131_s30 + $0x98] sm:$0xff] %v3799_v44  ;;  %v3546_v9 = vadd.f32 %v3545_v8, %v3000_v4  ;;  %v5287_v44 = vld [vmem:[%s6739_s2 + $0x1a8] sm:$0xff] }
 0x39d   : > { %v2833_v42 = vpop.f32.mrf.mxu0 }
 0x39e   : > { %v3379_v46 = vadd.f32 %v3378_v60, %v2833_v42  ;;  %v3739_v26 = vadd.f32 %v6115_v18, %v3546_v9  ;;  %v6386_v30 = vpop.f32.mrf.mxu1 }
 0x3a0   : > { %v3672_v49 = vadd.f32 %v6115_v18, %v3379_v46  ;;  %4956 = vmatmul.msk.bf16.gmra.mxu0 %vm2577_vm2, %v5252_v37  ;;  %4990 = vmatmul.msk.bf16.gmra.mxu3 %vm2577_vm2, %v5286_v25  ;;  %v3867_v23 = vmax.f32 %v3739_v26, 0.0  ;;  %v3553_v12 = vpop.f32.mrf.mxu2 }
 0x3a2   : > { %v3800_v35 = vmax.f32 %v3672_v49, 0.0  ;;  %3995 = vst [vmem:[%s6131_s30 + $0x2b8] sm:$0xff] %v3867_v23 }
 0x3a3   : > { %v3003_v24 = vpop.f32.mrf.mxu3 }
 0x3a4   : > { %3928 = vst [vmem:[%s6131_s30 + $0xa0] sm:$0xff] %v3800_v35  ;;  %v3549_v63 = vadd.f32 %v3548_v27, %v3003_v24 }
 0x3a5   : > { %v2835_v58 = vpop.f32.mrf.mxu0 }
 0x3a6   : > { %v3381_v60 = vadd.f32 %v6317_v10, %v2835_v58  ;;  %v3740_v40 = vadd.f32 %v6115_v18, %v3549_v63  ;;  %v3398_v33 = vpop.f32.mrf.mxu1  ;;  %v5365_v63 = vld [vmem:[%s5493_s0 + $0x1c8] sm:$0xff] }
 0x3a8   : > { %v3673_v1 = vadd.f32 %v6115_v18, %v3381_v60  ;;  %v3868_v0 = vmax.f32 %v3740_v40, 0.0  ;;  %v3555_v59 = vpop.f32.mrf.mxu2  ;;  %5075 = vmatmul.msk.bf16.gmra.mxu2 %vm1587_vm0, %v5365_v63 }
 0x3aa   : > { %v3801_v14 = vmax.f32 %v3673_v1, 0.0  ;;  %3996 = vst [vmem:[%s6131_s30 + $0x2c0] sm:$0xff] %v3868_v0  ;;  %v5362_v1 = vld [vmem:[%s5493_s0 + $0xb8] sm:$0xff] }
 0x3ab   : > { %v3005_v13 = vpop.f32.mrf.mxu3  ;;  %5041 = vmatmul.msk.bf16.gmra.mxu1 %vm1587_vm0, %v5362_v1  ;;  %v5258_v1 = vld [vmem:[%s6739_s2 + $0xc0] sm:$0xff] }
 0x3ac   : > { %3929 = vst [vmem:[%s6131_s30 + $0xa8] sm:$0xff] %v3801_v14  ;;  %v3551_v34 = vadd.f32 %v3550_v43, %v3005_v13  ;;  %v5288_v14 = vld [vmem:[%s6739_s2 + $0x1b0] sm:$0xff] }
 0x3ad   : > { %v2838_v3 = vpop.f32.mrf.mxu0 }
 0x3ae   : > { %v3384_v5 = vadd.f32 %v3383_v29, %v2838_v3  ;;  %v3741_v37 = vadd.f32 %v6115_v18, %v3551_v34  ;;  %v6409_v11 = vpop.f32.mrf.mxu1 }
 0x3b0   : > { %v3674_v10 = vadd.f32 %v6115_v18, %v3384_v5  ;;  %4957 = vmatmul.msk.bf16.gmra.mxu0 %vm2577_vm2, %v5253_v61  ;;  %4991 = vmatmul.msk.bf16.gmra.mxu3 %vm2577_vm2, %v5287_v44  ;;  %v3869_v45 = vmax.f32 %v3741_v37, 0.0  ;;  %v3558_v9 = vpop.f32.mrf.mxu2 }
 0x3b2   : > { %v3802_v22 = vmax.f32 %v3674_v10, 0.0  ;;  %3997 = vst [vmem:[%s6131_s30 + $0x2c8] sm:$0xff] %v3869_v45 }
 0x3b3   : > { %v3008_v47 = vpop.f32.mrf.mxu3 }
 0x3b4   : > { %3930 = vst [vmem:[%s6131_s30 + $0xb0] sm:$0xff] %v3802_v22  ;;  %v3554_v52 = vadd.f32 %v3553_v12, %v3008_v47 }
 0x3b5   : > { %v2840_v57 = vpop.f32.mrf.mxu0 }
 0x3b6   : > { %v3386_v29 = vadd.f32 %v6340_v36, %v2840_v57  ;;  %v3742_v56 = vadd.f32 %v6115_v18, %v3554_v52  ;;  %v3403_v58 = vpop.f32.mrf.mxu1  ;;  %v5367_v52 = vld [vmem:[%s5493_s0 + $0x1d0] sm:$0xff] }
 0x3b8   : > { %v3675_v53 = vadd.f32 %v6115_v18, %v3386_v29  ;;  %v3870_v62 = vmax.f32 %v3742_v56, 0.0  ;;  %v3560_v24 = vpop.f32.mrf.mxu2  ;;  %5076 = vmatmul.msk.bf16.gmra.mxu2 %vm1587_vm0, %v5367_v52 }
 0x3ba   : > { %v3803_v17 = vmax.f32 %v3675_v53, 0.0  ;;  %3998 = vst [vmem:[%s6131_s30 + $0x2d0] sm:$0xff] %v3870_v62  ;;  %v5364_v53 = vld [vmem:[%s5493_s0 + $0xc0] sm:$0xff] }
 0x3bb   : > { %v3010_v55 = vpop.f32.mrf.mxu3  ;;  %5042 = vmatmul.msk.bf16.gmra.mxu1 %vm1587_vm0, %v5364_v53  ;;  %v5259_v53 = vld [vmem:[%s6739_s2 + $0xc8] sm:$0xff] }
 0x3bc   : > { %3931 = vst [vmem:[%s6131_s30 + $0xb8] sm:$0xff] %v3803_v17  ;;  %v3556_v60 = vadd.f32 %v3555_v59, %v3010_v55  ;;  %v5289_v17 = vld [vmem:[%s6739_s2 + $0x1b8] sm:$0xff] }
 0x3bd   : > { %v2843_v32 = vpop.f32.mrf.mxu0 }
 0x3be   : > { %v3389_v39 = vadd.f32 %v3388_v48, %v2843_v32  ;;  %v3743_v61 = vadd.f32 %v6115_v18, %v3556_v60  ;;  %v6432_v8 = vpop.f32.mrf.mxu1 }
 0x3c0   : > { %v3676_v36 = vadd.f32 %v6115_v18, %v3389_v39  ;;  %4958 = vmatmul.msk.bf16.gmra.mxu0 %vm2577_vm2, %v5254_v54  ;;  %4992 = vmatmul.msk.bf16.gmra.mxu3 %vm2577_vm2, %v5288_v14  ;;  %v3871_v4 = vmax.f32 %v3743_v61, 0.0  ;;  %v3563_v34 = vpop.f32.mrf.mxu2 }
 0x3c2   : > { %v3804_v42 = vmax.f32 %v3676_v36, 0.0  ;;  %3999 = vst [vmem:[%s6131_s30 + $0x2d8] sm:$0xff] %v3871_v4 }
 0x3c3   : > { %v3013_v6 = vpop.f32.mrf.mxu3 }
 0x3c4   : > { %3932 = vst [vmem:[%s6131_s30 + $0xc0] sm:$0xff] %v3804_v42  ;;  %v3559_v25 = vadd.f32 %v3558_v9, %v3013_v6 }
 0x3c5   : > { %v2845_v46 = vpop.f32.mrf.mxu0 }
 0x3c6   : > { %v3391_v48 = vadd.f32 %v6363_v31, %v2845_v46  ;;  %v3744_v23 = vadd.f32 %v6115_v18, %v3559_v25  ;;  %v3408_v57 = vpop.f32.mrf.mxu1  ;;  %v5369_v25 = vld [vmem:[%s5493_s0 + $0x1d8] sm:$0xff] }
 0x3c8   : > { %v3677_v49 = vadd.f32 %v6115_v18, %v3391_v48  ;;  %v3872_v27 = vmax.f32 %v3744_v23, 0.0  ;;  %v3565_v47 = vpop.f32.mrf.mxu2  ;;  %5077 = vmatmul.msk.bf16.gmra.mxu2 %vm1587_vm0, %v5369_v25 }
 0x3ca   : > { %v3805_v50 = vmax.f32 %v3677_v49, 0.0  ;;  %4000 = vst [vmem:[%s6131_s30 + $0x2e0] sm:$0xff] %v3872_v27  ;;  %v5366_v49 = vld [vmem:[%s5493_s0 + $0xc8] sm:$0xff] }
 0x3cb   : > { %v3015_v21 = vpop.f32.mrf.mxu3  ;;  %5043 = vmatmul.msk.bf16.gmra.mxu1 %vm1587_vm0, %v5366_v49  ;;  %v5260_v49 = vld [vmem:[%s6739_s2 + $0xd0] sm:$0xff] }
 0x3cc   : > { %3933 = vst [vmem:[%s6131_s30 + $0xc8] sm:$0xff] %v3805_v50  ;;  %v3561_v29 = vadd.f32 %v3560_v24, %v3015_v21  ;;  %v5290_v50 = vld [vmem:[%s6739_s2 + $0x1c0] sm:$0xff] }
 0x3cd   : > { %v2848_v16 = vpop.f32.mrf.mxu0 }
 0x3ce   : > { %v3394_v35 = vadd.f32 %v3393_v7, %v2848_v16  ;;  %v3745_v54 = vadd.f32 %v6115_v18, %v3561_v29  ;;  %v6455_v43 = vpop.f32.mrf.mxu1 }
 0x3d0   : > { %v3678_v31 = vadd.f32 %v6115_v18, %v3394_v35  ;;  %4959 = vmatmul.msk.bf16.gmra.mxu0 %vm2577_vm2, %v5255_v51  ;;  %4993 = vmatmul.msk.bf16.gmra.mxu3 %vm2577_vm2, %v5289_v17  ;;  %v3873_v13 = vmax.f32 %v3745_v54, 0.0  ;;  %v3568_v60 = vpop.f32.mrf.mxu2 }
 0x3d2   : > { %v3806_v3 = vmax.f32 %v3678_v31, 0.0  ;;  %4001 = vst [vmem:[%s6131_s30 + $0x2e8] sm:$0xff] %v3873_v13 }
 0x3d3   : > { %v3018_v40 = vpop.f32.mrf.mxu3 }
 0x3d4   : > { %3934 = vst [vmem:[%s6131_s30 + $0xd0] sm:$0xff] %v3806_v3  ;;  %v3564_v44 = vadd.f32 %v3563_v34, %v3018_v40 }
 0x3d5   : > { %v2850_v5 = vpop.f32.mrf.mxu0 }
 0x3d6   : > { %v3396_v7 = vadd.f32 %v6386_v30, %v2850_v5  ;;  %v3746_v45 = vadd.f32 %v6115_v18, %v3564_v44  ;;  %v3413_v46 = vpop.f32.mrf.mxu1  ;;  %v5371_v44 = vld [vmem:[%s5493_s0 + $0x1e0] sm:$0xff] }
 0x3d8   : > { %v3679_v10 = vadd.f32 %v6115_v18, %v3396_v7  ;;  %v3874_v12 = vmax.f32 %v3746_v45, 0.0  ;;  %v3570_v6 = vpop.f32.mrf.mxu2  ;;  %5078 = vmatmul.msk.bf16.gmra.mxu2 %vm1587_vm0, %v5371_v44 }
 0x3da   : > { %v3807_v19 = vmax.f32 %v3679_v10, 0.0  ;;  %4002 = vst [vmem:[%s6131_s30 + $0x2f0] sm:$0xff] %v3874_v12  ;;  %v5368_v10 = vld [vmem:[%s5493_s0 + $0xd0] sm:$0xff] }
 0x3db   : > { %v3020_v38 = vpop.f32.mrf.mxu3  ;;  %5044 = vmatmul.msk.bf16.gmra.mxu1 %vm1587_vm0, %v5368_v10  ;;  %v5261_v10 = vld [vmem:[%s6739_s2 + $0xd8] sm:$0xff] }
 0x3dc   : > { %3935 = vst [vmem:[%s6131_s30 + $0xd8] sm:$0xff] %v3807_v19  ;;  %v3566_v48 = vadd.f32 %v3565_v47, %v3020_v38  ;;  %v5291_v19 = vld [vmem:[%s6739_s2 + $0x1c8] sm:$0xff] }
 0x3dd   : > { %v2853_v26 = vpop.f32.mrf.mxu0 }
 0x3de   : > { %v3399_v22 = vadd.f32 %v3398_v33, %v2853_v26  ;;  %v3747_v51 = vadd.f32 %v6115_v18, %v3566_v48  ;;  %v6478_v59 = vpop.f32.mrf.mxu1 }
 0x3e0   : > { %v3680_v30 = vadd.f32 %v6115_v18, %v3399_v22  ;;  %4960 = vmatmul.msk.bf16.gmra.mxu0 %vm2577_vm2, %v5256_v20  ;;  %4994 = vmatmul.msk.bf16.gmra.mxu3 %vm2577_vm2, %v5290_v50  ;;  %v3875_v55 = vmax.f32 %v3747_v51, 0.0  ;;  %v3573_v29 = vpop.f32.mrf.mxu2 }
 0x3e2   : > { %v3808_v32 = vmax.f32 %v3680_v30, 0.0  ;;  %4003 = vst [vmem:[%s6131_s30 + $0x2f8] sm:$0xff] %v3875_v55 }
 0x3e3   : > { %v3023_v56 = vpop.f32.mrf.mxu3 }
 0x3e4   : > { %3936 = vst [vmem:[%s6131_s30 + $0xe0] sm:$0xff] %v3808_v32  ;;  %v3569_v14 = vadd.f32 %v3568_v60, %v3023_v56 }
 0x3e5   : > { %v2855_v39 = vpop.f32.mrf.mxu0 }
 0x3e6   : > { %v3401_v33 = vadd.f32 %v6409_v11, %v2855_v39  ;;  %v3748_v4 = vadd.f32 %v6115_v18, %v3569_v14  ;;  %v6486_v5 = vpop.f32.mrf.mxu1  ;;  %v5374_v14 = vld [vmem:[%s5493_s0 + $0x1e8] sm:$0xff] }
 0x3e8   : > { %v3681_v36 = vadd.f32 %v6115_v18, %v3401_v33  ;;  %v3876_v9 = vmax.f32 %v3748_v4, 0.0  ;;  %v3575_v40 = vpop.f32.mrf.mxu2  ;;  %5079 = vmatmul.msk.bf16.gmra.mxu2 %vm1587_vm0, %v5374_v14 }
 0x3ea   : > { %v3809_v0 = vmax.f32 %v3681_v36, 0.0  ;;  %4004 = vst [vmem:[%s6131_s30 + $0x300] sm:$0xff] %v3876_v9  ;;  %v5370_v36 = vld [vmem:[%s5493_s0 + $0xd8] sm:$0xff] }
 0x3eb   : > { %v3025_v2 = vpop.f32.mrf.mxu3  ;;  %5045 = vmatmul.msk.bf16.gmra.mxu1 %vm1587_vm0, %v5370_v36  ;;  %v5262_v36 = vld [vmem:[%s6739_s2 + $0xe0] sm:$0xff] }
 0x3ec   : > { %3937 = vst [vmem:[%s6131_s30 + $0xe8] sm:$0xff] %v3809_v0  ;;  %v3571_v7 = vadd.f32 %v3570_v6, %v3025_v2  ;;  %v5292_v0 = vld [vmem:[%s6739_s2 + $0x1d0] sm:$0xff] }
 0x3ed   : > { %v2858_v37 = vpop.f32.mrf.mxu0 }
 0x3ee   : > { %v3404_v42 = vadd.f32 %v3403_v58, %v2858_v37  ;;  %v3749_v20 = vadd.f32 %v6115_v18, %v3571_v7  ;;  %v6503_v24 = vpop.f32.mrf.mxu1 }
 0x3f0   : > { %v3682_v11 = vadd.f32 %v6115_v18, %v3404_v42  ;;  %4961 = vmatmul.msk.bf16.gmra.mxu0 %vm2577_vm2, %v5257_v41  ;;  %4995 = vmatmul.msk.bf16.gmra.mxu3 %vm2577_vm2, %v5291_v19  ;;  %v3877_v21 = vmax.f32 %v3749_v20, 0.0  ;;  %v3578_v48 = vpop.f32.mrf.mxu2 }
 0x3f2   : > { %v3810_v16 = vmax.f32 %v3682_v11, 0.0  ;;  %4005 = vst [vmem:[%s6131_s30 + $0x308] sm:$0xff] %v3877_v21 }
 0x3f3   : > { %v3028_v23 = vpop.f32.mrf.mxu3 }
 0x3f4   : > { %3938 = vst [vmem:[%s6131_s30 + $0xf0] sm:$0xff] %v3810_v16  ;;  %v3574_v17 = vadd.f32 %v3573_v29, %v3028_v23 }
 0x3f5   : > { %v2860_v35 = vpop.f32.mrf.mxu0 }
 0x3f6   : > { %v3406_v58 = vadd.f32 %v6432_v8, %v2860_v35  ;;  %v3750_v13 = vadd.f32 %v6115_v18, %v3574_v17  ;;  %v6511_v39 = vpop.f32.mrf.mxu1  ;;  %v5376_v17 = vld [vmem:[%s5493_s0 + $0x1f0] sm:$0xff] }
 0x3f8   : > { %v3683_v31 = vadd.f32 %v6115_v18, %v3406_v58  ;;  %v3878_v34 = vmax.f32 %v3750_v13, 0.0  ;;  %v3580_v56 = vpop.f32.mrf.mxu2  ;;  %5080 = vmatmul.msk.bf16.gmra.mxu2 %vm1587_vm0, %v5376_v17 }
 0x3fa   : > { %v3811_v62 = vmax.f32 %v3683_v31, 0.0  ;;  %4006 = vst [vmem:[%s6131_s30 + $0x310] sm:$0xff] %v3878_v34  ;;  %v5373_v31 = vld [vmem:[%s5493_s0 + $0xe0] sm:$0xff] }
 0x3fb   : > { %v3030_v63 = vpop.f32.mrf.mxu3  ;;  %5046 = vmatmul.msk.bf16.gmra.mxu1 %vm1587_vm0, %v5373_v31  ;;  %v5263_v31 = vld [vmem:[%s6739_s2 + $0xe8] sm:$0xff] }
 0x3fc   : > { %3939 = vst [vmem:[%s6131_s30 + $0xf8] sm:$0xff] %v3811_v62  ;;  %v3576_v33 = vadd.f32 %v3575_v40, %v3030_v63  ;;  %v5293_v62 = vld [vmem:[%s6739_s2 + $0x1d8] sm:$0xff] }
 0x3fd   : > { %v2863_v61 = vpop.f32.mrf.mxu0 }
 0x3fe   : > { %v3409_v3 = vadd.f32 %v3408_v57, %v2863_v61  ;;  %v3751_v41 = vadd.f32 %v6115_v18, %v3576_v33  ;;  %v6528_v47 = vpop.f32.mrf.mxu1 }
 0x400   : > { %v3684_v8 = vadd.f32 %v6115_v18, %v3409_v3  ;;  %4962 = vmatmul.msk.bf16.gmra.mxu0 %vm2577_vm2, %v5258_v1  ;;  %4996 = vmatmul.msk.bf16.gmra.mxu3 %vm2577_vm2, %v5292_v0  ;;  %v3879_v38 = vmax.f32 %v3751_v41, 0.0  ;;  %v3583_v7 = vpop.f32.mrf.mxu2 }
 0x402   : > { %v3812_v26 = vmax.f32 %v3684_v8, 0.0  ;;  %4007 = vst [vmem:[%s6131_s30 + $0x318] sm:$0xff] %v3879_v38 }
 0x403   : > { %v3033_v45 = vpop.f32.mrf.mxu3 }
 0x404   : > { %3940 = vst [vmem:[%s6131_s30 + $0x100] sm:$0xff] %v3812_v26  ;;  %v3579_v50 = vadd.f32 %v3578_v48, %v3033_v45 }
 0x405   : > { %v2865_v22 = vpop.f32.mrf.mxu0 }
 0x406   : > { %v3411_v57 = vadd.f32 %v6455_v43, %v2865_v22  ;;  %v3428_v35 = vpop.f32.mrf.mxu1 }
 0x408   : > { %v3685_v30 = vadd.f32 %v6115_v18, %v3411_v57  ;;  %v3585_v23 = vpop.f32.mrf.mxu2 }
 0x40a   : > { %v3813_v27 = vmax.f32 %v3685_v30, 0.0  ;;  %v5375_v30 = vld [vmem:[%s5493_s0 + $0xe8] sm:$0xff] }
 0x40b   : > { %v3035_v52 = vpop.f32.mrf.mxu3  ;;  %5047 = vmatmul.msk.bf16.gmra.mxu1 %vm1587_vm0, %v5375_v30 }
 0x40c   : > { %3941 = vst [vmem:[%s6131_s30 + $0x108] sm:$0xff] %v3813_v27  ;;  %v3581_v58 = vadd.f32 %v3580_v56, %v3035_v52  ;;  %v5294_v27 = vld [vmem:[%s6739_s2 + $0x1e0] sm:$0xff] }
 0x40d   : > { %v2868_v54 = vpop.f32.mrf.mxu0 }
 0x40e   : > { %v3414_v32 = vadd.f32 %v3413_v46, %v2868_v54  ;;  %v6557_v6 = vpop.f32.mrf.mxu1 }
 0x410   : > { %v3686_v43 = vadd.f32 %v6115_v18, %v3414_v32  ;;  %4963 = vmatmul.msk.bf16.gmra.mxu0 %vm2577_vm2, %v5259_v53  ;;  %v6533_v18 = vld [vmem:[%s6753_s16] ss:$0 sm:$0xff]  ;;  %4997 = vmatmul.msk.bf16.gmra.mxu3 %vm2577_vm2, %v5293_v62  ;;  %v3588_v33 = vpop.f32.mrf.mxu2 }
 0x411   : > { %v3752_v55 = vadd.f32 %v6533_v18, %v3579_v50  ;;  %v3753_v1 = vadd.f32 %v6533_v18, %v3581_v58  ;;  %v5378_v50 = vld [vmem:[%s5493_s0 + $0x1f8] sm:$0xff] }
 0x412   : > { %v3814_v37 = vmax.f32 %v3686_v43, 0.0  ;;  %5081 = vmatmul.msk.bf16.gmra.mxu2 %vm1587_vm0, %v5378_v50 }
 0x413   : > { %v3880_v60 = vmax.f32 %v3752_v55, 0.0  ;;  %v3881_v2 = vmax.f32 %v3753_v1, 0.0  ;;  %v3038_v4 = vpop.f32.mrf.mxu3 }
 0x414   : > { %3942 = vst [vmem:[%s6131_s30 + $0x110] sm:$0xff] %v3814_v37  ;;  %v3584_v19 = vadd.f32 %v3583_v7, %v3038_v4 }
 0x415   : > { %v2870_v42 = vpop.f32.mrf.mxu0  ;;  %4008 = vst [vmem:[%s6131_s30 + $0x320] sm:$0xff] %v3880_v60 }
 0x416   : > { %v3416_v46 = vadd.f32 %v6478_v59, %v2870_v42  ;;  %4009 = vst [vmem:[%s6131_s30 + $0x328] sm:$0xff] %v3881_v2  ;;  %v3754_v21 = vadd.f32 %v6533_v18, %v3584_v19  ;;  %v3433_v22 = vpop.f32.mrf.mxu1 }
 0x418   : > { %v3687_v11 = vadd.f32 %v6533_v18, %v3416_v46  ;;  %v3882_v29 = vmax.f32 %v3754_v21, 0.0  ;;  %v3590_v45 = vpop.f32.mrf.mxu2 }
 0x41a   : > { %v3815_v12 = vmax.f32 %v3687_v11, 0.0  ;;  %4010 = vst [vmem:[%s6131_s30 + $0x330] sm:$0xff] %v3882_v29  ;;  %v5377_v11 = vld [vmem:[%s5493_s0 + $0xf0] sm:$0xff] }
 0x41b   : > { %v3040_v25 = vpop.f32.mrf.mxu3  ;;  %5048 = vmatmul.msk.bf16.gmra.mxu1 %vm1587_vm0, %v5377_v11  ;;  %v5264_v29 = vld [vmem:[%s6739_s2 + $0xf0] sm:$0xff] }
 0x41c   : > { %3943 = vst [vmem:[%s6131_s30 + $0x118] sm:$0xff] %v3815_v12  ;;  %v3586_v57 = vadd.f32 %v3585_v23, %v3040_v25  ;;  %v5295_v12 = vld [vmem:[%s6739_s2 + $0x1e8] sm:$0xff] }
 0x41d   : > { %v2873_v51 = vpop.f32.mrf.mxu0 }
 0x41e   : > { %v3419_v16 = vadd.f32 %v6486_v5, %v2873_v51  ;;  %v3755_v53 = vadd.f32 %v6533_v18, %v3586_v57  ;;  %v3435_v40 = vpop.f32.mrf.mxu1 }
 0x420   : > { %v3688_v59 = vadd.f32 %v6533_v18, %v3419_v16  ;;  %4964 = vmatmul.msk.bf16.gmra.mxu0 %vm2577_vm2, %v5260_v49  ;;  %4998 = vmatmul.msk.bf16.gmra.mxu3 %vm2577_vm2, %v5294_v27  ;;  %v3883_v63 = vmax.f32 %v3755_v53, 0.0  ;;  %v3593_v58 = vpop.f32.mrf.mxu2 }
 0x422   : > { %v3816_v61 = vmax.f32 %v3688_v59, 0.0  ;;  %4011 = vst [vmem:[%s6131_s30 + $0x338] sm:$0xff] %v3883_v63 }
 0x423   : > { %v3043_v13 = vpop.f32.mrf.mxu3 }
 0x424   : > { %3944 = vst [vmem:[%s6131_s30 + $0x120] sm:$0xff] %v3816_v61  ;;  %v3589_v0 = vadd.f32 %v3588_v33, %v3043_v13  ;;  %v5380_v33 = vld [vmem:[%s5493_s0 + $0x100] sm:$0xff] }
 0x425   : > { %v2875_v3 = vpop.f32.mrf.mxu0 }
 0x426   : > { %v3421_v5 = vadd.f32 %v6503_v24, %v2875_v3  ;;  %v3756_v38 = vadd.f32 %v6533_v18, %v3589_v0  ;;  %v3438_v42 = vpop.f32.mrf.mxu1 }
 0x428   : > { %v3689_v8 = vadd.f32 %v6533_v18, %v3421_v5  ;;  %v3884_v48 = vmax.f32 %v3756_v38, 0.0  ;;  %v3595_v4 = vpop.f32.mrf.mxu2 }
 0x42a   : > { %v3817_v9 = vmax.f32 %v3689_v8, 0.0  ;;  %4012 = vst [vmem:[%s6131_s30 + $0x340] sm:$0xff] %v3884_v48  ;;  %v5379_v8 = vld [vmem:[%s5493_s0 + $0xf8] sm:$0xff] }
 0x42b   : > { %v3045_v44 = vpop.f32.mrf.mxu3  ;;  %5049 = vmatmul.msk.bf16.gmra.mxu1 %vm1587_vm0, %v5379_v8 }
 0x42c   : > { %3945 = vst [vmem:[%s6131_s30 + $0x128] sm:$0xff] %v3817_v9  ;;  %v3591_v46 = vadd.f32 %v3590_v45, %v3045_v44  ;;  %v5296_v9 = vld [vmem:[%s6739_s2 + $0x1f0] sm:$0xff] }
 0x42d   : > { %v2878_v20 = vpop.f32.mrf.mxu0 }
 0x42e   : > { %v3424_v26 = vadd.f32 %v6511_v39, %v2878_v20  ;;  %v3757_v49 = vadd.f32 %v6533_v18, %v3591_v46  ;;  %v3440_v56 = vpop.f32.mrf.mxu1 }
 0x430   : > { %v3690_v24 = vadd.f32 %v6533_v18, %v3424_v26  ;;  %4965 = vmatmul.msk.bf16.gmra.mxu0 %vm2577_vm2, %v5261_v10  ;;  %4999 = vmatmul.msk.bf16.gmra.mxu3 %vm2577_vm2, %v5295_v12  ;;  %v3885_v52 = vmax.f32 %v3757_v49, 0.0  ;;  %v3598_v23 = vpop.f32.mrf.mxu2 }
 0x432   : > { %v3818_v54 = vmax.f32 %v3690_v24, 0.0  ;;  %4013 = vst [vmem:[%s6131_s30 + $0x348] sm:$0xff] %v3885_v52 }
 0x433   : > { %v3048_v55 = vpop.f32.mrf.mxu3 }
 0x434   : > { %3946 = vst [vmem:[%s6131_s30 + $0x130] sm:$0xff] %v3818_v54  ;;  %v3594_v62 = vadd.f32 %v3593_v58, %v3048_v55 }
 0x435   : > { %v2880_v32 = vpop.f32.mrf.mxu0 }
 0x436   : > { %v3426_v39 = vadd.f32 %v6528_v47, %v2880_v32  ;;  %v3758_v2 = vadd.f32 %v6533_v18, %v3594_v62  ;;  %v3443_v3 = vpop.f32.mrf.mxu1 }
 0x438   : > { %v3691_v43 = vadd.f32 %v6533_v18, %v3426_v39  ;;  %v3886_v7 = vmax.f32 %v3758_v2, 0.0  ;;  %v3600_v32 = vpop.f32.mrf.mxu2 }
 0x43a   : > { %v3819_v34 = vmax.f32 %v3691_v43, 0.0  ;;  %4014 = vst [vmem:[%s6131_s30 + $0x350] sm:$0xff] %v3886_v7  ;;  %v5297_v43 = vld [vmem:[%s6739_s2 + $0x1f8] sm:$0xff] }
 0x43b   : > { %v3050_v14 = vpop.f32.mrf.mxu3  ;;  %5050 = vmatmul.msk.bf16.gmra.mxu1 %vm1587_vm0, %v5380_v33 }
 0x43c   : > { %3947 = vst [vmem:[%s6131_s30 + $0x138] sm:$0xff] %v3819_v34  ;;  %v3596_v5 = vadd.f32 %v3595_v4, %v3050_v14 }
 0x43d   : > { %v2883_v41 = vpop.f32.mrf.mxu0 }
 0x43e   : > { %v3429_v37 = vadd.f32 %v3428_v35, %v2883_v41  ;;  %v3759_v10 = vadd.f32 %v6533_v18, %v3596_v5 }
 0x440   : > { %v3692_v47 = vadd.f32 %v6533_v18, %v3429_v37  ;;  %4966 = vmatmul.msk.bf16.gmra.mxu0 %vm2577_vm2, %v5262_v36  ;;  %5000 = vmatmul.msk.bf16.gmra.mxu3 %vm2577_vm2, %v5296_v9  ;;  %v3887_v20 = vmax.f32 %v3759_v10, 0.0 }
 0x442   : > { %v3820_v51 = vmax.f32 %v3692_v47, 0.0  ;;  %4015 = vst [vmem:[%s6131_s30 + $0x358] sm:$0xff] %v3887_v20  ;;  %v5265_v47 = vld [vmem:[%s6739_s2 + $0xf8] sm:$0xff] }
 0x443   : > { %v3053_v26 = vpop.f32.mrf.mxu3 }
 0x444   : > { %3948 = vst [vmem:[%s6131_s30 + $0x140] sm:$0xff] %v3820_v51  ;;  %v3599_v30 = vadd.f32 %v3598_v23, %v3053_v26 }
 0x445   : > { %v2885_v16 = vpop.f32.mrf.mxu0 }
 0x446   : > { %v3431_v35 = vadd.f32 %v6557_v6, %v2885_v16  ;;  %v3760_v54 = vadd.f32 %v6533_v18, %v3599_v30 }
 0x448   : > { %v3693_v59 = vadd.f32 %v6533_v18, %v3431_v35 }
 0x44a   : > { %v3821_v60 = vmax.f32 %v3693_v59, 0.0 }
 0x44b   : > { %v3055_v53 = vpop.f32.mrf.mxu3 }
 0x44c   : > { %3949 = vst [vmem:[%s6131_s30 + $0x148] sm:$0xff] %v3821_v60  ;;  %v3601_v13 = vadd.f32 %v3600_v32, %v3055_v53 }
 0x44d   : > { %v2888_v1 = vpop.f32.mrf.mxu0 }
 0x44e   : > { %v3434_v61 = vadd.f32 %v3433_v22, %v2888_v1  ;;  %v3445_v22 = vpop.f32.mrf.mxu1  ;;  %v3761_v34 = vadd.f32 %v6533_v18, %v3601_v13 }
 0x450   : > { %v3694_v6 = vadd.f32 %v6533_v18, %v3434_v61  ;;  %4967 = vmatmul.msk.bf16.gmra.mxu0 %vm2577_vm2, %v5263_v31  ;;  %5001 = vmatmul.msk.bf16.gmra.mxu3 %vm2577_vm2, %v5297_v43  ;;  %v3889_v0 = vmax.f32 %v3761_v34, 0.0 }
 0x452   : > { %v3822_v19 = vmax.f32 %v3694_v6, 0.0  ;;  %4017 = vst [vmem:[%s6131_s30 + $0x368] sm:$0xff] %v3889_v0 }
 0x453   : > { %v3058_v44 = vpop.f32.mrf.mxu3 }
 0x454   : > { %3950 = vst [vmem:[%s6131_s30 + $0x150] sm:$0xff] %v3822_v19 }
 0x455   : > { %v2890_v25 = vpop.f32.mrf.mxu0 }
 0x456   : > { %v3436_v21 = vadd.f32 %v3435_v40, %v2890_v25  ;;  %v3448_v63 = vpop.f32.mrf.mxu1  ;;  %v3888_v40 = vmax.f32 %v3760_v54, 0.0 }
 0x458   : > { %v3695_v57 = vadd.f32 %v6533_v18, %v3436_v21  ;;  %4016 = vst [vmem:[%s6131_s30 + $0x360] sm:$0xff] %v3888_v40 }
 0x45a   : > { %v3823_v24 = vmax.f32 %v3695_v57, 0.0 }
 0x45b   : > { %v3060_v12 = vpop.f32.mrf.mxu3 }
 0x45c   : > { %3951 = vst [vmem:[%s6131_s30 + $0x158] sm:$0xff] %v3823_v24 }
 0x45d   : > { %v2893_v27 = vpop.f32.mrf.mxu0 }
 0x45e   : > { %v3439_v17 = vadd.f32 %v3438_v42, %v2893_v27  ;;  %v3450_v38 = vpop.f32.mrf.mxu1  ;;  %v3603_v42 = vpop.f32.mrf.mxu2 }
 0x45f   : > { %v3604_v48 = vadd.f32 %v3603_v42, %v3058_v44 }
 0x460   : > { %v3696_v39 = vadd.f32 %v6533_v18, %v3439_v17  ;;  %4968 = vmatmul.msk.bf16.gmra.mxu0 %vm2577_vm2, %v5264_v29  ;;  %v5267_v17 = vld [vmem:[%s6739_s2 + $0x108] sm:$0xff] }
 0x461   : > { %v3762_v50 = vadd.f32 %v6533_v18, %v3604_v48 }
 0x462   : > { %v3824_v36 = vmax.f32 %v3696_v39, 0.0 }
 0x463   : > { %v3890_v35 = vmax.f32 %v3762_v50, 0.0  ;;  %v3063_v31 = vpop.f32.mrf.mxu3 }
 0x464   : > { %3952 = vst [vmem:[%s6131_s30 + $0x160] sm:$0xff] %v3824_v36 }
 0x465   : > { %v2895_v41 = vpop.f32.mrf.mxu0  ;;  %4018 = vst [vmem:[%s6131_s30 + $0x370] sm:$0xff] %v3890_v35 }
 0x466   : > { %v3441_v37 = vadd.f32 %v3440_v56, %v2895_v41  ;;  %v3453_v51 = vpop.f32.mrf.mxu1  ;;  %v3605_v52 = vpop.f32.mrf.mxu2 }
 0x467   : > { %v3606_v16 = vadd.f32 %v3605_v52, %v3060_v12 }
 0x468   : > { %v3697_v45 = vadd.f32 %v6533_v18, %v3441_v37 }
 0x469   : > { %v3763_v56 = vadd.f32 %v6533_v18, %v3606_v16 }
 0x46a   : > { %v3825_v46 = vmax.f32 %v3697_v45, 0.0 }
 0x46b   : > { %v3891_v59 = vmax.f32 %v3763_v56, 0.0  ;;  %v3065_v6 = vpop.f32.mrf.mxu3 }
 0x46c   : > { %3953 = vst [vmem:[%s6131_s30 + $0x168] sm:$0xff] %v3825_v46 }
 0x46d   : > { %v2898_v11 = vpop.f32.mrf.mxu0  ;;  %4019 = vst [vmem:[%s6131_s30 + $0x378] sm:$0xff] %v3891_v59 }
 0x46e   : > { %v3444_v49 = vadd.f32 %v3443_v3, %v2898_v11  ;;  %v3455_v1 = vpop.f32.mrf.mxu1  ;;  %v3608_v14 = vpop.f32.mrf.mxu2  ;;  %v5266_v3 = vld [vmem:[%s6739_s2 + $0x100] sm:$0xff] }
 0x46f   : > { %v3609_v4 = vadd.f32 %v3608_v14, %v3063_v31 }
 0x470   : > { %v3698_v55 = vadd.f32 %v6533_v18, %v3444_v49  ;;  %4969 = vmatmul.msk.bf16.gmra.mxu0 %vm2577_vm2, %v5265_v47 }
 0x471   : > { %v3764_v8 = vadd.f32 %v6533_v18, %v3609_v4 }
 0x472   : > { %v3826_v58 = vmax.f32 %v3698_v55, 0.0 }
 0x473   : > { %v3892_v20 = vmax.f32 %v3764_v8, 0.0  ;;  %v3068_v57 = vpop.f32.mrf.mxu3 }
 0x474   : > { %3954 = vst [vmem:[%s6131_s30 + $0x170] sm:$0xff] %v3826_v58 }
 0x475   : > { %v2900_v60 = vpop.f32.mrf.mxu0  ;;  %4020 = vst [vmem:[%s6131_s30 + $0x380] sm:$0xff] %v3892_v20 }
 0x476   : > { %v3446_v62 = vadd.f32 %v3445_v22, %v2900_v60  ;;  %v3610_v9 = vpop.f32.mrf.mxu2  ;;  %v3458_v25 = vpop.f32.mrf.mxu1 }
 0x477   : > { %v3611_v10 = vadd.f32 %v3610_v9, %v3065_v6 }
 0x478   : > { %v3699_v61 = vadd.f32 %v6533_v18, %v3446_v62 }
 0x479   : > { %v3765_v26 = vadd.f32 %v6533_v18, %v3611_v10 }
 0x47a   : > { %v3827_v2 = vmax.f32 %v3699_v61, 0.0 }
 0x47b   : > { %v3893_v22 = vmax.f32 %v3765_v26, 0.0  ;;  %v3070_v32 = vpop.f32.mrf.mxu3 }
 0x47c   : > { %3955 = vst [vmem:[%s6131_s30 + $0x178] sm:$0xff] %v3827_v2 }
 0x47d   : > { %v2903_v5 = vpop.f32.mrf.mxu0  ;;  %4021 = vst [vmem:[%s6131_s30 + $0x388] sm:$0xff] %v3893_v22 }
 0x47e   : > { %v3449_v7 = vadd.f32 %v3448_v63, %v2903_v5  ;;  %v3613_v29 = vpop.f32.mrf.mxu2  ;;  %v3460_v53 = vpop.f32.mrf.mxu1 }
 0x47f   : > { %v3614_v54 = vadd.f32 %v3613_v29, %v3068_v57 }
 0x480   : > { %v3700_v19 = vadd.f32 %v6533_v18, %v3449_v7  ;;  %4970 = vmatmul.msk.bf16.gmra.mxu0 %vm2577_vm2, %v5266_v3 }
 0x481   : > { %v3766_v39 = vadd.f32 %v6533_v18, %v3614_v54 }
 0x482   : > { %v3828_v21 = vmax.f32 %v3700_v19, 0.0 }
 0x483   : > { %v3894_v34 = vmax.f32 %v3766_v39, 0.0 }
 0x484   : > { %3956 = vst [vmem:[%s6131_s30 + $0x180] sm:$0xff] %v3828_v21 }
 0x485   : > { %v2905_v23 = vpop.f32.mrf.mxu0  ;;  %4022 = vst [vmem:[%s6131_s30 + $0x390] sm:$0xff] %v3894_v34 }
 0x486   : > { %v3451_v24 = vadd.f32 %v3450_v38, %v2905_v23  ;;  %v3615_v40 = vpop.f32.mrf.mxu2  ;;  %v3463_v44 = vpop.f32.mrf.mxu1 }
 0x487   : > { %v3616_v33 = vadd.f32 %v3615_v40, %v3070_v32  ;;  %v3073_v38 = vpop.f32.mrf.mxu3 }
 0x488   : > { %v3701_v30 = vadd.f32 %v6533_v18, %v3451_v24 }
 0x489   : > { %v3767_v36 = vadd.f32 %v6533_v18, %v3616_v33 }
 0x48a   : > { %v3829_v27 = vmax.f32 %v3701_v30, 0.0 }
 0x48b   : > { %v3895_v41 = vmax.f32 %v3767_v36, 0.0 }
 0x48c   : > { %3957 = vst [vmem:[%s6131_s30 + $0x188] sm:$0xff] %v3829_v27 }
 0x48d   : > { %v2908_v63 = vpop.f32.mrf.mxu0  ;;  %4023 = vst [vmem:[%s6131_s30 + $0x398] sm:$0xff] %v3895_v41 }
 0x48e   : > { %v3454_v13 = vadd.f32 %v3453_v51, %v2908_v63  ;;  %v3618_v45 = vpop.f32.mrf.mxu2  ;;  %v3465_v50 = vpop.f32.mrf.mxu1 }
 0x48f   : > { %v3619_v48 = vadd.f32 %v3618_v45, %v3073_v38  ;;  %v3075_v12 = vpop.f32.mrf.mxu3 }
 0x490   : > { %v3702_v43 = vadd.f32 %v6533_v18, %v3454_v13  ;;  %4971 = vmatmul.msk.bf16.gmra.mxu0 %vm2577_vm2, %v5267_v17 }
 0x491   : > { %v3768_v51 = vadd.f32 %v6533_v18, %v3619_v48 }
 0x492   : > { %v3830_v0 = vmax.f32 %v3702_v43, 0.0 }
 0x493   : > { %v3896_v35 = vmax.f32 %v3768_v51, 0.0 }
 0x494   : > { %3958 = vst [vmem:[%s6131_s30 + $0x190] sm:$0xff] %v3830_v0 }
 0x495   : > { %v2910_v37 = vpop.f32.mrf.mxu0  ;;  %4024 = vst [vmem:[%s6131_s30 + $0x3a0] sm:$0xff] %v3896_v35 }
 0x496   : > { %v3456_v42 = vadd.f32 %v3455_v1, %v2910_v37  ;;  %v3620_v52 = vpop.f32.mrf.mxu2  ;;  %v3468_v61 = vpop.f32.mrf.mxu1 }
 0x497   : > { %v3621_v16 = vadd.f32 %v3620_v52, %v3075_v12  ;;  %v3078_v31 = vpop.f32.mrf.mxu3 }
 0x498   : > { %v3703_v46 = vadd.f32 %v6533_v18, %v3456_v42 }
 0x499   : > { %v3769_v56 = vadd.f32 %v6533_v18, %v3621_v16 }
 0x49a   : > { %v3831_v47 = vmax.f32 %v3703_v46, 0.0 }
 0x49b   : > { %v3897_v59 = vmax.f32 %v3769_v56, 0.0 }
 0x49c   : > { %3959 = vst [vmem:[%s6131_s30 + $0x198] sm:$0xff] %v3831_v47 }
 0x49d   : > { %v2913_v11 = vpop.f32.mrf.mxu0  ;;  %4025 = vst [vmem:[%s6131_s30 + $0x3a8] sm:$0xff] %v3897_v59 }
 0x49e   : > { %v3459_v49 = vadd.f32 %v3458_v25, %v2913_v11  ;;  %v3623_v1 = vpop.f32.mrf.mxu2  ;;  %v3470_v26 = vpop.f32.mrf.mxu1 }
 0x49f   : > { %v3624_v3 = vadd.f32 %v3623_v1, %v3078_v31  ;;  %v3080_v5 = vpop.f32.mrf.mxu3 }
 0x4a0   : > { %v3704_v55 = vadd.f32 %v6533_v18, %v3459_v49 }
 0x4a1   : > { %v3770_v7 = vadd.f32 %v6533_v18, %v3624_v3 }
 0x4a2   : > { %v3832_v58 = vmax.f32 %v3704_v55, 0.0 }
 0x4a3   : > { %v3898_v19 = vmax.f32 %v3770_v7, 0.0 }
 0x4a4   : > { %3960 = vst [vmem:[%s6131_s30 + $0x1a0] sm:$0xff] %v3832_v58 }
 0x4a5   : > { %v2915_v60 = vpop.f32.mrf.mxu0  ;;  %4026 = vst [vmem:[%s6131_s30 + $0x3b0] sm:$0xff] %v3898_v19 }
 0x4a6   : > { %v3461_v62 = vadd.f32 %v3460_v53, %v2915_v60  ;;  %v3625_v8 = vpop.f32.mrf.mxu2  ;;  %v3473_v27 = vpop.f32.mrf.mxu1 }
 0x4a7   : > { %v3626_v9 = vadd.f32 %v3625_v8, %v3080_v5  ;;  %v3083_v23 = vpop.f32.mrf.mxu3 }
 0x4a8   : > { %v3705_v14 = vadd.f32 %v6533_v18, %v3461_v62 }
 0x4a9   : > { %v3771_v20 = vadd.f32 %v6533_v18, %v3626_v9 }
 0x4aa   : > { %v3833_v2 = vmax.f32 %v3705_v14, 0.0 }
 0x4ab   : > { %v3899_v21 = vmax.f32 %v3771_v20, 0.0 }
 0x4ac   : > { %3961 = vst [vmem:[%s6131_s30 + $0x1a8] sm:$0xff] %v3833_v2 }
 0x4ad   : > { %v2918_v4 = vpop.f32.mrf.mxu0  ;;  %4027 = vst [vmem:[%s6131_s30 + $0x3b8] sm:$0xff] %v3899_v21 }
 0x4ae   : > { %v3464_v6 = vadd.f32 %v3463_v44, %v2918_v4  ;;  %v3628_v24 = vpop.f32.mrf.mxu2  ;;  %v3475_v37 = vpop.f32.mrf.mxu1 }
 0x4af   : > { %v3629_v53 = vadd.f32 %v3628_v24, %v3083_v23  ;;  %v3085_v54 = vpop.f32.mrf.mxu3 }
 0x4b0   : > { %v3706_v10 = vadd.f32 %v6533_v18, %v3464_v6 }
 0x4b1   : > { %v3772_v32 = vadd.f32 %v6533_v18, %v3629_v53 }
 0x4b2   : > { %v3834_v25 = vmax.f32 %v3706_v10, 0.0 }
 0x4b3   : > { %v3900_v33 = vmax.f32 %v3772_v32, 0.0 }
 0x4b4   : > { %3962 = vst [vmem:[%s6131_s30 + $0x1b0] sm:$0xff] %v3834_v25 }
 0x4b5   : > { %v2920_v22 = vpop.f32.mrf.mxu0  ;;  %4028 = vst [vmem:[%s6131_s30 + $0x3c0] sm:$0xff] %v3900_v33 }
 0x4b6   : > { %v3466_v57 = vadd.f32 %v3465_v50, %v2920_v22  ;;  %v3630_v13 = vpop.f32.mrf.mxu2  ;;  %v3478_v52 = vpop.f32.mrf.mxu1 }
 0x4b7   : > { %v3631_v39 = vadd.f32 %v3630_v13, %v3085_v54  ;;  %v3088_v41 = vpop.f32.mrf.mxu3 }
 0x4b8   : > { %v3707_v29 = vadd.f32 %v6533_v18, %v3466_v57 }
 0x4b9   : > { %v3773_v43 = vadd.f32 %v6533_v18, %v3631_v39 }
 0x4ba   : > { %v3835_v30 = vmax.f32 %v3707_v29, 0.0 }
 0x4bb   : > { %v3901_v36 = vmax.f32 %v3773_v43, 0.0 }
 0x4bc   : > { %3963 = vst [vmem:[%s6131_s30 + $0x1b8] sm:$0xff] %v3835_v30 }
 0x4bd   : > { %v2923_v17 = vpop.f32.mrf.mxu0  ;;  %4029 = vst [vmem:[%s6131_s30 + $0x3c8] sm:$0xff] %v3901_v36 }
 0x4be   : > { %v3469_v63 = vadd.f32 %v3468_v61, %v2923_v17  ;;  %v3633_v38 = vpop.f32.mrf.mxu2  ;;  %v3480_v14 = vpop.f32.mrf.mxu1 }
 0x4bf   : > { %v3634_v46 = vadd.f32 %v3633_v38, %v3088_v41  ;;  %v3090_v48 = vpop.f32.mrf.mxu3 }
 0x4c0   : > { %v3708_v40 = vadd.f32 %v6533_v18, %v3469_v63 }
 0x4c1   : > { %v3774_v12 = vadd.f32 %v6533_v18, %v3634_v46 }
 0x4c2   : > { %v3836_v34 = vmax.f32 %v3708_v40, 0.0 }
 0x4c3   : > { %v3902_v16 = vmax.f32 %v3774_v12, 0.0 }
 0x4c4   : > { %3964 = vst [vmem:[%s6131_s30 + $0x1c0] sm:$0xff] %v3836_v34 }
 0x4c5   : > { %v2925_v0 = vpop.f32.mrf.mxu0  ;;  %4030 = vst [vmem:[%s6131_s30 + $0x3d0] sm:$0xff] %v3902_v16 }
 0x4c6   : > { %v3471_v44 = vadd.f32 %v3470_v26, %v2925_v0  ;;  %v3635_v49 = vpop.f32.mrf.mxu2  ;;  %v3483_v25 = vpop.f32.mrf.mxu1 }
 0x4c7   : > { %v3636_v50 = vadd.f32 %v3635_v49, %v3090_v48  ;;  %v3093_v59 = vpop.f32.mrf.mxu3 }
 0x4c8   : > { %v3709_v42 = vadd.f32 %v6533_v18, %v3471_v44 }
 0x4c9   : > { %v3775_v55 = vadd.f32 %v6533_v18, %v3636_v50 }
 0x4ca   : > { %v3837_v45 = vmax.f32 %v3709_v42, 0.0 }
 0x4cb   : > { %v3903_v56 = vmax.f32 %v3775_v55, 0.0 }
 0x4cc   : > { %3965 = vst [vmem:[%s6131_s30 + $0x1c8] sm:$0xff] %v3837_v45 }
 0x4cd   : > { %v2928_v47 = vpop.f32.mrf.mxu0  ;;  %4031 = vst [vmem:[%s6131_s30 + $0x3d8] sm:$0xff] %v3903_v56 }
 0x4ce   : > { %v3474_v11 = vadd.f32 %v3473_v27, %v2928_v47  ;;  %v3638_v31 = vpop.f32.mrf.mxu2  ;;  %v3485_v63 = vpop.f32.mrf.mxu1 }
 0x4cf   : > { %v3639_v61 = vadd.f32 %v3638_v31, %v3093_v59  ;;  %v3095_v3 = vpop.f32.mrf.mxu3 }
 0x4d0   : > { %v3710_v51 = vadd.f32 %v6533_v18, %v3474_v11 }
 0x4d1   : > { %v3776_v5 = vadd.f32 %v6533_v18, %v3639_v61 }
 0x4d2   : > { %v3838_v35 = vmax.f32 %v3710_v51, 0.0 }
 0x4d3   : > { %v3904_v9 = vmax.f32 %v3776_v5, 0.0 }
 0x4d4   : > { %3966 = vst [vmem:[%s6131_s30 + $0x1d0] sm:$0xff] %v3838_v35 }
 0x4d5   : > { %v2930_v58 = vpop.f32.mrf.mxu0  ;;  %4032 = vst [vmem:[%s6131_s30 + $0x3e0] sm:$0xff] %v3904_v9 }
 0x4d6   : > { %v3476_v60 = vadd.f32 %v3475_v37, %v2930_v58  ;;  %v3640_v6 = vpop.f32.mrf.mxu2  ;;  %v3488_v41 = vpop.f32.mrf.mxu1 }
 0x4d7   : > { %v3641_v7 = vadd.f32 %v3640_v6, %v3095_v3  ;;  %v3098_v21 = vpop.f32.mrf.mxu3 }
 0x4d8   : > { %v3711_v62 = vadd.f32 %v6533_v18, %v3476_v60 }
 0x4d9   : > { %v3777_v10 = vadd.f32 %v6533_v18, %v3641_v7 }
 0x4da   : > { %v3839_v1 = vmax.f32 %v3711_v62, 0.0 }
 0x4db   : > { %v3905_v20 = vmax.f32 %v3777_v10, 0.0 }
 0x4dc   : > { %3967 = vst [vmem:[%s6131_s30 + $0x1d8] sm:$0xff] %v3839_v1 }
 0x4dd   : > { %v2933_v2 = vpop.f32.mrf.mxu0  ;;  %4033 = vst [vmem:[%s6131_s30 + $0x3e8] sm:$0xff] %v3905_v20 }
 0x4de   : > { %v3479_v4 = vadd.f32 %v3478_v52, %v2933_v2  ;;  %v3643_v23 = vpop.f32.mrf.mxu2  ;;  %v3490_v46 = vpop.f32.mrf.mxu1 }
 0x4df   : > { %v3644_v29 = vadd.f32 %v3643_v23, %v3098_v21  ;;  %v3100_v27 = vpop.f32.mrf.mxu3 }
 0x4e0   : > { %v3712_v8 = vadd.f32 %v6533_v18, %v3479_v4 }
 0x4e1   : > { %v3778_v17 = vadd.f32 %v6533_v18, %v3644_v29 }
 0x4e2   : > { %v3840_v19 = vmax.f32 %v3712_v8, 0.0 }
 0x4e3   : > { %v3906_v39 = vmax.f32 %v3778_v17, 0.0 }
 0x4e4   : > { %3968 = vst [vmem:[%s6131_s30 + $0x1e0] sm:$0xff] %v3840_v19 }
 0x4e5   : > { %v2935_v26 = vpop.f32.mrf.mxu0  ;;  %4034 = vst [vmem:[%s6131_s30 + $0x3f0] sm:$0xff] %v3906_v39 }
 0x4e6   : > { %v3481_v22 = vadd.f32 %v3480_v14, %v2935_v26  ;;  %v3645_v54 = vpop.f32.mrf.mxu2 }
 0x4e7   : > { %v3646_v32 = vadd.f32 %v3645_v54, %v3100_v27 }
 0x4e8   : > { %v3713_v57 = vadd.f32 %v6533_v18, %v3481_v22 }
 0x4e9   : > { %v3779_v40 = vadd.f32 %v6533_v18, %v3646_v32 }
 0x4ea   : > { %v3841_v24 = vmax.f32 %v3713_v57, 0.0 }
 0x4eb   : > { %v3907_v43 = vmax.f32 %v3779_v40, 0.0 }
 0x4ec   : > { %3969 = vst [vmem:[%s6131_s30 + $0x1e8] sm:$0xff] %v3841_v24 }
 0x4ed   : > { %v2938_v30 = vpop.f32.mrf.mxu0  ;;  %4035 = vst [vmem:[%s6131_s30 + $0x3f8] sm:$0xff] %v3907_v43 }
 0x4ee   : > { %v3484_v53 = vadd.f32 %v3483_v25, %v2938_v30 }
 0x4f0   : > { %v3714_v13 = vadd.f32 %v6533_v18, %v3484_v53 }
 0x4f2   : > { %v3842_v33 = vmax.f32 %v3714_v13, 0.0 }
 0x4f4   : > { %3970 = vst [vmem:[%s6131_s30 + $0x1f0] sm:$0xff] %v3842_v33 }
 0x4f5   : > { %v2940_v34 = vpop.f32.mrf.mxu0 }
 0x4f6   : > { %v3486_v36 = vadd.f32 %v3485_v63, %v2940_v34 }
 0x4f8   : > { %v3715_v0 = vadd.f32 %v6533_v18, %v3486_v36 }
 0x4fa   : > { %v3843_v44 = vmax.f32 %v3715_v0, 0.0 }
 0x4fc   : > { %3971 = vst [vmem:[%s6131_s30 + $0x1f8] sm:$0xff] %v3843_v44 }
 0x4fd   : > { %v2943_v37 = vpop.f32.mrf.mxu0 }
 0x4fe   : > { %v3489_v38 = vadd.f32 %v3488_v41, %v2943_v37 }
 0x500   : > { %v3716_v42 = vadd.f32 %v6533_v18, %v3489_v38 }
 0x502   : > { %v3844_v45 = vmax.f32 %v3716_v42, 0.0 }
 0x504   : > { %3972 = vst [vmem:[%s6131_s30 + $0x200] sm:$0xff] %v3844_v45 }
 0x505   : > { %v2945_v47 = vpop.f32.mrf.mxu0 }
 0x506   : > { %v3491_v48 = vadd.f32 %v3490_v46, %v2945_v47 }
 0x508   : > { %v3717_v11 = vadd.f32 %v6533_v18, %v3491_v48 }
 0x50a   : > { %v3845_v12 = vmax.f32 %v3717_v11, 0.0 }
 0x50c   : > { %3973 = vst [vmem:[%s6131_s30 + $0x208] sm:$0xff] %v3845_v12 }
 0x50d   : > { %v2948_v49 = vpop.f32.mrf.mxu0 }
 0x50e   : > { %v3494_v50 = vadd.f32 %v6137_v15, %v2948_v49 }
 0x510   : > { %v3718_v51 = vadd.f32 %v6533_v18, %v3494_v50 }
 0x512   : > { %v3846_v52 = vmax.f32 %v3718_v51, 0.0 }
 0x514   : > { %3974 = vst [vmem:[%s6131_s30 + $0x210] sm:$0xff] %v3846_v52 }
 0x515   : > { %v2950_v16 = vpop.f32.mrf.mxu0 }
 0x516   : > { %v3496_v55 = vadd.f32 %v6144_v28, %v2950_v16 }
 0x518   : > { %v3719_v35 = vadd.f32 %v6533_v18, %v3496_v55 }
 0x51a   : > { %v3847_v56 = vmax.f32 %v3719_v35, 0.0 }
 0x51c   : > { %3975 = vst [vmem:[%s6131_s30 + $0x218] sm:$0xff] %v3847_v56 }
 0x51d PF: > { %s6762_s29 = sld [smem:[#allocation2_spill]] }
 0x523   : > { %s27_s24 = sadd.s32 1, %s6762_s29  }
 0x524   : > { %p24_p4 = scmp.ge.s32.totalorder %s27_s24, 4  }
 0x526   :  { %26 = sbr.rel (!%p24_p4) target bundleno = 3 (0x3), region = 118 }

</bundles_post_ra>
